<compile_context>
chip_gen: v6e
topology: v6e:2x2x1
jax: 0.10.0
libtpu: 0.0.40
codegen_flags: <defaults>
</compile_context>

<pallas_src>
import functools

import jax
import jax.numpy as jnp
from jax.experimental import pallas as pl
from jax.experimental.pallas import tpu as pltpu


# ----------------------------------------------------------------------------
# Config: small synthetic stand-in for conch_ViT-B-16 visual trunk.
# ----------------------------------------------------------------------------
PATCH = 16
IMG_C = 3
WIDTH = 128                 # trunk width (768 in ViT-B) -- lane-dense multiple of 128
HEADS = 2
HEAD_DIM = WIDTH // HEADS   # 64 (same head dim as real ViT-B)
MLP = 4 * WIDTH             # 512
DEPTH = 2                   # 12 in ViT-B
PROJ_DIM = 512              # CONCH pooled image-embedding dim (self.dim)
LN_EPS = 1e-5


# ----------------------------------------------------------------------------
# In-kernel helpers (pure jnp, operate on VMEM/vreg-resident f32 values)
# ----------------------------------------------------------------------------
def _ln(x, g, b):
    mu = jnp.mean(x, axis=-1, keepdims=True)
    var = jnp.mean(jnp.square(x - mu), axis=-1, keepdims=True)
    return (x - mu) * jax.lax.rsqrt(var + LN_EPS) * g + b


def _l2(x):
    # Matches torch.nn.functional.normalize(dim=-1): x / max(||x||_2, 1e-12)
    ss = jnp.sum(x * x, axis=-1, keepdims=True)
    return x * jax.lax.rsqrt(jnp.maximum(ss, 1e-24))


def _rep_spec(arr):
    """Full-array BlockSpec replicated across the (batch) grid axis.

    Constant index map => the block is DMA'd to VMEM once and revisited for
    every batch grid step.
    """
    zeros = (0,) * arr.ndim
    return pl.BlockSpec(arr.shape, lambda b, _z=zeros: _z)


# ----------------------------------------------------------------------------
# The single fused kernel: embed -> transformer trunk -> head, per batch elem
# ----------------------------------------------------------------------------
def _conch_kernel(p_ref, tokb_ref, pw_ref,
                  ln1g_ref, ln1b_ref, qkvw_ref, qkvb_ref, outw_ref, outb_ref,
                  ln2g_ref, ln2b_ref, fc1w_ref, fc1b_ref, fc2w_ref, fc2b_ref,
                  lnfg_ref, lnfb_ref, projw_ref, projb_ref,
                  cls_ref, patch_ref, *, depth, heads, scale):
    mm = pw_ref.dtype                                      # bf16 MXU inputs

    # --- embed: (zero-padded) patches @ Wp + token bias.
    # Row 0 of p is all zeros; row 0 of tok_bias = cls_token + pos[0], rows 1..
    # = patch_bias + pos[1..], so the full token sequence falls out of one matmul.
    p = p_ref[0].astype(mm)                                # (T, K)
    x = jnp.dot(p, pw_ref[...], preferred_element_type=jnp.float32) + tokb_ref[...]
    w = x.shape[-1]
    hd = w // heads

    # --- transformer trunk, statically unrolled over depth; x never leaves VMEM
    for d in range(depth):
        # attention: LN1 -> QKV -> per-head softmax(QK^T)V -> out-proj (+ residual)
        h = _ln(x, ln1g_ref[d], ln1b_ref[d])
        qkv = jnp.dot(h.astype(mm), qkvw_ref[d],
                      preferred_element_type=jnp.float32) + qkvb_ref[d]    # (T, 3W)
        out_w = outw_ref[d]                                # (W, W) bf16
        o_acc = outb_ref[d]                                # out-proj bias folded in
        for hh in range(heads):                            # static unroll over heads
            q = qkv[:, hh * hd:(hh + 1) * hd]
            k = qkv[:, w + hh * hd:w + (hh + 1) * hd]
            v = qkv[:, 2 * w + hh * hd:2 * w + (hh + 1) * hd]
            s = jax.lax.dot_general(q.astype(mm), k.astype(mm),
                                    (((1,), (1,)), ((), ())),
                                    preferred_element_type=jnp.float32) * scale
            s = s - jnp.max(s, axis=-1, keepdims=True)
            pr = jnp.exp(s)
            pr = pr * pl.reciprocal(jnp.sum(pr, axis=-1, keepdims=True), approx=True)
            ctx = jnp.dot(pr.astype(mm), v.astype(mm),
                          preferred_element_type=jnp.float32)              # (T, hd)
            # fold the head-concat into the out-projection: sum per-head slices
            o_acc = o_acc + jnp.dot(ctx.astype(mm),
                                    out_w[hh * hd:(hh + 1) * hd, :],
                                    preferred_element_type=jnp.float32)
        x = x + o_acc                                      # residual

        # MLP: LN2 -> fc1 -> GELU -> fc2 (+ residual)
        h = _ln(x, ln2g_ref[d], ln2b_ref[d])
        h1 = jnp.dot(h.astype(mm), fc1w_ref[d],
                     preferred_element_type=jnp.float32) + fc1b_ref[d]
        # TODO(synk): timm/ViT default is exact erf GELU; tanh approximation used here.
        h1 = jax.nn.gelu(h1, approximate=True)
        x = x + jnp.dot(h1.astype(mm), fc2w_ref[d],
                        preferred_element_type=jnp.float32) + fc2b_ref[d]

    # --- head: final LN, cls projection, L2 normalize both outputs
    y = _ln(x, lnfg_ref[...], lnfb_ref[...])
    # TODO(synk): real CONCH uses an attentional pooler over patch tokens for the
    # pooled image embedding; approximated by a linear projection of the cls token.
    cls = jnp.dot(y[0:1, :].astype(mm), projw_ref[...],
                  preferred_element_type=jnp.float32) + projb_ref[...]     # (1, PROJ)
    cls_ref[0] = _l2(cls).astype(cls_ref.dtype)
    patch_ref[0] = _l2(y[1:, :]).astype(patch_ref.dtype)


def conch_fused(patches, tok_bias, params):
    """patches: (B, T, K) with a zero row prepended for the cls slot."""
    B, T, K = patches.shape
    N = T - 1
    P = params["proj_w"].shape[1]

    weights = [
        tok_bias, params["patch_w"],
        params["ln1_g"], params["ln1_b"], params["qkv_w"], params["qkv_b"],
        params["out_w"], params["out_b"], params["ln2_g"], params["ln2_b"],
        params["fc1_w"], params["fc1_b"], params["fc2_w"], params["fc2_b"],
        params["ln_f_g"].reshape(1, WIDTH), params["ln_f_b"].reshape(1, WIDTH),
        params["proj_w"], params["proj_b"].reshape(1, P),
    ]
    kern = functools.partial(_conch_kernel, depth=DEPTH, heads=HEADS,
                             scale=1.0 / (HEAD_DIM ** 0.5))
    return pl.pallas_call(
        kern,
        out_shape=(jax.ShapeDtypeStruct((B, 1, P), jnp.float32),
                   jax.ShapeDtypeStruct((B, N, WIDTH), jnp.float32)),
        grid=(B,),
        in_specs=[pl.BlockSpec((1, T, K), lambda b: (b, 0, 0))]
                 + [_rep_spec(a) for a in weights],
        out_specs=(pl.BlockSpec((1, 1, P), lambda b: (b, 0, 0)),
                   pl.BlockSpec((1, N, WIDTH), lambda b: (b, 0, 0))),
        compiler_params=pltpu.CompilerParams(dimension_semantics=("parallel",)),
    )(patches, *weights)


# ----------------------------------------------------------------------------
# Synthetic parameters (deterministic; matmul weights in bf16 for the MXU).
# Per-block params are pre-stacked along a leading depth axis at init time so
# no stacking work happens inside the jitted forward.
# ----------------------------------------------------------------------------
def init_params(key):
    keys = list(jax.random.split(key, 8))
    it = iter(keys)

    def rand(shape, dtype=jnp.bfloat16, scale=0.02):
        return (scale * jax.random.normal(next(it), shape, jnp.float32)).astype(dtype)

    patch_dim = IMG_C * PATCH * PATCH
    return {
        "patch_w": rand((patch_dim, WIDTH)),
        "patch_b": jnp.zeros((WIDTH,), jnp.float32),
        "cls_tok": rand((1, 1, WIDTH), dtype=jnp.float32),
        "proj_w": rand((WIDTH, PROJ_DIM)),
        "proj_b": jnp.zeros((PROJ_DIM,), jnp.float32),
        "ln_f_g": jnp.ones((WIDTH,), jnp.float32),
        "ln_f_b": jnp.zeros((WIDTH,), jnp.float32),
        # transformer blocks, stacked over depth
        "ln1_g": jnp.ones((DEPTH, 1, WIDTH), jnp.float32),
        "ln1_b": jnp.zeros((DEPTH, 1, WIDTH), jnp.float32),
        "qkv_w": rand((DEPTH, WIDTH, 3 * WIDTH)),
        "qkv_b": jnp.zeros((DEPTH, 1, 3 * WIDTH), jnp.float32),
        "out_w": rand((DEPTH, WIDTH, WIDTH)),
        "out_b": jnp.zeros((DEPTH, 1, WIDTH), jnp.float32),
        "ln2_g": jnp.ones((DEPTH, 1, WIDTH), jnp.float32),
        "ln2_b": jnp.zeros((DEPTH, 1, WIDTH), jnp.float32),
        "fc1_w": rand((DEPTH, WIDTH, MLP)),
        "fc1_b": jnp.zeros((DEPTH, 1, MLP), jnp.float32),
        "fc2_w": rand((DEPTH, MLP, WIDTH)),
        "fc2_b": jnp.zeros((DEPTH, 1, WIDTH), jnp.float32),
    }


# ----------------------------------------------------------------------------
# Forward pass (matches CONCH.forward semantics on the synthetic trunk)
# ----------------------------------------------------------------------------
def conch_forward(params, pos_embed, img):
    """img: (B, C, H, W) float32 (NCHW like PyTorch).

    Returns {'cls_token': (B, 1, PROJ_DIM), 'patch_token': (B, N, WIDTH)},
    both L2-normalized along the last dim.
    """
    B, C, H, Wimg = img.shape
    hp, wp = H // PATCH, Wimg // PATCH
    n_patches = hp * wp
    T = n_patches + 1

    # Patch extraction (layout glue).  conv(k=16, s=16) == matmul on flat patches.
    # TODO(synk): for production 224x224 inputs, drive this gather with a
    # lane-friendly NHWC BlockSpec inside the fused kernel instead.
    patches = img.reshape(B, C, hp, PATCH, wp, PATCH)
    patches = patches.transpose(0, 2, 4, 1, 3, 5).reshape(
        B, n_patches, C * PATCH * PATCH)
    # Prepend an all-zero "cls row" so the whole token sequence (cls + patches)
    # falls out of a single in-kernel matmul.
    patches = jnp.pad(patches, ((0, 0), (1, 0), (0, 0)))

    # Token bias: row 0 = cls_token + pos[0]; rows 1.. = patch_bias + pos[1..].
    bias_rows = jnp.broadcast_to(params["patch_b"][None, :], (n_patches, WIDTH))
    tok_bias = pos_embed.reshape(T, WIDTH) + jnp.concatenate(
        [params["cls_tok"].reshape(1, WIDTH), bias_rows], axis=0)

    cls_n, patch_n = conch_fused(patches, tok_bias, params)
    return {"cls_token": cls_n, "patch_token": patch_n}


# ----------------------------------------------------------------------------
# main
# ----------------------------------------------------------------------------
if __name__ == "__main__":
    key = jax.random.PRNGKey(0)
    k_param, k_pos, k_img = jax.random.split(key, 3)

    B, H, W = 2, 32, 32                        # 2x2 = 4 patches of 16x16
    n_tokens = (H // PATCH) * (W // PATCH) + 1

    params = init_params(k_param)
    pos_embed = (0.02 * jax.random.normal(k_pos, (1, n_tokens, WIDTH))).astype(jnp.float32)
    img = jax.random.normal(k_img, (B, IMG_C, H, W), dtype=jnp.float32)

    fwd = jax.jit(conch_forward)
    out = jax.block_until_ready(fwd(params, pos_embed, img))

    assert out["cls_token"].shape == (B, 1, PROJ_DIM)
    assert out["patch_token"].shape == (B, n_tokens - 1, WIDTH)
    # L2-normalized along the last dim
    assert jnp.allclose(jnp.linalg.norm(out["cls_token"], axis=-1), 1.0, atol=1e-4)
    assert jnp.allclose(jnp.linalg.norm(out["patch_token"], axis=-1), 1.0, atol=1e-4)

    print("KERNEL_OK")
</pallas_src>

<mosaic_0001>
module attributes {stable_mosaic.version = 11 : i64} {
  func.func @_conch_kernel(%arg0: i32, %arg1: memref<1x5x768xf32, #tpu.memory_space<vmem>>, %arg2: memref<5x128xf32, #tpu.memory_space<vmem>>, %arg3: memref<768x128xbf16, #tpu.memory_space<vmem>>, %arg4: memref<2x1x128xf32, #tpu.memory_space<vmem>>, %arg5: memref<2x1x128xf32, #tpu.memory_space<vmem>>, %arg6: memref<2x128x384xbf16, #tpu.memory_space<vmem>>, %arg7: memref<2x1x384xf32, #tpu.memory_space<vmem>>, %arg8: memref<2x128x128xbf16, #tpu.memory_space<vmem>>, %arg9: memref<2x1x128xf32, #tpu.memory_space<vmem>>, %arg10: memref<2x1x128xf32, #tpu.memory_space<vmem>>, %arg11: memref<2x1x128xf32, #tpu.memory_space<vmem>>, %arg12: memref<2x128x512xbf16, #tpu.memory_space<vmem>>, %arg13: memref<2x1x512xf32, #tpu.memory_space<vmem>>, %arg14: memref<2x512x128xbf16, #tpu.memory_space<vmem>>, %arg15: memref<2x1x128xf32, #tpu.memory_space<vmem>>, %arg16: memref<1x128xf32, #tpu.memory_space<vmem>>, %arg17: memref<1x128xf32, #tpu.memory_space<vmem>>, %arg18: memref<128x512xbf16, #tpu.memory_space<vmem>>, %arg19: memref<1x512xf32, #tpu.memory_space<vmem>>, %arg20: memref<1x1x512xf32, #tpu.memory_space<vmem>>, %arg21: memref<1x4x128xf32, #tpu.memory_space<vmem>>) attributes {dimension_semantics = [#tpu.dimension_semantics<parallel>], iteration_bounds = array<i64: 2>, scalar_prefetch = 0 : i64, scratch_operands = 0 : i64, tpu.core_type = #tpu.core_type<tc>, window_params = [{transform_indices = @transform_0, window_bounds = array<i64: 1, 5, 768>}, {pipeline_mode = #tpu.pipeline_mode<synchronous>, transform_indices = @transform_1, window_bounds = array<i64: 5, 128>}, {pipeline_mode = #tpu.pipeline_mode<synchronous>, transform_indices = @transform_2, window_bounds = array<i64: 768, 128>}, {pipeline_mode = #tpu.pipeline_mode<synchronous>, transform_indices = @transform_3, window_bounds = array<i64: 2, 1, 128>}, {pipeline_mode = #tpu.pipeline_mode<synchronous>, transform_indices = @transform_4, window_bounds = array<i64: 2, 1, 128>}, {pipeline_mode = #tpu.pipeline_mode<synchronous>, transform_indices = @transform_5, window_bounds = array<i64: 2, 128, 384>}, {pipeline_mode = #tpu.pipeline_mode<synchronous>, transform_indices = @transform_6, window_bounds = array<i64: 2, 1, 384>}, {pipeline_mode = #tpu.pipeline_mode<synchronous>, transform_indices = @transform_7, window_bounds = array<i64: 2, 128, 128>}, {pipeline_mode = #tpu.pipeline_mode<synchronous>, transform_indices = @transform_8, window_bounds = array<i64: 2, 1, 128>}, {pipeline_mode = #tpu.pipeline_mode<synchronous>, transform_indices = @transform_9, window_bounds = array<i64: 2, 1, 128>}, {pipeline_mode = #tpu.pipeline_mode<synchronous>, transform_indices = @transform_10, window_bounds = array<i64: 2, 1, 128>}, {pipeline_mode = #tpu.pipeline_mode<synchronous>, transform_indices = @transform_11, window_bounds = array<i64: 2, 128, 512>}, {pipeline_mode = #tpu.pipeline_mode<synchronous>, transform_indices = @transform_12, window_bounds = array<i64: 2, 1, 512>}, {pipeline_mode = #tpu.pipeline_mode<synchronous>, transform_indices = @transform_13, window_bounds = array<i64: 2, 512, 128>}, {pipeline_mode = #tpu.pipeline_mode<synchronous>, transform_indices = @transform_14, window_bounds = array<i64: 2, 1, 128>}, {pipeline_mode = #tpu.pipeline_mode<synchronous>, transform_indices = @transform_15, window_bounds = array<i64: 1, 128>}, {pipeline_mode = #tpu.pipeline_mode<synchronous>, transform_indices = @transform_16, window_bounds = array<i64: 1, 128>}, {pipeline_mode = #tpu.pipeline_mode<synchronous>, transform_indices = @transform_17, window_bounds = array<i64: 128, 512>}, {pipeline_mode = #tpu.pipeline_mode<synchronous>, transform_indices = @transform_18, window_bounds = array<i64: 1, 512>}, {transform_indices = @transform_19, window_bounds = array<i64: 1, 1, 512>}, {transform_indices = @transform_20, window_bounds = array<i64: 1, 4, 128>}]} {
    %c0 = arith.constant 0 : index
    %c0_0 = arith.constant 0 : index
    %c0_1 = arith.constant 0 : index
    %0 = vector.load %arg1[%c0, %c0_0, %c0_1] : memref<1x5x768xf32, #tpu.memory_space<vmem>>, vector<1x5x768xf32>
    %1 = vector.shape_cast %0 : vector<1x5x768xf32> to vector<5x768xf32>
    %2 = arith.truncf %1 : vector<5x768xf32> to vector<5x768xbf16>
    %c0_2 = arith.constant 0 : index
    %c0_3 = arith.constant 0 : index
    %3 = vector.load %arg3[%c0_2, %c0_3] : memref<768x128xbf16, #tpu.memory_space<vmem>>, vector<768x128xbf16>
    %cst = arith.constant dense<0.000000e+00> : vector<5x128xf32>
    %4 = tpu.matmul %2, %3, %cst {dimension_numbers = #tpu.dot_dimension_numbers<[1], [0], [0], [1], [0, 0, 1, 1], [], []>} : vector<5x768xbf16>, vector<768x128xbf16>, vector<5x128xf32> -> vector<5x128xf32>
    %c0_4 = arith.constant 0 : index
    %c0_5 = arith.constant 0 : index
    %5 = vector.load %arg2[%c0_4, %c0_5] : memref<5x128xf32, #tpu.memory_space<vmem>>, vector<5x128xf32>
    %6 = arith.addf %4, %5 : vector<5x128xf32>
    %c0_6 = arith.constant 0 : index
    %c0_7 = arith.constant 0 : index
    %c0_8 = arith.constant 0 : index
    %7 = vector.load %arg4[%c0_6, %c0_7, %c0_8] : memref<2x1x128xf32, #tpu.memory_space<vmem>>, vector<1x1x128xf32>
    %8 = vector.shape_cast %7 : vector<1x1x128xf32> to vector<1x128xf32>
    %c0_9 = arith.constant 0 : index
    %c0_10 = arith.constant 0 : index
    %c0_11 = arith.constant 0 : index
    %9 = vector.load %arg5[%c0_9, %c0_10, %c0_11] : memref<2x1x128xf32, #tpu.memory_space<vmem>>, vector<1x1x128xf32>
    %10 = vector.shape_cast %9 : vector<1x1x128xf32> to vector<1x128xf32>
    %cst_12 = arith.constant dense<0.000000e+00> : vector<5xf32>
    %11 = vector.multi_reduction <add>, %6, %cst_12 [1] : vector<5x128xf32> to vector<5xf32>
    %12 = vector.shape_cast %11 : vector<5xf32> to vector<5x1xf32>
    %cst_13 = arith.constant 1.280000e+02 : f32
    %13 = vector.broadcast %cst_13 : f32 to vector<5x1xf32>
    %14 = arith.divf %12, %13 : vector<5x1xf32>
    %15 = vector.broadcast %14 : vector<5x1xf32> to vector<5x128xf32>
    %16 = arith.subf %6, %15 : vector<5x128xf32>
    %17 = arith.mulf %16, %16 : vector<5x128xf32>
    %cst_14 = arith.constant dense<0.000000e+00> : vector<5xf32>
    %18 = vector.multi_reduction <add>, %17, %cst_14 [1] : vector<5x128xf32> to vector<5xf32>
    %19 = vector.shape_cast %18 : vector<5xf32> to vector<5x1xf32>
    %cst_15 = arith.constant 1.280000e+02 : f32
    %20 = vector.broadcast %cst_15 : f32 to vector<5x1xf32>
    %21 = arith.divf %19, %20 : vector<5x1xf32>
    %22 = vector.broadcast %14 : vector<5x1xf32> to vector<5x128xf32>
    %23 = arith.subf %6, %22 : vector<5x128xf32>
    %cst_16 = arith.constant 9.99999974E-6 : f32
    %24 = vector.broadcast %cst_16 : f32 to vector<5x1xf32>
    %25 = arith.addf %21, %24 : vector<5x1xf32>
    %26 = math.rsqrt %25 : vector<5x1xf32>
    %27 = vector.broadcast %26 : vector<5x1xf32> to vector<5x128xf32>
    %28 = arith.mulf %23, %27 : vector<5x128xf32>
    %29 = vector.broadcast %8 : vector<1x128xf32> to vector<5x128xf32>
    %30 = arith.mulf %28, %29 : vector<5x128xf32>
    %31 = vector.broadcast %10 : vector<1x128xf32> to vector<5x128xf32>
    %32 = arith.addf %30, %31 : vector<5x128xf32>
    %33 = arith.truncf %32 : vector<5x128xf32> to vector<5x128xbf16>
    %c0_17 = arith.constant 0 : index
    %c0_18 = arith.constant 0 : index
    %c0_19 = arith.constant 0 : index
    %34 = vector.load %arg6[%c0_17, %c0_18, %c0_19] : memref<2x128x384xbf16, #tpu.memory_space<vmem>>, vector<1x128x384xbf16>
    %35 = vector.shape_cast %34 : vector<1x128x384xbf16> to vector<128x384xbf16>
    %cst_20 = arith.constant dense<0.000000e+00> : vector<5x384xf32>
    %36 = tpu.matmul %33, %35, %cst_20 {dimension_numbers = #tpu.dot_dimension_numbers<[1], [0], [0], [1], [0, 0, 1, 1], [], []>} : vector<5x128xbf16>, vector<128x384xbf16>, vector<5x384xf32> -> vector<5x384xf32>
    %c0_21 = arith.constant 0 : index
    %c0_22 = arith.constant 0 : index
    %c0_23 = arith.constant 0 : index
    %37 = vector.load %arg7[%c0_21, %c0_22, %c0_23] : memref<2x1x384xf32, #tpu.memory_space<vmem>>, vector<1x1x384xf32>
    %38 = vector.shape_cast %37 : vector<1x1x384xf32> to vector<1x384xf32>
    %39 = vector.broadcast %38 : vector<1x384xf32> to vector<5x384xf32>
    %40 = arith.addf %36, %39 : vector<5x384xf32>
    %c0_24 = arith.constant 0 : index
    %c0_25 = arith.constant 0 : index
    %c0_26 = arith.constant 0 : index
    %41 = vector.load %arg8[%c0_24, %c0_25, %c0_26] : memref<2x128x128xbf16, #tpu.memory_space<vmem>>, vector<1x128x128xbf16>
    %42 = vector.shape_cast %41 : vector<1x128x128xbf16> to vector<128x128xbf16>
    %c0_27 = arith.constant 0 : index
    %c0_28 = arith.constant 0 : index
    %c0_29 = arith.constant 0 : index
    %43 = vector.load %arg9[%c0_27, %c0_28, %c0_29] : memref<2x1x128xf32, #tpu.memory_space<vmem>>, vector<1x1x128xf32>
    %44 = vector.shape_cast %43 : vector<1x1x128xf32> to vector<1x128xf32>
    %45 = vector.extract_strided_slice %40 {offsets = [0, 0], sizes = [5, 64], strides = [1, 1]} : vector<5x384xf32> to vector<5x64xf32>
    %46 = vector.extract_strided_slice %40 {offsets = [0, 128], sizes = [5, 64], strides = [1, 1]} : vector<5x384xf32> to vector<5x64xf32>
    %47 = vector.extract_strided_slice %40 {offsets = [0, 256], sizes = [5, 64], strides = [1, 1]} : vector<5x384xf32> to vector<5x64xf32>
    %48 = arith.truncf %45 : vector<5x64xf32> to vector<5x64xbf16>
    %49 = arith.truncf %46 : vector<5x64xf32> to vector<5x64xbf16>
    %cst_30 = arith.constant dense<0.000000e+00> : vector<5x5xf32>
    %50 = tpu.matmul %48, %49, %cst_30 {dimension_numbers = #tpu.dot_dimension_numbers<[1], [1], [0], [0], [0, 0, 1, 0], [], []>} : vector<5x64xbf16>, vector<5x64xbf16>, vector<5x5xf32> -> vector<5x5xf32>
    %cst_31 = arith.constant 1.250000e-01 : f32
    %51 = vector.broadcast %cst_31 : f32 to vector<5x5xf32>
    %52 = arith.mulf %50, %51 : vector<5x5xf32>
    %cst_32 = arith.constant dense<0xFF800000> : vector<5xf32>
    %53 = vector.multi_reduction <maximumf>, %52, %cst_32 [1] : vector<5x5xf32> to vector<5xf32>
    %54 = vector.shape_cast %53 : vector<5xf32> to vector<5x1xf32>
    %55 = vector.broadcast %54 : vector<5x1xf32> to vector<5x5xf32>
    %56 = arith.subf %52, %55 : vector<5x5xf32>
    %57 = math.exp %56 : vector<5x5xf32>
    %cst_33 = arith.constant dense<0.000000e+00> : vector<5xf32>
    %58 = vector.multi_reduction <add>, %57, %cst_33 [1] : vector<5x5xf32> to vector<5xf32>
    %59 = vector.shape_cast %58 : vector<5xf32> to vector<5x1xf32>
    %60 = tpu.reciprocal %59 {approx = true} : vector<5x1xf32> -> vector<5x1xf32>
    %61 = vector.broadcast %60 : vector<5x1xf32> to vector<5x5xf32>
    %62 = arith.mulf %57, %61 : vector<5x5xf32>
    %63 = arith.truncf %62 : vector<5x5xf32> to vector<5x5xbf16>
    %64 = arith.truncf %47 : vector<5x64xf32> to vector<5x64xbf16>
    %cst_34 = arith.constant dense<0.000000e+00> : vector<5x64xf32>
    %65 = tpu.matmul %63, %64, %cst_34 {dimension_numbers = #tpu.dot_dimension_numbers<[1], [0], [0], [1], [0, 0, 1, 1], [], []>} : vector<5x5xbf16>, vector<5x64xbf16>, vector<5x64xf32> -> vector<5x64xf32>
    %66 = arith.truncf %65 : vector<5x64xf32> to vector<5x64xbf16>
    %67 = vector.extract_strided_slice %42 {offsets = [0, 0], sizes = [64, 128], strides = [1, 1]} : vector<128x128xbf16> to vector<64x128xbf16>
    %cst_35 = arith.constant dense<0.000000e+00> : vector<5x128xf32>
    %68 = tpu.matmul %66, %67, %cst_35 {dimension_numbers = #tpu.dot_dimension_numbers<[1], [0], [0], [1], [0, 0, 1, 1], [], []>} : vector<5x64xbf16>, vector<64x128xbf16>, vector<5x128xf32> -> vector<5x128xf32>
    %69 = vector.broadcast %44 : vector<1x128xf32> to vector<5x128xf32>
    %70 = arith.addf %69, %68 : vector<5x128xf32>
    %71 = vector.extract_strided_slice %40 {offsets = [0, 64], sizes = [5, 64], strides = [1, 1]} : vector<5x384xf32> to vector<5x64xf32>
    %72 = vector.extract_strided_slice %40 {offsets = [0, 192], sizes = [5, 64], strides = [1, 1]} : vector<5x384xf32> to vector<5x64xf32>
    %73 = vector.extract_strided_slice %40 {offsets = [0, 320], sizes = [5, 64], strides = [1, 1]} : vector<5x384xf32> to vector<5x64xf32>
    %74 = arith.truncf %71 : vector<5x64xf32> to vector<5x64xbf16>
    %75 = arith.truncf %72 : vector<5x64xf32> to vector<5x64xbf16>
    %cst_36 = arith.constant dense<0.000000e+00> : vector<5x5xf32>
    %76 = tpu.matmul %74, %75, %cst_36 {dimension_numbers = #tpu.dot_dimension_numbers<[1], [1], [0], [0], [0, 0, 1, 0], [], []>} : vector<5x64xbf16>, vector<5x64xbf16>, vector<5x5xf32> -> vector<5x5xf32>
    %cst_37 = arith.constant 1.250000e-01 : f32
    %77 = vector.broadcast %cst_37 : f32 to vector<5x5xf32>
    %78 = arith.mulf %76, %77 : vector<5x5xf32>
    %cst_38 = arith.constant dense<0xFF800000> : vector<5xf32>
    %79 = vector.multi_reduction <maximumf>, %78, %cst_38 [1] : vector<5x5xf32> to vector<5xf32>
    %80 = vector.shape_cast %79 : vector<5xf32> to vector<5x1xf32>
    %81 = vector.broadcast %80 : vector<5x1xf32> to vector<5x5xf32>
    %82 = arith.subf %78, %81 : vector<5x5xf32>
    %83 = math.exp %82 : vector<5x5xf32>
    %cst_39 = arith.constant dense<0.000000e+00> : vector<5xf32>
    %84 = vector.multi_reduction <add>, %83, %cst_39 [1] : vector<5x5xf32> to vector<5xf32>
    %85 = vector.shape_cast %84 : vector<5xf32> to vector<5x1xf32>
    %86 = tpu.reciprocal %85 {approx = true} : vector<5x1xf32> -> vector<5x1xf32>
    %87 = vector.broadcast %86 : vector<5x1xf32> to vector<5x5xf32>
    %88 = arith.mulf %83, %87 : vector<5x5xf32>
    %89 = arith.truncf %88 : vector<5x5xf32> to vector<5x5xbf16>
    %90 = arith.truncf %73 : vector<5x64xf32> to vector<5x64xbf16>
    %cst_40 = arith.constant dense<0.000000e+00> : vector<5x64xf32>
    %91 = tpu.matmul %89, %90, %cst_40 {dimension_numbers = #tpu.dot_dimension_numbers<[1], [0], [0], [1], [0, 0, 1, 1], [], []>} : vector<5x5xbf16>, vector<5x64xbf16>, vector<5x64xf32> -> vector<5x64xf32>
    %92 = arith.truncf %91 : vector<5x64xf32> to vector<5x64xbf16>
    %93 = vector.extract_strided_slice %42 {offsets = [64, 0], sizes = [64, 128], strides = [1, 1]} : vector<128x128xbf16> to vector<64x128xbf16>
    %cst_41 = arith.constant dense<0.000000e+00> : vector<5x128xf32>
    %94 = tpu.matmul %92, %93, %cst_41 {dimension_numbers = #tpu.dot_dimension_numbers<[1], [0], [0], [1], [0, 0, 1, 1], [], []>} : vector<5x64xbf16>, vector<64x128xbf16>, vector<5x128xf32> -> vector<5x128xf32>
    %95 = arith.addf %70, %94 : vector<5x128xf32>
    %96 = arith.addf %6, %95 : vector<5x128xf32>
    %c0_42 = arith.constant 0 : index
    %c0_43 = arith.constant 0 : index
    %c0_44 = arith.constant 0 : index
    %97 = vector.load %arg10[%c0_42, %c0_43, %c0_44] : memref<2x1x128xf32, #tpu.memory_space<vmem>>, vector<1x1x128xf32>
    %98 = vector.shape_cast %97 : vector<1x1x128xf32> to vector<1x128xf32>
    %c0_45 = arith.constant 0 : index
    %c0_46 = arith.constant 0 : index
    %c0_47 = arith.constant 0 : index
    %99 = vector.load %arg11[%c0_45, %c0_46, %c0_47] : memref<2x1x128xf32, #tpu.memory_space<vmem>>, vector<1x1x128xf32>
    %100 = vector.shape_cast %99 : vector<1x1x128xf32> to vector<1x128xf32>
    %cst_48 = arith.constant dense<0.000000e+00> : vector<5xf32>
    %101 = vector.multi_reduction <add>, %96, %cst_48 [1] : vector<5x128xf32> to vector<5xf32>
    %102 = vector.shape_cast %101 : vector<5xf32> to vector<5x1xf32>
    %cst_49 = arith.constant 1.280000e+02 : f32
    %103 = vector.broadcast %cst_49 : f32 to vector<5x1xf32>
    %104 = arith.divf %102, %103 : vector<5x1xf32>
    %105 = vector.broadcast %104 : vector<5x1xf32> to vector<5x128xf32>
    %106 = arith.subf %96, %105 : vector<5x128xf32>
    %107 = arith.mulf %106, %106 : vector<5x128xf32>
    %cst_50 = arith.constant dense<0.000000e+00> : vector<5xf32>
    %108 = vector.multi_reduction <add>, %107, %cst_50 [1] : vector<5x128xf32> to vector<5xf32>
    %109 = vector.shape_cast %108 : vector<5xf32> to vector<5x1xf32>
    %cst_51 = arith.constant 1.280000e+02 : f32
    %110 = vector.broadcast %cst_51 : f32 to vector<5x1xf32>
    %111 = arith.divf %109, %110 : vector<5x1xf32>
    %112 = vector.broadcast %104 : vector<5x1xf32> to vector<5x128xf32>
    %113 = arith.subf %96, %112 : vector<5x128xf32>
    %cst_52 = arith.constant 9.99999974E-6 : f32
    %114 = vector.broadcast %cst_52 : f32 to vector<5x1xf32>
    %115 = arith.addf %111, %114 : vector<5x1xf32>
    %116 = math.rsqrt %115 : vector<5x1xf32>
    %117 = vector.broadcast %116 : vector<5x1xf32> to vector<5x128xf32>
    %118 = arith.mulf %113, %117 : vector<5x128xf32>
    %119 = vector.broadcast %98 : vector<1x128xf32> to vector<5x128xf32>
    %120 = arith.mulf %118, %119 : vector<5x128xf32>
    %121 = vector.broadcast %100 : vector<1x128xf32> to vector<5x128xf32>
    %122 = arith.addf %120, %121 : vector<5x128xf32>
    %123 = arith.truncf %122 : vector<5x128xf32> to vector<5x128xbf16>
    %c0_53 = arith.constant 0 : index
    %c0_54 = arith.constant 0 : index
    %c0_55 = arith.constant 0 : index
    %124 = vector.load %arg12[%c0_53, %c0_54, %c0_55] : memref<2x128x512xbf16, #tpu.memory_space<vmem>>, vector<1x128x512xbf16>
    %125 = vector.shape_cast %124 : vector<1x128x512xbf16> to vector<128x512xbf16>
    %cst_56 = arith.constant dense<0.000000e+00> : vector<5x512xf32>
    %126 = tpu.matmul %123, %125, %cst_56 {dimension_numbers = #tpu.dot_dimension_numbers<[1], [0], [0], [1], [0, 0, 1, 1], [], []>} : vector<5x128xbf16>, vector<128x512xbf16>, vector<5x512xf32> -> vector<5x512xf32>
    %c0_57 = arith.constant 0 : index
    %c0_58 = arith.constant 0 : index
    %c0_59 = arith.constant 0 : index
    %127 = vector.load %arg13[%c0_57, %c0_58, %c0_59] : memref<2x1x512xf32, #tpu.memory_space<vmem>>, vector<1x1x512xf32>
    %128 = vector.shape_cast %127 : vector<1x1x512xf32> to vector<1x512xf32>
    %129 = vector.broadcast %128 : vector<1x512xf32> to vector<5x512xf32>
    %130 = arith.addf %126, %129 : vector<5x512xf32>
    %131 = arith.mulf %130, %130 : vector<5x512xf32>
    %132 = arith.mulf %130, %131 : vector<5x512xf32>
    %cst_60 = arith.constant 4.471500e-02 : f32
    %133 = vector.broadcast %cst_60 : f32 to vector<5x512xf32>
    %134 = arith.mulf %133, %132 : vector<5x512xf32>
    %135 = arith.addf %130, %134 : vector<5x512xf32>
    %cst_61 = arith.constant 0.797884583 : f32
    %136 = vector.broadcast %cst_61 : f32 to vector<5x512xf32>
    %137 = arith.mulf %136, %135 : vector<5x512xf32>
    %138 = math.tanh %137 : vector<5x512xf32>
    %cst_62 = arith.constant 1.000000e+00 : f32
    %139 = vector.broadcast %cst_62 : f32 to vector<5x512xf32>
    %140 = arith.addf %139, %138 : vector<5x512xf32>
    %cst_63 = arith.constant 5.000000e-01 : f32
    %141 = vector.broadcast %cst_63 : f32 to vector<5x512xf32>
    %142 = arith.mulf %141, %140 : vector<5x512xf32>
    %143 = arith.mulf %130, %142 : vector<5x512xf32>
    %144 = arith.truncf %143 : vector<5x512xf32> to vector<5x512xbf16>
    %c0_64 = arith.constant 0 : index
    %c0_65 = arith.constant 0 : index
    %c0_66 = arith.constant 0 : index
    %145 = vector.load %arg14[%c0_64, %c0_65, %c0_66] : memref<2x512x128xbf16, #tpu.memory_space<vmem>>, vector<1x512x128xbf16>
    %146 = vector.shape_cast %145 : vector<1x512x128xbf16> to vector<512x128xbf16>
    %cst_67 = arith.constant dense<0.000000e+00> : vector<5x128xf32>
    %147 = tpu.matmul %144, %146, %cst_67 {dimension_numbers = #tpu.dot_dimension_numbers<[1], [0], [0], [1], [0, 0, 1, 1], [], []>} : vector<5x512xbf16>, vector<512x128xbf16>, vector<5x128xf32> -> vector<5x128xf32>
    %148 = arith.addf %96, %147 : vector<5x128xf32>
    %c0_68 = arith.constant 0 : index
    %c0_69 = arith.constant 0 : index
    %c0_70 = arith.constant 0 : index
    %149 = vector.load %arg15[%c0_68, %c0_69, %c0_70] : memref<2x1x128xf32, #tpu.memory_space<vmem>>, vector<1x1x128xf32>
    %150 = vector.shape_cast %149 : vector<1x1x128xf32> to vector<1x128xf32>
    %151 = vector.broadcast %150 : vector<1x128xf32> to vector<5x128xf32>
    %152 = arith.addf %148, %151 : vector<5x128xf32>
    %c1 = arith.constant 1 : index
    %c0_71 = arith.constant 0 : index
    %c0_72 = arith.constant 0 : index
    %153 = vector.load %arg4[%c1, %c0_71, %c0_72] : memref<2x1x128xf32, #tpu.memory_space<vmem>>, vector<1x1x128xf32>
    %154 = vector.shape_cast %153 : vector<1x1x128xf32> to vector<1x128xf32>
    %c1_73 = arith.constant 1 : index
    %c0_74 = arith.constant 0 : index
    %c0_75 = arith.constant 0 : index
    %155 = vector.load %arg5[%c1_73, %c0_74, %c0_75] : memref<2x1x128xf32, #tpu.memory_space<vmem>>, vector<1x1x128xf32>
    %156 = vector.shape_cast %155 : vector<1x1x128xf32> to vector<1x128xf32>
    %cst_76 = arith.constant dense<0.000000e+00> : vector<5xf32>
    %157 = vector.multi_reduction <add>, %152, %cst_76 [1] : vector<5x128xf32> to vector<5xf32>
    %158 = vector.shape_cast %157 : vector<5xf32> to vector<5x1xf32>
    %cst_77 = arith.constant 1.280000e+02 : f32
    %159 = vector.broadcast %cst_77 : f32 to vector<5x1xf32>
    %160 = arith.divf %158, %159 : vector<5x1xf32>
    %161 = vector.broadcast %160 : vector<5x1xf32> to vector<5x128xf32>
    %162 = arith.subf %152, %161 : vector<5x128xf32>
    %163 = arith.mulf %162, %162 : vector<5x128xf32>
    %cst_78 = arith.constant dense<0.000000e+00> : vector<5xf32>
    %164 = vector.multi_reduction <add>, %163, %cst_78 [1] : vector<5x128xf32> to vector<5xf32>
    %165 = vector.shape_cast %164 : vector<5xf32> to vector<5x1xf32>
    %cst_79 = arith.constant 1.280000e+02 : f32
    %166 = vector.broadcast %cst_79 : f32 to vector<5x1xf32>
    %167 = arith.divf %165, %166 : vector<5x1xf32>
    %168 = vector.broadcast %160 : vector<5x1xf32> to vector<5x128xf32>
    %169 = arith.subf %152, %168 : vector<5x128xf32>
    %cst_80 = arith.constant 9.99999974E-6 : f32
    %170 = vector.broadcast %cst_80 : f32 to vector<5x1xf32>
    %171 = arith.addf %167, %170 : vector<5x1xf32>
    %172 = math.rsqrt %171 : vector<5x1xf32>
    %173 = vector.broadcast %172 : vector<5x1xf32> to vector<5x128xf32>
    %174 = arith.mulf %169, %173 : vector<5x128xf32>
    %175 = vector.broadcast %154 : vector<1x128xf32> to vector<5x128xf32>
    %176 = arith.mulf %174, %175 : vector<5x128xf32>
    %177 = vector.broadcast %156 : vector<1x128xf32> to vector<5x128xf32>
    %178 = arith.addf %176, %177 : vector<5x128xf32>
    %179 = arith.truncf %178 : vector<5x128xf32> to vector<5x128xbf16>
    %c1_81 = arith.constant 1 : index
    %c0_82 = arith.constant 0 : index
    %c0_83 = arith.constant 0 : index
    %180 = vector.load %arg6[%c1_81, %c0_82, %c0_83] : memref<2x128x384xbf16, #tpu.memory_space<vmem>>, vector<1x128x384xbf16>
    %181 = vector.shape_cast %180 : vector<1x128x384xbf16> to vector<128x384xbf16>
    %cst_84 = arith.constant dense<0.000000e+00> : vector<5x384xf32>
    %182 = tpu.matmul %179, %181, %cst_84 {dimension_numbers = #tpu.dot_dimension_numbers<[1], [0], [0], [1], [0, 0, 1, 1], [], []>} : vector<5x128xbf16>, vector<128x384xbf16>, vector<5x384xf32> -> vector<5x384xf32>
    %c1_85 = arith.constant 1 : index
    %c0_86 = arith.constant 0 : index
    %c0_87 = arith.constant 0 : index
    %183 = vector.load %arg7[%c1_85, %c0_86, %c0_87] : memref<2x1x384xf32, #tpu.memory_space<vmem>>, vector<1x1x384xf32>
    %184 = vector.shape_cast %183 : vector<1x1x384xf32> to vector<1x384xf32>
    %185 = vector.broadcast %184 : vector<1x384xf32> to vector<5x384xf32>
    %186 = arith.addf %182, %185 : vector<5x384xf32>
    %c1_88 = arith.constant 1 : index
    %c0_89 = arith.constant 0 : index
    %c0_90 = arith.constant 0 : index
    %187 = vector.load %arg8[%c1_88, %c0_89, %c0_90] : memref<2x128x128xbf16, #tpu.memory_space<vmem>>, vector<1x128x128xbf16>
    %188 = vector.shape_cast %187 : vector<1x128x128xbf16> to vector<128x128xbf16>
    %c1_91 = arith.constant 1 : index
    %c0_92 = arith.constant 0 : index
    %c0_93 = arith.constant 0 : index
    %189 = vector.load %arg9[%c1_91, %c0_92, %c0_93] : memref<2x1x128xf32, #tpu.memory_space<vmem>>, vector<1x1x128xf32>
    %190 = vector.shape_cast %189 : vector<1x1x128xf32> to vector<1x128xf32>
    %191 = vector.extract_strided_slice %186 {offsets = [0, 0], sizes = [5, 64], strides = [1, 1]} : vector<5x384xf32> to vector<5x64xf32>
    %192 = vector.extract_strided_slice %186 {offsets = [0, 128], sizes = [5, 64], strides = [1, 1]} : vector<5x384xf32> to vector<5x64xf32>
    %193 = vector.extract_strided_slice %186 {offsets = [0, 256], sizes = [5, 64], strides = [1, 1]} : vector<5x384xf32> to vector<5x64xf32>
    %194 = arith.truncf %191 : vector<5x64xf32> to vector<5x64xbf16>
    %195 = arith.truncf %192 : vector<5x64xf32> to vector<5x64xbf16>
    %cst_94 = arith.constant dense<0.000000e+00> : vector<5x5xf32>
    %196 = tpu.matmul %194, %195, %cst_94 {dimension_numbers = #tpu.dot_dimension_numbers<[1], [1], [0], [0], [0, 0, 1, 0], [], []>} : vector<5x64xbf16>, vector<5x64xbf16>, vector<5x5xf32> -> vector<5x5xf32>
    %cst_95 = arith.constant 1.250000e-01 : f32
    %197 = vector.broadcast %cst_95 : f32 to vector<5x5xf32>
    %198 = arith.mulf %196, %197 : vector<5x5xf32>
    %cst_96 = arith.constant dense<0xFF800000> : vector<5xf32>
    %199 = vector.multi_reduction <maximumf>, %198, %cst_96 [1] : vector<5x5xf32> to vector<5xf32>
    %200 = vector.shape_cast %199 : vector<5xf32> to vector<5x1xf32>
    %201 = vector.broadcast %200 : vector<5x1xf32> to vector<5x5xf32>
    %202 = arith.subf %198, %201 : vector<5x5xf32>
    %203 = math.exp %202 : vector<5x5xf32>
    %cst_97 = arith.constant dense<0.000000e+00> : vector<5xf32>
    %204 = vector.multi_reduction <add>, %203, %cst_97 [1] : vector<5x5xf32> to vector<5xf32>
    %205 = vector.shape_cast %204 : vector<5xf32> to vector<5x1xf32>
    %206 = tpu.reciprocal %205 {approx = true} : vector<5x1xf32> -> vector<5x1xf32>
    %207 = vector.broadcast %206 : vector<5x1xf32> to vector<5x5xf32>
    %208 = arith.mulf %203, %207 : vector<5x5xf32>
    %209 = arith.truncf %208 : vector<5x5xf32> to vector<5x5xbf16>
    %210 = arith.truncf %193 : vector<5x64xf32> to vector<5x64xbf16>
    %cst_98 = arith.constant dense<0.000000e+00> : vector<5x64xf32>
    %211 = tpu.matmul %209, %210, %cst_98 {dimension_numbers = #tpu.dot_dimension_numbers<[1], [0], [0], [1], [0, 0, 1, 1], [], []>} : vector<5x5xbf16>, vector<5x64xbf16>, vector<5x64xf32> -> vector<5x64xf32>
    %212 = arith.truncf %211 : vector<5x64xf32> to vector<5x64xbf16>
    %213 = vector.extract_strided_slice %188 {offsets = [0, 0], sizes = [64, 128], strides = [1, 1]} : vector<128x128xbf16> to vector<64x128xbf16>
    %cst_99 = arith.constant dense<0.000000e+00> : vector<5x128xf32>
    %214 = tpu.matmul %212, %213, %cst_99 {dimension_numbers = #tpu.dot_dimension_numbers<[1], [0], [0], [1], [0, 0, 1, 1], [], []>} : vector<5x64xbf16>, vector<64x128xbf16>, vector<5x128xf32> -> vector<5x128xf32>
    %215 = vector.broadcast %190 : vector<1x128xf32> to vector<5x128xf32>
    %216 = arith.addf %215, %214 : vector<5x128xf32>
    %217 = vector.extract_strided_slice %186 {offsets = [0, 64], sizes = [5, 64], strides = [1, 1]} : vector<5x384xf32> to vector<5x64xf32>
    %218 = vector.extract_strided_slice %186 {offsets = [0, 192], sizes = [5, 64], strides = [1, 1]} : vector<5x384xf32> to vector<5x64xf32>
    %219 = vector.extract_strided_slice %186 {offsets = [0, 320], sizes = [5, 64], strides = [1, 1]} : vector<5x384xf32> to vector<5x64xf32>
    %220 = arith.truncf %217 : vector<5x64xf32> to vector<5x64xbf16>
    %221 = arith.truncf %218 : vector<5x64xf32> to vector<5x64xbf16>
    %cst_100 = arith.constant dense<0.000000e+00> : vector<5x5xf32>
    %222 = tpu.matmul %220, %221, %cst_100 {dimension_numbers = #tpu.dot_dimension_numbers<[1], [1], [0], [0], [0, 0, 1, 0], [], []>} : vector<5x64xbf16>, vector<5x64xbf16>, vector<5x5xf32> -> vector<5x5xf32>
    %cst_101 = arith.constant 1.250000e-01 : f32
    %223 = vector.broadcast %cst_101 : f32 to vector<5x5xf32>
    %224 = arith.mulf %222, %223 : vector<5x5xf32>
    %cst_102 = arith.constant dense<0xFF800000> : vector<5xf32>
    %225 = vector.multi_reduction <maximumf>, %224, %cst_102 [1] : vector<5x5xf32> to vector<5xf32>
    %226 = vector.shape_cast %225 : vector<5xf32> to vector<5x1xf32>
    %227 = vector.broadcast %226 : vector<5x1xf32> to vector<5x5xf32>
    %228 = arith.subf %224, %227 : vector<5x5xf32>
    %229 = math.exp %228 : vector<5x5xf32>
    %cst_103 = arith.constant dense<0.000000e+00> : vector<5xf32>
    %230 = vector.multi_reduction <add>, %229, %cst_103 [1] : vector<5x5xf32> to vector<5xf32>
    %231 = vector.shape_cast %230 : vector<5xf32> to vector<5x1xf32>
    %232 = tpu.reciprocal %231 {approx = true} : vector<5x1xf32> -> vector<5x1xf32>
    %233 = vector.broadcast %232 : vector<5x1xf32> to vector<5x5xf32>
    %234 = arith.mulf %229, %233 : vector<5x5xf32>
    %235 = arith.truncf %234 : vector<5x5xf32> to vector<5x5xbf16>
    %236 = arith.truncf %219 : vector<5x64xf32> to vector<5x64xbf16>
    %cst_104 = arith.constant dense<0.000000e+00> : vector<5x64xf32>
    %237 = tpu.matmul %235, %236, %cst_104 {dimension_numbers = #tpu.dot_dimension_numbers<[1], [0], [0], [1], [0, 0, 1, 1], [], []>} : vector<5x5xbf16>, vector<5x64xbf16>, vector<5x64xf32> -> vector<5x64xf32>
    %238 = arith.truncf %237 : vector<5x64xf32> to vector<5x64xbf16>
    %239 = vector.extract_strided_slice %188 {offsets = [64, 0], sizes = [64, 128], strides = [1, 1]} : vector<128x128xbf16> to vector<64x128xbf16>
    %cst_105 = arith.constant dense<0.000000e+00> : vector<5x128xf32>
    %240 = tpu.matmul %238, %239, %cst_105 {dimension_numbers = #tpu.dot_dimension_numbers<[1], [0], [0], [1], [0, 0, 1, 1], [], []>} : vector<5x64xbf16>, vector<64x128xbf16>, vector<5x128xf32> -> vector<5x128xf32>
    %241 = arith.addf %216, %240 : vector<5x128xf32>
    %242 = arith.addf %152, %241 : vector<5x128xf32>
    %c1_106 = arith.constant 1 : index
    %c0_107 = arith.constant 0 : index
    %c0_108 = arith.constant 0 : index
    %243 = vector.load %arg10[%c1_106, %c0_107, %c0_108] : memref<2x1x128xf32, #tpu.memory_space<vmem>>, vector<1x1x128xf32>
    %244 = vector.shape_cast %243 : vector<1x1x128xf32> to vector<1x128xf32>
    %c1_109 = arith.constant 1 : index
    %c0_110 = arith.constant 0 : index
    %c0_111 = arith.constant 0 : index
    %245 = vector.load %arg11[%c1_109, %c0_110, %c0_111] : memref<2x1x128xf32, #tpu.memory_space<vmem>>, vector<1x1x128xf32>
    %246 = vector.shape_cast %245 : vector<1x1x128xf32> to vector<1x128xf32>
    %cst_112 = arith.constant dense<0.000000e+00> : vector<5xf32>
    %247 = vector.multi_reduction <add>, %242, %cst_112 [1] : vector<5x128xf32> to vector<5xf32>
    %248 = vector.shape_cast %247 : vector<5xf32> to vector<5x1xf32>
    %cst_113 = arith.constant 1.280000e+02 : f32
    %249 = vector.broadcast %cst_113 : f32 to vector<5x1xf32>
    %250 = arith.divf %248, %249 : vector<5x1xf32>
    %251 = vector.broadcast %250 : vector<5x1xf32> to vector<5x128xf32>
    %252 = arith.subf %242, %251 : vector<5x128xf32>
    %253 = arith.mulf %252, %252 : vector<5x128xf32>
    %cst_114 = arith.constant dense<0.000000e+00> : vector<5xf32>
    %254 = vector.multi_reduction <add>, %253, %cst_114 [1] : vector<5x128xf32> to vector<5xf32>
    %255 = vector.shape_cast %254 : vector<5xf32> to vector<5x1xf32>
    %cst_115 = arith.constant 1.280000e+02 : f32
    %256 = vector.broadcast %cst_115 : f32 to vector<5x1xf32>
    %257 = arith.divf %255, %256 : vector<5x1xf32>
    %258 = vector.broadcast %250 : vector<5x1xf32> to vector<5x128xf32>
    %259 = arith.subf %242, %258 : vector<5x128xf32>
    %cst_116 = arith.constant 9.99999974E-6 : f32
    %260 = vector.broadcast %cst_116 : f32 to vector<5x1xf32>
    %261 = arith.addf %257, %260 : vector<5x1xf32>
    %262 = math.rsqrt %261 : vector<5x1xf32>
    %263 = vector.broadcast %262 : vector<5x1xf32> to vector<5x128xf32>
    %264 = arith.mulf %259, %263 : vector<5x128xf32>
    %265 = vector.broadcast %244 : vector<1x128xf32> to vector<5x128xf32>
    %266 = arith.mulf %264, %265 : vector<5x128xf32>
    %267 = vector.broadcast %246 : vector<1x128xf32> to vector<5x128xf32>
    %268 = arith.addf %266, %267 : vector<5x128xf32>
    %269 = arith.truncf %268 : vector<5x128xf32> to vector<5x128xbf16>
    %c1_117 = arith.constant 1 : index
    %c0_118 = arith.constant 0 : index
    %c0_119 = arith.constant 0 : index
    %270 = vector.load %arg12[%c1_117, %c0_118, %c0_119] : memref<2x128x512xbf16, #tpu.memory_space<vmem>>, vector<1x128x512xbf16>
    %271 = vector.shape_cast %270 : vector<1x128x512xbf16> to vector<128x512xbf16>
    %cst_120 = arith.constant dense<0.000000e+00> : vector<5x512xf32>
    %272 = tpu.matmul %269, %271, %cst_120 {dimension_numbers = #tpu.dot_dimension_numbers<[1], [0], [0], [1], [0, 0, 1, 1], [], []>} : vector<5x128xbf16>, vector<128x512xbf16>, vector<5x512xf32> -> vector<5x512xf32>
    %c1_121 = arith.constant 1 : index
    %c0_122 = arith.constant 0 : index
    %c0_123 = arith.constant 0 : index
    %273 = vector.load %arg13[%c1_121, %c0_122, %c0_123] : memref<2x1x512xf32, #tpu.memory_space<vmem>>, vector<1x1x512xf32>
    %274 = vector.shape_cast %273 : vector<1x1x512xf32> to vector<1x512xf32>
    %275 = vector.broadcast %274 : vector<1x512xf32> to vector<5x512xf32>
    %276 = arith.addf %272, %275 : vector<5x512xf32>
    %277 = arith.mulf %276, %276 : vector<5x512xf32>
    %278 = arith.mulf %276, %277 : vector<5x512xf32>
    %cst_124 = arith.constant 4.471500e-02 : f32
    %279 = vector.broadcast %cst_124 : f32 to vector<5x512xf32>
    %280 = arith.mulf %279, %278 : vector<5x512xf32>
    %281 = arith.addf %276, %280 : vector<5x512xf32>
    %cst_125 = arith.constant 0.797884583 : f32
    %282 = vector.broadcast %cst_125 : f32 to vector<5x512xf32>
    %283 = arith.mulf %282, %281 : vector<5x512xf32>
    %284 = math.tanh %283 : vector<5x512xf32>
    %cst_126 = arith.constant 1.000000e+00 : f32
    %285 = vector.broadcast %cst_126 : f32 to vector<5x512xf32>
    %286 = arith.addf %285, %284 : vector<5x512xf32>
    %cst_127 = arith.constant 5.000000e-01 : f32
    %287 = vector.broadcast %cst_127 : f32 to vector<5x512xf32>
    %288 = arith.mulf %287, %286 : vector<5x512xf32>
    %289 = arith.mulf %276, %288 : vector<5x512xf32>
    %290 = arith.truncf %289 : vector<5x512xf32> to vector<5x512xbf16>
    %c1_128 = arith.constant 1 : index
    %c0_129 = arith.constant 0 : index
    %c0_130 = arith.constant 0 : index
    %291 = vector.load %arg14[%c1_128, %c0_129, %c0_130] : memref<2x512x128xbf16, #tpu.memory_space<vmem>>, vector<1x512x128xbf16>
    %292 = vector.shape_cast %291 : vector<1x512x128xbf16> to vector<512x128xbf16>
    %cst_131 = arith.constant dense<0.000000e+00> : vector<5x128xf32>
    %293 = tpu.matmul %290, %292, %cst_131 {dimension_numbers = #tpu.dot_dimension_numbers<[1], [0], [0], [1], [0, 0, 1, 1], [], []>} : vector<5x512xbf16>, vector<512x128xbf16>, vector<5x128xf32> -> vector<5x128xf32>
    %294 = arith.addf %242, %293 : vector<5x128xf32>
    %c1_132 = arith.constant 1 : index
    %c0_133 = arith.constant 0 : index
    %c0_134 = arith.constant 0 : index
    %295 = vector.load %arg15[%c1_132, %c0_133, %c0_134] : memref<2x1x128xf32, #tpu.memory_space<vmem>>, vector<1x1x128xf32>
    %296 = vector.shape_cast %295 : vector<1x1x128xf32> to vector<1x128xf32>
    %297 = vector.broadcast %296 : vector<1x128xf32> to vector<5x128xf32>
    %298 = arith.addf %294, %297 : vector<5x128xf32>
    %c0_135 = arith.constant 0 : index
    %c0_136 = arith.constant 0 : index
    %299 = vector.load %arg16[%c0_135, %c0_136] : memref<1x128xf32, #tpu.memory_space<vmem>>, vector<1x128xf32>
    %c0_137 = arith.constant 0 : index
    %c0_138 = arith.constant 0 : index
    %300 = vector.load %arg17[%c0_137, %c0_138] : memref<1x128xf32, #tpu.memory_space<vmem>>, vector<1x128xf32>
    %cst_139 = arith.constant dense<0.000000e+00> : vector<5xf32>
    %301 = vector.multi_reduction <add>, %298, %cst_139 [1] : vector<5x128xf32> to vector<5xf32>
    %302 = vector.shape_cast %301 : vector<5xf32> to vector<5x1xf32>
    %cst_140 = arith.constant 1.280000e+02 : f32
    %303 = vector.broadcast %cst_140 : f32 to vector<5x1xf32>
    %304 = arith.divf %302, %303 : vector<5x1xf32>
    %305 = vector.broadcast %304 : vector<5x1xf32> to vector<5x128xf32>
    %306 = arith.subf %298, %305 : vector<5x128xf32>
    %307 = arith.mulf %306, %306 : vector<5x128xf32>
    %cst_141 = arith.constant dense<0.000000e+00> : vector<5xf32>
    %308 = vector.multi_reduction <add>, %307, %cst_141 [1] : vector<5x128xf32> to vector<5xf32>
    %309 = vector.shape_cast %308 : vector<5xf32> to vector<5x1xf32>
    %cst_142 = arith.constant 1.280000e+02 : f32
    %310 = vector.broadcast %cst_142 : f32 to vector<5x1xf32>
    %311 = arith.divf %309, %310 : vector<5x1xf32>
    %312 = vector.broadcast %304 : vector<5x1xf32> to vector<5x128xf32>
    %313 = arith.subf %298, %312 : vector<5x128xf32>
    %cst_143 = arith.constant 9.99999974E-6 : f32
    %314 = vector.broadcast %cst_143 : f32 to vector<5x1xf32>
    %315 = arith.addf %311, %314 : vector<5x1xf32>
    %316 = math.rsqrt %315 : vector<5x1xf32>
    %317 = vector.broadcast %316 : vector<5x1xf32> to vector<5x128xf32>
    %318 = arith.mulf %313, %317 : vector<5x128xf32>
    %319 = vector.broadcast %299 : vector<1x128xf32> to vector<5x128xf32>
    %320 = arith.mulf %318, %319 : vector<5x128xf32>
    %321 = vector.broadcast %300 : vector<1x128xf32> to vector<5x128xf32>
    %322 = arith.addf %320, %321 : vector<5x128xf32>
    %323 = vector.extract_strided_slice %322 {offsets = [0, 0], sizes = [1, 128], strides = [1, 1]} : vector<5x128xf32> to vector<1x128xf32>
    %324 = arith.truncf %323 : vector<1x128xf32> to vector<1x128xbf16>
    %c0_144 = arith.constant 0 : index
    %c0_145 = arith.constant 0 : index
    %325 = vector.load %arg18[%c0_144, %c0_145] : memref<128x512xbf16, #tpu.memory_space<vmem>>, vector<128x512xbf16>
    %cst_146 = arith.constant dense<0.000000e+00> : vector<1x512xf32>
    %326 = tpu.matmul %324, %325, %cst_146 {dimension_numbers = #tpu.dot_dimension_numbers<[1], [0], [0], [1], [0, 0, 1, 1], [], []>} : vector<1x128xbf16>, vector<128x512xbf16>, vector<1x512xf32> -> vector<1x512xf32>
    %c0_147 = arith.constant 0 : index
    %c0_148 = arith.constant 0 : index
    %327 = vector.load %arg19[%c0_147, %c0_148] : memref<1x512xf32, #tpu.memory_space<vmem>>, vector<1x512xf32>
    %328 = arith.addf %326, %327 : vector<1x512xf32>
    %329 = arith.mulf %328, %328 : vector<1x512xf32>
    %cst_149 = arith.constant dense<0.000000e+00> : vector<1xf32>
    %330 = vector.multi_reduction <add>, %329, %cst_149 [1] : vector<1x512xf32> to vector<1xf32>
    %331 = vector.shape_cast %330 : vector<1xf32> to vector<1x1xf32>
    %cst_150 = arith.constant 1.000000e-24 : f32
    %332 = vector.broadcast %cst_150 : f32 to vector<1x1xf32>
    %333 = arith.maximumf %331, %332 : vector<1x1xf32>
    %334 = math.rsqrt %333 : vector<1x1xf32>
    %335 = vector.broadcast %334 : vector<1x1xf32> to vector<1x512xf32>
    %336 = arith.mulf %328, %335 : vector<1x512xf32>
    %c0_151 = arith.constant 0 : index
    %c0_152 = arith.constant 0 : index
    %c0_153 = arith.constant 0 : index
    %337 = vector.load %arg20[%c0_151, %c0_152, %c0_153] : memref<1x1x512xf32, #tpu.memory_space<vmem>>, vector<1x1x512xf32>
    %338 = vector.shape_cast %337 : vector<1x1x512xf32> to vector<1x512xf32>
    %339 = vector.shape_cast %336 : vector<1x512xf32> to vector<1x1x512xf32>
    tpu.vector_store %arg20[%c0_151, %c0_152, %c0_153], %339 {strides = array<i32>} : memref<1x1x512xf32, #tpu.memory_space<vmem>>, vector<1x1x512xf32>,
    %340 = vector.extract_strided_slice %322 {offsets = [1, 0], sizes = [4, 128], strides = [1, 1]} : vector<5x128xf32> to vector<4x128xf32>
    %341 = arith.mulf %340, %340 : vector<4x128xf32>
    %cst_154 = arith.constant dense<0.000000e+00> : vector<4xf32>
    %342 = vector.multi_reduction <add>, %341, %cst_154 [1] : vector<4x128xf32> to vector<4xf32>
    %343 = vector.shape_cast %342 : vector<4xf32> to vector<4x1xf32>
    %cst_155 = arith.constant 1.000000e-24 : f32
    %344 = vector.broadcast %cst_155 : f32 to vector<4x1xf32>
    %345 = arith.maximumf %343, %344 : vector<4x1xf32>
    %346 = math.rsqrt %345 : vector<4x1xf32>
    %347 = vector.broadcast %346 : vector<4x1xf32> to vector<4x128xf32>
    %348 = arith.mulf %340, %347 : vector<4x128xf32>
    %c0_156 = arith.constant 0 : index
    %c0_157 = arith.constant 0 : index
    %c0_158 = arith.constant 0 : index
    %349 = vector.load %arg21[%c0_156, %c0_157, %c0_158] : memref<1x4x128xf32, #tpu.memory_space<vmem>>, vector<1x4x128xf32>
    %350 = vector.shape_cast %349 : vector<1x4x128xf32> to vector<4x128xf32>
    %351 = vector.shape_cast %348 : vector<4x128xf32> to vector<1x4x128xf32>
    tpu.vector_store %arg21[%c0_156, %c0_157, %c0_158], %351 {strides = array<i32>} : memref<1x4x128xf32, #tpu.memory_space<vmem>>, vector<1x4x128xf32>,
    return
  }
  func.func @transform_0(%arg0: i32) -> (i32, i32, i32) {
    %c0_i32 = arith.constant 0 : i32
    %c0_i32_0 = arith.constant 0 : i32
    %c0_i32_1 = arith.constant 0 : i32
    return %arg0, %c0_i32, %c0_i32_0 : i32, i32, i32
  }
  func.func @transform_1(%arg0: i32) -> (i32, i32) {
    %c0_i32 = arith.constant 0 : i32
    %c0_i32_0 = arith.constant 0 : i32
    %c0_i32_1 = arith.constant 0 : i32
    return %c0_i32, %c0_i32_0 : i32, i32
  }
  func.func @transform_2(%arg0: i32) -> (i32, i32) {
    %c0_i32 = arith.constant 0 : i32
    %c0_i32_0 = arith.constant 0 : i32
    %c0_i32_1 = arith.constant 0 : i32
    return %c0_i32, %c0_i32_0 : i32, i32
  }
  func.func @transform_3(%arg0: i32) -> (i32, i32, i32) {
    %c0_i32 = arith.constant 0 : i32
    %c0_i32_0 = arith.constant 0 : i32
    %c0_i32_1 = arith.constant 0 : i32
    %c0_i32_2 = arith.constant 0 : i32
    return %c0_i32, %c0_i32_0, %c0_i32_1 : i32, i32, i32
  }
  func.func @transform_4(%arg0: i32) -> (i32, i32, i32) {
    %c0_i32 = arith.constant 0 : i32
    %c0_i32_0 = arith.constant 0 : i32
    %c0_i32_1 = arith.constant 0 : i32
    %c0_i32_2 = arith.constant 0 : i32
    return %c0_i32, %c0_i32_0, %c0_i32_1 : i32, i32, i32
  }
  func.func @transform_5(%arg0: i32) -> (i32, i32, i32) {
    %c0_i32 = arith.constant 0 : i32
    %c0_i32_0 = arith.constant 0 : i32
    %c0_i32_1 = arith.constant 0 : i32
    %c0_i32_2 = arith.constant 0 : i32
    return %c0_i32, %c0_i32_0, %c0_i32_1 : i32, i32, i32
  }
  func.func @transform_6(%arg0: i32) -> (i32, i32, i32) {
    %c0_i32 = arith.constant 0 : i32
    %c0_i32_0 = arith.constant 0 : i32
    %c0_i32_1 = arith.constant 0 : i32
    %c0_i32_2 = arith.constant 0 : i32
    return %c0_i32, %c0_i32_0, %c0_i32_1 : i32, i32, i32
  }
  func.func @transform_7(%arg0: i32) -> (i32, i32, i32) {
    %c0_i32 = arith.constant 0 : i32
    %c0_i32_0 = arith.constant 0 : i32
    %c0_i32_1 = arith.constant 0 : i32
    %c0_i32_2 = arith.constant 0 : i32
    return %c0_i32, %c0_i32_0, %c0_i32_1 : i32, i32, i32
  }
  func.func @transform_8(%arg0: i32) -> (i32, i32, i32) {
    %c0_i32 = arith.constant 0 : i32
    %c0_i32_0 = arith.constant 0 : i32
    %c0_i32_1 = arith.constant 0 : i32
    %c0_i32_2 = arith.constant 0 : i32
    return %c0_i32, %c0_i32_0, %c0_i32_1 : i32, i32, i32
  }
  func.func @transform_9(%arg0: i32) -> (i32, i32, i32) {
    %c0_i32 = arith.constant 0 : i32
    %c0_i32_0 = arith.constant 0 : i32
    %c0_i32_1 = arith.constant 0 : i32
    %c0_i32_2 = arith.constant 0 : i32
    return %c0_i32, %c0_i32_0, %c0_i32_1 : i32, i32, i32
  }
  func.func @transform_10(%arg0: i32) -> (i32, i32, i32) {
    %c0_i32 = arith.constant 0 : i32
    %c0_i32_0 = arith.constant 0 : i32
    %c0_i32_1 = arith.constant 0 : i32
    %c0_i32_2 = arith.constant 0 : i32
    return %c0_i32, %c0_i32_0, %c0_i32_1 : i32, i32, i32
  }
  func.func @transform_11(%arg0: i32) -> (i32, i32, i32) {
    %c0_i32 = arith.constant 0 : i32
    %c0_i32_0 = arith.constant 0 : i32
    %c0_i32_1 = arith.constant 0 : i32
    %c0_i32_2 = arith.constant 0 : i32
    return %c0_i32, %c0_i32_0, %c0_i32_1 : i32, i32, i32
  }
  func.func @transform_12(%arg0: i32) -> (i32, i32, i32) {
    %c0_i32 = arith.constant 0 : i32
    %c0_i32_0 = arith.constant 0 : i32
    %c0_i32_1 = arith.constant 0 : i32
    %c0_i32_2 = arith.constant 0 : i32
    return %c0_i32, %c0_i32_0, %c0_i32_1 : i32, i32, i32
  }
  func.func @transform_13(%arg0: i32) -> (i32, i32, i32) {
    %c0_i32 = arith.constant 0 : i32
    %c0_i32_0 = arith.constant 0 : i32
    %c0_i32_1 = arith.constant 0 : i32
    %c0_i32_2 = arith.constant 0 : i32
    return %c0_i32, %c0_i32_0, %c0_i32_1 : i32, i32, i32
  }
  func.func @transform_14(%arg0: i32) -> (i32, i32, i32) {
    %c0_i32 = arith.constant 0 : i32
    %c0_i32_0 = arith.constant 0 : i32
    %c0_i32_1 = arith.constant 0 : i32
    %c0_i32_2 = arith.constant 0 : i32
    return %c0_i32, %c0_i32_0, %c0_i32_1 : i32, i32, i32
  }
  func.func @transform_15(%arg0: i32) -> (i32, i32) {
    %c0_i32 = arith.constant 0 : i32
    %c0_i32_0 = arith.constant 0 : i32
    %c0_i32_1 = arith.constant 0 : i32
    return %c0_i32, %c0_i32_0 : i32, i32
  }
  func.func @transform_16(%arg0: i32) -> (i32, i32) {
    %c0_i32 = arith.constant 0 : i32
    %c0_i32_0 = arith.constant 0 : i32
    %c0_i32_1 = arith.constant 0 : i32
    return %c0_i32, %c0_i32_0 : i32, i32
  }
  func.func @transform_17(%arg0: i32) -> (i32, i32) {
    %c0_i32 = arith.constant 0 : i32
    %c0_i32_0 = arith.constant 0 : i32
    %c0_i32_1 = arith.constant 0 : i32
    return %c0_i32, %c0_i32_0 : i32, i32
  }
  func.func @transform_18(%arg0: i32) -> (i32, i32) {
    %c0_i32 = arith.constant 0 : i32
    %c0_i32_0 = arith.constant 0 : i32
    %c0_i32_1 = arith.constant 0 : i32
    return %c0_i32, %c0_i32_0 : i32, i32
  }
  func.func @transform_19(%arg0: i32) -> (i32, i32, i32) {
    %c0_i32 = arith.constant 0 : i32
    %c0_i32_0 = arith.constant 0 : i32
    %c0_i32_1 = arith.constant 0 : i32
    return %arg0, %c0_i32, %c0_i32_0 : i32, i32, i32
  }
  func.func @transform_20(%arg0: i32) -> (i32, i32, i32) {
    %c0_i32 = arith.constant 0 : i32
    %c0_i32_0 = arith.constant 0 : i32
    %c0_i32_1 = arith.constant 0 : i32
    return %arg0, %c0_i32, %c0_i32_0 : i32, i32, i32
  }
}

</mosaic_0001>

<bundles_post_ra>
// kernel: conch_forward.1
= control target key start
LH: loop header
LB: loop body
LE: loop exit
PB: predicated region body
PF: predicated region fallthrough
CT: control target
= control target key end

     0   :  { %s7194_s0 = inlined_call_operand.vmem [shape: f32[2,5,768], index: 0, kind: input, shape index: {}]   ;;  %s7195_s1 = inlined_call_operand.vmem [shape: f32[5,128], index: 1, kind: input, shape index: {}]   ;;  %s7196_s2 = inlined_call_operand.vmem [shape: bf16[768,128], index: 2, kind: input, shape index: {}]   ;;  %s7197_s3 = inlined_call_operand.vmem [shape: f32[2,1,128], index: 3, kind: input, shape index: {}]   ;;  %s7198_s4 = inlined_call_operand.vmem [shape: f32[2,1,128], index: 4, kind: input, shape index: {}]   ;;  %s7199_s5 = inlined_call_operand.vmem [shape: bf16[2,128,384], index: 5, kind: input, shape index: {}]   ;;  %s7200_s6 = inlined_call_operand.vmem [shape: f32[2,1,384], index: 6, kind: input, shape index: {}]   ;;  %s7201_s7 = inlined_call_operand.vmem [shape: bf16[2,128,128], index: 7, kind: input, shape index: {}]   ;;  %s7202_s8 = inlined_call_operand.vmem [shape: f32[2,1,128], index: 8, kind: input, shape index: {}]   ;;  %s7203_s9 = inlined_call_operand.vmem [shape: f32[2,1,128], index: 9, kind: input, shape index: {}]   ;;  %s7204_s10 = inlined_call_operand.hbm [shape: f32[2,1,128], index: 10, kind: input, shape index: {}]   ;;  %s7205_s11 = inlined_call_operand.vmem [shape: bf16[2,128,512], index: 11, kind: input, shape index: {}]   ;;  %s7206_s12 = inlined_call_operand.vmem [shape: f32[2,1,512], index: 12, kind: input, shape index: {}]   ;;  %s7207_s13 = inlined_call_operand.vmem [shape: bf16[2,512,128], index: 13, kind: input, shape index: {}]   ;;  %s7208_s14 = inlined_call_operand.vmem [shape: f32[2,1,128], index: 14, kind: input, shape index: {}]   ;;  %s7209_s15 = inlined_call_operand.vmem [shape: f32[1,128], index: 15, kind: input, shape index: {}]   ;;  %s7210_s16 = inlined_call_operand.vmem [shape: f32[1,128], index: 16, kind: input, shape index: {}]   ;;  %s7211_s17 = inlined_call_operand.hbm [shape: bf16[128,512], index: 17, kind: input, shape index: {}]   ;;  %s7212_s18 = inlined_call_operand.vmem [shape: f32[1,512], index: 18, kind: input, shape index: {}]   ;;  %s7213_s19 = inlined_call_operand.hbm [shape: f32[2,1,512], index: 19, kind: output, shape index: {0}]   ;;  %s7214_s20 = inlined_call_operand.hbm [shape: f32[2,4,128], index: 20, kind: output, shape index: {1}]  }
   0x1   :  { %7230 = sst [smem:[#allocation20_spill]] %s7194_s0 }
   0x2   :  { %7231 = sst [smem:[#allocation21_spill]] %s7195_s1 }
   0x3   :  { %7232 = sst [smem:[#allocation22_spill]] %s7196_s2 }
   0x4   :  { %7233 = sst [smem:[#allocation23_spill]] %s7197_s3 }
   0x5   :  { %7234 = sst [smem:[#allocation24_spill]] %s7198_s4 }
   0x6   :  { %7235 = sst [smem:[#allocation25_spill]] %s7199_s5 }
   0x7   :  { %7236 = sst [smem:[#allocation26_spill]] %s7204_s10 }
   0x8   :  { %7237 = sst [smem:[#allocation27_spill]] %s7211_s17 }
   0x9   :  { %26 = vsyncpa [#allocation3], 0 }
   0xa   :  { %27 = vsyncpa [#allocation6], 0 }
   0xb   :  { %28 = vsyncpa [#allocation4], 0 }
   0xc   :  { %30 = vsyncpa [#allocation4 + $0x1], 0 }
   0xd   :  { %31 = vsyncpa [#allocation9], 0 }
   0xe   :  { %33 = vsyncpa [#allocation9 + $0x1], 0  ;;  %s6048_s1 = smov 0   ;;  %s6050_s22 = smov 0  }
   0xf   :  { %s6052_s23 = smov 0   ;;  %s6054_s24 = smov 0  }
  0x10 LB: > { %7238 = sst [smem:[#allocation14_spill]] %s5916_s1  ;;  %s6069_s2 = sadd.s32 4294967295, %s5928_s24   ;;  %s5928_s24 = sphi %s6054_s24, %s7270_s24   ;;  %s5924_s23 = sphi %s6052_s23, %s7272_s23   ;;  %s5920_s22 = sphi %s6050_s22, %s7274_s22   ;;  %s5916_s1 = sphi %s6048_s1, %s7273_s1  }
  0x11   : > { %7239 = sst [smem:[#allocation15_spill]] %s5924_s23  ;;  %s4509_s25 = sadd.s32 4294967294, %s5928_s24  }
  0x12   : > { %7240 = sst [smem:[#allocation16_spill]] %s5928_s24  ;;  %s6073_s3 = sadd.s32 1, %s5928_s24  }
  0x13   : > { %7241 = sst [smem:[#allocation17_spill]] %s6073_s3  ;;  %s450_s26 = sadd.s32 1, %s5924_s23 }
  0x14   : > { %s447_s27 = ssub.s32 %s5928_s24, %s6073_s3  ;;  %p460_p0 = scmp.ne.s32.totalorder %s5924_s23, %s5920_s22 }
  0x15   : > { %p448_p1 = scmp.eq.s32.totalorder %s447_s27, 0  ;;  %p461_p2 = scmp.eq.s32.totalorder %s6069_s2, 1 }
  0x16   : > { %p466_p3 = scmp.ne.s32.totalorder %s5920_s22, %s5916_s1  ;;  %p467_p4 = scmp.eq.s32.totalorder %s4509_s25, 1 }
  0x17   : > { %s6084_s28 = scalar_select %p448_p1, %s5924_s23, %s450_s26  }
  0x18   : > { %p6086_p5 = por %p461_p2, %p460_p0  ;;  %p6090_p6 = por %p467_p4, %p466_p3 }
  0x19   : > { %7242 = sst [smem:[#allocation18_spill]] %s6084_s28  ;;  %p4510_p7 = scmp.ge.s32.totalorder %s5928_s24, 1 }
  0x1a   : > { %s7244_s29 = scalar_select %p6090_p6, 1, 0 }
  0x1b   : > { %p500_p8 = scmp.lt.s32.totalorder %s5928_s24, 3  ;;  %p7222_p9 = scmp.eq.s32.totalorder %s6069_s2, 0 }
  0x1c   : > { %7245 = sst [smem:[#allocation19_spill]] %s7244_s29  ;;  %s5930_s0 = smov [#allocation2]  }
  0x1d   : > { %p6097_p10 = pnand %p4510_p7, %p500_p8  ;;  %s539_s21 = sshll.u32 %s5930_s0, 4  ;;  %s540_s21 = int_to_ptr.vmem [resolvable:$true] %s539_s21 }
  0x1e   : > { %s5931_s26 = smov [#allocation5]   ;;  %s5789_s28 = scalar_lea.vmem %s540_s21, 32 }
  0x1f   : > { %p5334_p11 = pneg %p6097_p10  ;;  %s570_s27 = sshll.u32 %s5931_s26, 4  ;;  %s571_s27 = int_to_ptr.vmem [resolvable:$true] %s570_s27 }
  0x20   : > { %p5790_p0 = scmp.ne.s32.totalorder %s540_s21, %s5789_s28  ;;  %p5797_p3 = scmp.lt.s32.totalorder %s540_s21, %s540_s21 }
  0x21   : > { %p6105_p12 = pnand %p7222_p9, %p5334_p11  ;;  %p5798_p4 = scmp.lt.s32.totalorder %s5789_s28, %s5789_s28 }
  0x23   : > { %p5780_p13 = pneg %p6105_p12  ;;  %p5799_p7 = por %p5798_p4, %p5797_p3 }
  0x25   : > { %p5792_p1 = pnand %p5790_p0, %p5780_p13 }
  0x27   : > { %p5793_p2 = pneg %p5792_p1 }
  0x29   : > { %p5800_p8 = pnand %p5799_p7, %p5793_p2 }
  0x2b   : > { %5803 = shalt.err (!%p5800_p8)
}
  0x2c   : > { %s5932_s0 = smov 16   ;;  %s5933_s23 = smov 1  }
  0x2d   : > { %s7248_s10 = sld [smem:[#allocation26_spill]]  ;;  %s5815_s29 = scalar_lea.vmem %s571_s27, 4096 }
  0x2e   : > { %p5816_p11 = scmp.ne.s32.totalorder %s571_s27, %s5815_s29  ;;  %p5823_p9 = scmp.lt.s32.totalorder %s571_s27, %s571_s27 }
  0x2f   : > { %p5824_p6 = scmp.lt.s32.totalorder %s5815_s29, %s5815_s29 }
  0x30   : > { %p5818_p0 = pnand %p5816_p11, %p5780_p13 }
  0x31   : > { %p5825_p3 = por %p5824_p6, %p5823_p9 }
  0x32   : > { %p5819_p1 = pneg %p5818_p0 }
  0x33   : > { %5337 = dma.hbm_to_vmem [thread:$0]  (!%p6105_p12), %s7248_s10, 32, %s540_s21, [#allocation3], %s5932_s0, %s5932_s0, %s5933_s23  }
  0x34   : > { %p5826_p2 = pnand %p5825_p3, %p5819_p1 }
  0x36   : > { %5829 = shalt.err (!%p5826_p2)
}
  0x37   : > { %s5934_s28 = smov 256   ;;  %s7249_s17 = sld [smem:[#allocation27_spill]] }
  0x38   : > { %p7250_p4 = scmp.eq.s32.totalorder (!%p6097_p10), %s6069_s2, 0 }
  0x39   : > { %597 = sbr.rel (%p6097_p10) target bundleno = 6601 (0x19c9), region = 96 }
  0x3d   : > { %5340 = dma.hbm_to_vmem [thread:$0]  (!%p6105_p12), %s7249_s17, 4096, %s571_s27, [#allocation6], %s5934_s28, %s5934_s28, %s5932_s0  }
  0x3e   : > { %5899 = dma.done.wait (%p7250_p4), [#allocation3], 32   ;;  %p7251_p13 = pmov %p7250_p4 }
  0x3f   : > { %p7252_p6 = pmov %p7250_p4 }
  0x40   : > { %5901 = vsyncadd (%p7251_p13), [#allocation3], 4294967264 }
  0x41   : > { %5903 = dma.done.wait (%p7252_p6), [#allocation6], 4096   ;;  %p7253_p9 = pmov %p7250_p4 }
  0x42   : > { %s7254_s29 = sld [smem:[#allocation22_spill]]  ;;  %p664_p10 = scmp.lt.s32.totalorder %s6069_s2, 1  ;;  %vm1189_vm0 = vcmask 1044480   ;;  %vm5937_vm1 = vmmov 0   ;;  %vm1496_vm2 = vcmask 523264   ;;  %vm1562_vm3 = vcmask 1041408  }
  0x43   : > { %5905 = vsyncadd (%p7253_p9), [#allocation6], 4294963200  ;;  %s7255_s10 = sld [smem:[#allocation20_spill]]  ;;  %vm1563_vm4 = vcmask 1042432   ;;  %vm1544_vm5 = vcmask 36864   ;;  %vm1558_vm6 = vcmask 39936  }
  0x44   : > { %s665_s26 = scalar_select %p664_p10, %s6069_s2, 1  ;;  %vm4304_vm7 = vcmask 1040384   ;;  %vm4355_vm8 = vcmask 1044481  }
  0x45   : > { %s7256_s30 = sld [smem:[#allocation21_spill]]  ;;  %s7261_s25 = smov 64  }
  0x46   : > { %s5321_s27 = smul.u32 48, %s665_s26  ;;  %s7257_s5 = sld [smem:[#allocation25_spill]] }
  0x47   : > { %s7258_s26 = sld [smem:[#allocation23_spill]]  ;;  %s7110_s28 = sand.u32 1, %s5920_s22  }
  0x48   : > { %v5396_v0 = vld [vmem:[%s7254_s29 + $0x78] sm:$0xff]   ;;  %v5400_v4 = vld [vmem:[%s7254_s29 + $0x70] sm:$0xff]   ;;  %v5404_v8 = vld [vmem:[%s7254_s29 + $0x68] sm:$0xff]   ;;  %s7259_s23 = sld [smem:[#allocation24_spill]]  ;;  %s4369_s17 = scalar_lea.sflag [#allocation9], %s7110_s28 }
  0x49   : > { %v5397_v1 = vld [vmem:[%s7254_s29 + $0x38] sm:$0xff]   ;;  %4977 = vmatprep.subr.bf16.mxu0 %v5396_v0  ;;  %v5401_v5 = vld [vmem:[%s7254_s29 + $0x30] sm:$0xff]   ;;  %v5405_v9 = vld [vmem:[%s7254_s29 + $0x28] sm:$0xff]   ;;  %s6229_s0 = scalar_lea.vmem %s7255_s10, %s5321_s27  ;;  %s7225_s27 = smov 64  }
  0x4a   : > { %v5398_v2 = vld [vmem:[%s7254_s29 + $0xf8] sm:$0xff]   ;;  %4978 = vmatpush3.bf16.msra.mxu0 %v5397_v1  ;;  %v5402_v6 = vld [vmem:[%s7254_s29 + $0xf0] sm:$0xff]   ;;  %v5406_v10 = vld [vmem:[%s7254_s29 + $0xe8] sm:$0xff]   ;;  %s5941_s24 = smov [#allocation8]  }
  0x4b   : > { %v5399_v3 = vld [vmem:[%s7254_s29 + $0xb8] sm:$0xff]   ;;  %4999 = vmatprep.subr.bf16.mxu1 %v5398_v2  ;;  %4979 = vmatprep.subr.bf16.mxu0 %v5400_v4  ;;  %v5403_v7 = vld [vmem:[%s7254_s29 + $0xb0] sm:$0xff]   ;;  %v5407_v11 = vld [vmem:[%s7254_s29 + $0xa8] sm:$0xff]  }
  0x4c   : > { %5000 = vmatpush3.bf16.msra.mxu1 %v5399_v3  ;;  %v5408_v12 = vld [vmem:[%s7254_s29 + $0x60] sm:$0xff]   ;;  %v5412_v16 = vld [vmem:[%s7254_s29 + $0x58] sm:$0xff]   ;;  %v5416_v20 = vld [vmem:[%s7254_s29 + $0x50] sm:$0xff]  }
  0x4d   : > { %5001 = vmatprep.subr.bf16.mxu1 %v5402_v6  ;;  %v5409_v13 = vld [vmem:[%s7254_s29 + $0x20] sm:$0xff]   ;;  %v5413_v17 = vld [vmem:[%s7254_s29 + $0x18] sm:$0xff]   ;;  %v5417_v21 = vld [vmem:[%s7254_s29 + $0x10] sm:$0xff]  }
  0x4e   : > { %4980 = vmatpush3.bf16.msra.mxu0 %v5401_v5  ;;  %v5410_v14 = vld [vmem:[%s7254_s29 + $0xe0] sm:$0xff]   ;;  %v5414_v18 = vld [vmem:[%s7254_s29 + $0xd8] sm:$0xff]   ;;  %v5418_v22 = vld [vmem:[%s7254_s29 + $0xd0] sm:$0xff]   ;;  %s7260_s3 = smov %s7259_s23 }
  0x4f   : > { %4981 = vmatprep.subr.bf16.mxu0 %v5404_v8  ;;  %v5411_v15 = vld [vmem:[%s7254_s29 + $0xa0] sm:$0xff]   ;;  %v5415_v19 = vld [vmem:[%s7254_s29 + $0x98] sm:$0xff]   ;;  %v5419_v23 = vld [vmem:[%s7254_s29 + $0x90] sm:$0xff]  }
  0x50   : > { %5002 = vmatpush3.bf16.msra.mxu1 %v5403_v7  ;;  %v5420_v24 = vld [vmem:[%s7254_s29 + $0x48] sm:$0xff]   ;;  %v5424_v28 = vld [vmem:[%s7254_s29 + $0x40] sm:$0xff]   ;;  %v5428_v36 = vld [vmem:[%s7254_s29 + $0x178] sm:$0xff]  }
  0x51   : > { %5003 = vmatprep.subr.bf16.mxu1 %v5406_v10  ;;  %v5421_v25 = vld [vmem:[%s7254_s29 + $0x8] sm:$0xff]   ;;  %v5425_v29 = vld [vmem:[%s7254_s29] sm:$0xff]   ;;  %v673_v37 = vld [vmem:[%s6229_s0 + $0x18] sm:$0x1f] }
  0x52   : > { %4982 = vmatpush3.bf16.msra.mxu0 %v5405_v9  ;;  %v5422_v26 = vld [vmem:[%s7254_s29 + $0xc8] sm:$0xff]   ;;  %v5426_v30 = vld [vmem:[%s7254_s29 + $0xc0] sm:$0xff]   ;;  %v679_v38 = vpack.c.bf16 %v673_v37, %v673_v37  ;;  %v5429_v39 = vld [vmem:[%s7254_s29 + $0x138] sm:$0xff]  }
  0x53   : > { %4983 = vmatprep.subr.bf16.mxu0 %v5408_v12  ;;  %v5423_v27 = vld [vmem:[%s7254_s29 + $0x88] sm:$0xff]   ;;  %v5427_v33 = vld [vmem:[%s7254_s29 + $0x80] sm:$0xff]   ;;  %v672_v40 = vld [vmem:[%s6229_s0 + $0x10] sm:$0x1f] }
  0x54   : > { %5004 = vmatpush3.bf16.msra.mxu1 %v5407_v11  ;;  %v671_v31 = vld [vmem:[%s6229_s0 + $0x8] sm:$0x1f]  ;;  %v670_v34 = vld [vmem:[%s6229_s0] sm:$0x1f]  ;;  %1139 = vmatprep.mubr.bf16.mxu1 %v679_v38  ;;  %v678_v41 = vpack.c.bf16 %v672_v40, %v672_v40  ;;  %v5430_v42 = vld [vmem:[%s7254_s29 + $0x170] sm:$0xff]   ;;  %v5936_v38 = vmov 0  }
  0x55   : > { %5005 = vmatprep.subr.bf16.mxu1 %v5410_v14  ;;  %v677_v32 = vpack.c.bf16 %v671_v31, %v671_v31  ;;  %v676_v35 = vpack.c.bf16 %v670_v34, %v670_v34  ;;  %v5431_v43 = vld [vmem:[%s7254_s29 + $0x130] sm:$0xff]   ;;  %v5432_v44 = vld [vmem:[%s7254_s29 + $0x168] sm:$0xff]   ;;  %v5434_v46 = vld [vmem:[%s7254_s29 + $0x160] sm:$0xff]  }
  0x56   : > { %4984 = vmatpush3.bf16.msra.mxu0 %v5409_v13  ;;  %v5433_v45 = vld [vmem:[%s7254_s29 + $0x128] sm:$0xff]   ;;  %v5435_v47 = vld [vmem:[%s7254_s29 + $0x120] sm:$0xff]   ;;  %v5436_v48 = vld [vmem:[%s7254_s29 + $0x158] sm:$0xff]  }
  0x57   : > { %4985 = vmatprep.subr.bf16.mxu0 %v5412_v16  ;;  %1099 = vmatprep.mubr.bf16.mxu0 %v677_v32  ;;  %v5437_v49 = vld [vmem:[%s7254_s29 + $0x118] sm:$0xff]   ;;  %v5438_v50 = vld [vmem:[%s7254_s29 + $0x150] sm:$0xff]   ;;  %v675_v51 = vld [vmem:[%s6229_s0 + $0x28] sm:$0x1f] }
  0x58   : > { %5006 = vmatpush3.bf16.msra.mxu1 %v5411_v15  ;;  %v5439_v52 = vld [vmem:[%s7254_s29 + $0x110] sm:$0xff]   ;;  %v681_v53 = vpack.c.bf16 %v675_v51, %v675_v51  ;;  %v5440_v54 = vld [vmem:[%s7254_s29 + $0x148] sm:$0xff]   ;;  %v5442_v56 = vld [vmem:[%s7254_s29 + $0x140] sm:$0xff]  }
  0x59   : > { %5007 = vmatprep.subr.bf16.mxu1 %v5414_v18  ;;  %v5441_v55 = vld [vmem:[%s7254_s29 + $0x108] sm:$0xff]   ;;  %v5443_v57 = vld [vmem:[%s7254_s29 + $0x100] sm:$0xff]   ;;  %v5935_v18 = vmov 0.0   ;;  %s4517_s29 = sshll.u32 %s7110_s28, 2 }
  0x5a   : > { %4986 = vmatpush3.bf16.msra.mxu0 %v5413_v17  ;;  %v674_v58 = vld [vmem:[%s6229_s0 + $0x20] sm:$0x1f]  ;;  %v5444_v16 = vld [vmem:[%s7257_s5 + $0xa8] ss:$12 sps:$4 sm:$0xff]   ;;  %v5446_v17 = vld [vmem:[%s7257_s5 + $0xac] ss:$12 sps:$4 sm:$0xff]  }
  0x5b   : > { %4987 = vmatprep.subr.bf16.mxu0 %v5416_v20  ;;  %v680_v59 = vpack.c.bf16 %v674_v58, %v674_v58  ;;  %v778_v5 = vld [vmem:[%s7256_s30] sm:$0x1f]  ;;  %v5462_v34 = vld [vmem:[%s7257_s5 + $0x4c] ss:$12 sps:$4 sm:$0xff]   ;;  %s663_s1 = scalar_lea.vmem [#allocation8], %s4517_s29  ;;  %s7125_s21 = scalar_lea.vmem [#allocation7], %s4517_s29 }
  0x5c   : > { %5008 = vmatpush3.bf16.msra.mxu1 %v5415_v19  ;;  %v5447_v19 = vld [vmem:[%s7257_s5 + $0xb0] ss:$12 sps:$4 sm:$0xff]   ;;  %v5450_v20 = vld [vmem:[%s7257_s5 + $0x94] ss:$12 sps:$4 sm:$0xff]   ;;  %v5467_v40 = vld [vmem:[%s7257_s5 + $0x38] ss:$12 sps:$4 sm:$0xff]  }
  0x5d   : > { %5009 = vmatprep.subr.bf16.mxu1 %v5418_v22  ;;  %v5451_v22 = vld [vmem:[%s7257_s5 + $0x98] ss:$12 sps:$4 sm:$0xff]   ;;  %v5456_v31 = vld [vmem:[%s7257_s5 + $0x60] ss:$12 sps:$4 sm:$0xff]   ;;  %s4396_s10 = sshll.u32 %s663_s1, 4  ;;  %s5834_s30 = sshll.u32 %s5941_s24, 4  ;;  %s7123_s10 = int_to_ptr.vmem [resolvable:$true] %s4396_s10  ;;  %s5835_s30 = int_to_ptr.vmem [resolvable:$false] %s5834_s30 }
  0x5e   : > { %4988 = vmatpush3.bf16.msra.mxu0 %v5417_v21  ;;  %v5448_v21 = vld [vmem:[%s7257_s5 + $0x90] ss:$12 sps:$4 sm:$0xff]   ;;  %v5466_v37 = vld [vmem:[%s7257_s5 + $0x34] ss:$12 sps:$4 sm:$0xff]   ;;  %s5836_s29 = scalar_lea.vmem %s5835_s30, 128  ;;  %p5837_p11 = scmp.lt.s32.totalorder %s7123_s10, %s5835_s30 }
  0x5f   : > { %4989 = vmatprep.subr.bf16.mxu0 %v5420_v24  ;;  %v5458_v32 = vld [vmem:[%s7257_s5 + $0x64] ss:$12 sps:$4 sm:$0xff]   ;;  %v4568_v51 = vld [vmem:[%s7258_s26] ss:$0 sm:$0xff] }
  0x60   : > { %5010 = vmatpush3.bf16.msra.mxu1 %v5419_v23 }
  0x61   : > { %5011 = vmatprep.subr.bf16.mxu1 %v5422_v26 }
  0x62   : > { %4990 = vmatpush3.bf16.msra.mxu0 %v5421_v25 }
  0x63   : > { %4991 = vmatprep.subr.bf16.mxu0 %v5424_v28  ;;  %v5454_v28 = vld [vmem:[%s7257_s5 + $0x7c] ss:$12 sps:$4 sm:$0xff]  }
  0x64   : > { %5012 = vmatpush3.bf16.msra.mxu1 %v5423_v27 }
  0x65   : > { %5013 = vmatprep.subr.bf16.mxu1 %v5426_v30  ;;  %v5455_v30 = vld [vmem:[%s7257_s5 + $0x80] ss:$12 sps:$4 sm:$0xff]  }
  0x66   : > { %4992 = vmatpush3.bf16.msra.mxu0 %v5425_v29  ;;  %v5452_v29 = vld [vmem:[%s7257_s5 + $0x78] ss:$12 sps:$4 sm:$0xff]  }
  0x67   : > { %5021 = vmatprep.subr.bf16.mxu0 %v5428_v36  ;;  %v5463_v36 = vld [vmem:[%s7257_s5 + $0x50] ss:$12 sps:$4 sm:$0xff]  }
  0x68   : > { %5014 = vmatpush3.bf16.msra.mxu1 %v5427_v33  ;;  %v5459_v33 = vld [vmem:[%s7257_s5 + $0x68] ss:$12 sps:$4 sm:$0xff]  }
  0x69   : > { %1100 = vmatmul.mubr.bf16.vlgmr.msra.gmra.mxu0 %v676_v35  ;;  %1396 = vmatprep.subr.bf16.mxu1 %v5446_v17  ;;  %v5460_v35 = vld [vmem:[%s7257_s5 + $0x48] ss:$12 sps:$4 sm:$0xff]  }
  0x6a   : > { %5022 = vmatpush3.bf16.msra.mxu0 %v5429_v39  ;;  %1179 = vmatprep.mubr.bf16.mxu0 %v681_v53  ;;  %v5464_v39 = vld [vmem:[%s7257_s5 + $0x30] ss:$12 sps:$4 sm:$0xff]   ;;  %v4569_v53 = vld [vmem:[%s7259_s23] ss:$0 sm:$0xff]  ;;  %s7228_s23 = sshll.u32 %s6069_s2, 6 }
  0x6b   : > { %1140 = vmatmul.mubr.bf16.vlgmr.msra.gmra.mxu1 %v678_v41  ;;  %5023 = vmatprep.subr.bf16.mxu0 %v5430_v42  ;;  %v5470_v41 = vld [vmem:[%s7257_s5 + $0x1c] ss:$12 sps:$4 sm:$0xff]   ;;  %v5468_v42 = vld [vmem:[%s7257_s5 + $0x18] ss:$12 sps:$4 sm:$0xff]   ;;  %s7121_s0 = scalar_lea.hbm %s7214_s20, %s7228_s23 }
  0x6c   : > { %1397 = vmatpush1.bf16.msra.mxu1 %v5444_v16  ;;  %1428 = vmatprep.mubr.bf16.mxu1 %v5936_v38 }
  0x6d   : > { %1398 = vmatprep.subr.bf16.mxu1 %v5450_v20 }
  0x6e   : > { %5024 = vmatpush3.bf16.msra.mxu0 %v5431_v43  ;;  %v5471_v43 = vld [vmem:[%s7257_s5 + $0x20] ss:$12 sps:$4 sm:$0xff]  }
  0x6f   : > { %5025 = vmatprep.subr.bf16.mxu0 %v5432_v44  ;;  %v5474_v44 = vld [vmem:[%s7257_s5 + $0x4] ss:$12 sps:$4 sm:$0xff]  }
  0x70   : > { %1399 = vmatpush1.bf16.msra.mxu1 %v5448_v21 }
  0x71   : > { %1400 = vmatprep.subr.bf16.mxu1 %v5454_v28 }
  0x72   : > { %5026 = vmatpush3.bf16.msra.mxu0 %v5433_v45  ;;  %v5472_v45 = vld [vmem:[%s7257_s5] ss:$12 sps:$4 sm:$0xff]  }
  0x73   : > { %5027 = vmatprep.subr.bf16.mxu0 %v5434_v46  ;;  %v5475_v46 = vld [vmem:[%s7257_s5 + $0x8] ss:$12 sps:$4 sm:$0xff]  }
  0x74   : > { %1401 = vmatpush1.bf16.msra.mxu1 %v5452_v29 }
  0x75   : > { %1402 = vmatprep.subr.bf16.mxu1 %v5458_v32 }
  0x76   : > { %5028 = vmatpush3.bf16.msra.mxu0 %v5435_v47 }
  0x77   : > { %5029 = vmatprep.subr.bf16.mxu0 %v5436_v48 }
  0x78   : > { %1403 = vmatpush1.bf16.msra.mxu1 %v5456_v31 }
  0x79   : > { %1404 = vmatprep.subr.bf16.mxu1 %v5462_v34 }
  0x7a   : > { %5030 = vmatpush3.bf16.msra.mxu0 %v5437_v49 }
  0x7b   : > { %5031 = vmatprep.subr.bf16.mxu0 %v5438_v50 }
  0x7c   : > { %1405 = vmatpush1.bf16.msra.mxu1 %v5460_v35 }
  0x7d   : > { %1406 = vmatprep.subr.bf16.mxu1 %v5466_v37  ;;  %v5476_v37 = vld [vmem:[%s7201_s7 + $0x18] sm:$0xff]  }
  0x7e   : > { %5032 = vmatpush3.bf16.msra.mxu0 %v5439_v52 }
  0x7f   : > { %5033 = vmatprep.subr.bf16.mxu0 %v5440_v54 }
  0x80   : > { %1407 = vmatpush1.bf16.msra.mxu1 %v5464_v39 }
  0x81   : > { %1408 = vmatprep.subr.bf16.mxu1 %v5470_v41  ;;  %v5478_v41 = vld [vmem:[%s7201_s7 + $0x8] sm:$0xff]  }
  0x82   : > { %5034 = vmatpush3.bf16.msra.mxu0 %v5441_v55 }
  0x83   : > { %5035 = vmatprep.subr.bf16.mxu0 %v5442_v56 }
  0x84   : > { %1409 = vmatpush1.bf16.msra.mxu1 %v5468_v42  ;;  %v5479_v42 = vld [vmem:[%s7201_s7] sm:$0xff]  }
  0x85   : > { %1410 = vmatprep.subr.bf16.mxu1 %v5474_v44 }
  0x86   : > { %5036 = vmatpush3.bf16.msra.mxu0 %v5443_v57  ;;  %v1253_v57 = vlaneseq }
  0x87   : > { %5185 = vmatprep.subr.bf16.mxu0 %v5935_v18 }
  0x88   : > { %1411 = vmatpush1.bf16.msra.mxu1 %v5472_v45  ;;  %v6399_v58 = vshrl.u32 %v1253_v57, 7  ;;  %vm7129_vm9 = vcmp.lt.s32.totalorder %v1253_v57, 512 }
  0x89   : > { %1180 = vmatmul.mubr.bf16.vlgmr.msra.gmra.mxu0 %v680_v59  ;;  %5205 = vmatprep.subr.bf16.mxu1 %v5935_v18 }
  0x8a   : > { %5186 = vmatpush3.bf16.msra.mxu0 %v5447_v19  ;;  %5201 = vmatprep.mubr.msk.bf16.mxu0 %vm5937_vm1, %v5935_v18  ;;  %v6402_v59 = vsub.s32 1, %v6399_v58 }
  0x8b   : > { %5187 = vmatprep.subr.bf16.mxu0 %v5935_v18 }
  0x8e   : > { %5188 = vmatpush3.bf16.msra.mxu0 %v5451_v22 }
  0x8f   : > { %5189 = vmatprep.subr.bf16.mxu0 %v5935_v18 }
  0x92   : > { %5190 = vmatpush3.bf16.msra.mxu0 %v5455_v30 }
  0x93   : > { %5191 = vmatprep.subr.bf16.mxu0 %v5935_v18 }
  0x96   : > { %5192 = vmatpush3.bf16.msra.mxu0 %v5459_v33 }
  0x97   : > { %5193 = vmatprep.subr.bf16.mxu0 %v5935_v18 }
  0x9a   : > { %5194 = vmatpush3.bf16.msra.mxu0 %v5463_v36 }
  0x9b   : > { %5195 = vmatprep.subr.bf16.mxu0 %v5935_v18 }
  0x9e   : > { %5196 = vmatpush3.bf16.msra.mxu0 %v5467_v40  ;;  %v5477_v40 = vld [vmem:[%s7201_s7 + $0x10] sm:$0xff]  }
  0x9f   : > { %5197 = vmatprep.subr.bf16.mxu0 %v5935_v18 }
  0xa2   : > { %5198 = vmatpush3.bf16.msra.mxu0 %v5471_v43 }
  0xa3   : > { %5199 = vmatprep.subr.bf16.mxu0 %v5935_v18 }
  0xa6   : > { %5200 = vmatpush3.bf16.msra.mxu0 %v5475_v46 }
  0xa7   : > { %5241 = vmatprep.subr.bf16.mxu0 %v5935_v18 }
 0x129   : > { %v4993_v60 = vpop.f32.mrf.mxu0 }
 0x12b   : > { %v4994_v61 = vpop.f32.mrf.mxu0  ;;  %v5015_v62 = vpop.f32.mrf.mxu1 }
 0x12c   : > { %v4995_v4 = vadd.f32 %v4994_v61, %v4993_v60  ;;  %v1251_v60 = vld [vmem:[%s7200_s6] sm:$0x7]  ;;  %v6408_v61 = vsub.s32 2, %v6399_v58 }
 0x12d   : > { %v4996_v63 = vpop.f32.mrf.mxu0  ;;  %v5016_v0 = vpop.f32.mrf.mxu1 }
 0x12e   : > { %v1102_v6 = vadd.f32 %v4995_v4, %v778_v5  ;;  %v5017_v7 = vadd.f32 %v5016_v0, %v5015_v62  ;;  %v1260_v62 = vrot.slane %v1251_v60, %v6402_v59 }
 0x12f   : > { %v4997_v1 = vpop.f32.mrf.mxu0  ;;  %v5018_v2 = vpop.f32.mrf.mxu1 }
 0x130   : > { %v1142_v10 = vadd.f32 %v5017_v7, %v1102_v6  ;;  %v6412_v1 = vsub.s32 0, %v6399_v58  ;;  %v1264_v2 = vrot.slane %v1251_v60, %v6408_v61 }
 0x131   : > { %v5019_v3 = vpop.f32.mrf.mxu1 }
 0x149   : > { %v5037_v8 = vpop.f32.mrf.mxu0 }
 0x14b   : > { %v5038_v9 = vpop.f32.mrf.mxu0 }
 0x14c   : > { %v5039_v11 = vadd.f32 %v5038_v9, %v5037_v8  ;;  %v1256_v8 = vrot.slane %v1251_v60, %v6412_v1 }
 0x14d   : > { %v5040_v12 = vpop.f32.mrf.mxu0 }
 0x14e   : > { %v6297_v13 = vadd.f32 %v5039_v11, %v1142_v10 }
 0x14f   : > { %v5041_v14 = vpop.f32.mrf.mxu0 }
 0x150   : > { %v1190_v15 = vsel %vm1189_vm0, %v6297_v13, 0.0 }
 0x151   : > { %1191 = vadd.xlane.f32.xlu0 %v1190_v15  ;;  %v5939_v15 = vmov 65535  }
 0x152   : > { %v1564_v16 = vsel %vm1562_vm3, 4294967295, %v5939_v15 }
 0x153   : > { %v6421_v20 = vsel %vm1563_vm4, %v1564_v16, 0 }
 0x1da   : > { %v1192_v23 = vpop.xlane.xlu0 %1191 }
 0x1db   : > { %v1194_v24 = vmul.f32 0.0078125, %v1192_v23 }
 0x1dd   : > { %v1195_v25 = vsub.f32 %v6297_v13, %v1194_v24 }
 0x1df   : > { %v1196_v26 = vmul.f32 %v1195_v25, %v1195_v25 }
 0x1e1   : > { %v1197_v27 = vsel %vm1189_vm0, %v1196_v26, 0.0 }
 0x1e2   : > { %1198 = vadd.xlane.f32.xlu0 %v1197_v27 }
 0x26b   : > { %v1199_v47 = vpop.xlane.xlu0 %1198 }
 0x26c   : > { %v1200_v48 = vmul.f32 0.0078125, %v1199_v47 }
 0x26e   : > { %v1201_v49 = vadd.f32 1e-05, %v1200_v48 }
 0x270   : > { %5732 = vrsqrt.f32 %v1201_v49 }
 0x27d   : > { %v5733_v50 = vpop.eup %5732 }
 0x27e   : > { %v1203_v52 = vmul.f32 %v5733_v50, %v1195_v25 }
 0x280   : > { %v1210_v54 = vmul.f32 %v4568_v51, %v1203_v52 }
 0x282   : > { %v1217_v55 = vadd.f32 %v4569_v53, %v1210_v54 }
 0x284   : > { %v1218_v56 = vpack.c.bf16 %v1217_v55, %v1217_v55 }
 0x286   : > { %1429 = vmatmul.mubr.bf16.vlgmr.msra.gmra.mxu1 %v1218_v56  ;;  %5202 = vmatmul.mubr.bf16.vlgmr.msra.gmra.mxu0 %v1218_v56 }
 0x287   : > { %5207 = vmatprep.mubr.msk.bf16.mxu1 %vm5937_vm1, %v5935_v18  ;;  %5249 = vmatprep.mubr.msk.bf16.mxu0 %vm5937_vm1, %v5935_v18 }
 0x346   : > { %v1430_v63 = vpop.f32.mrf.mxu1  ;;  %v1471_v0 = vpop.f32.mrf.mxu0 }
 0x347   : > { %v1472_v10 = vadd.f32 %v1471_v0, %v1264_v2  ;;  %v1431_v17 = vadd.f32 %v1430_v63, %v1256_v8  ;;  %v5481_v8 = vld [vmem:[%s7201_s7 + $0x30] sm:$0xff]  }
 0x348   : > { %v1432_v3 = vpop.f32.mrf.mxu1  ;;  %v5203_v4 = vpop.f32.mrf.mxu0 }
 0x349   : > { %v1433_v5 = vadd.f32 %v1432_v3, %v1260_v62  ;;  %v6419_v19 = vpack.c.bf16 %v1472_v10, %v1472_v10  ;;  %v1494_v21 = vpack.c.bf16 %v1431_v17, %v1431_v17  ;;  %v5483_v17 = vld [vmem:[%s7201_s7 + $0x20] sm:$0xff]  }
 0x34a   : > { %v1434_v6 = vpop.f32.mrf.mxu1  ;;  %v1474_v7 = vpop.f32.mrf.mxu0 }
 0x34b   : > { %v1495_v9 = vpack.c.bf16 %v1433_v5, %v1433_v5  ;;  %v1567_v22 = vand.u32 %v6421_v20, %v6419_v19  ;;  %v5480_v7 = vld [vmem:[%s7201_s7 + $0x38] sm:$0xff]  }
 0x34c   : > { %v1435_v11 = vpop.f32.mrf.mxu1  ;;  %v5204_v12 = vpop.f32.mrf.mxu0  ;;  %5242 = vmatpush3.bf16.msra.mxu0 %v5480_v7  ;;  %v5523_v7 = vld [vmem:[%s7205_s11 + $0x28] ss:$16 sps:$4 sm:$0xff]  }
 0x34d   : > { %v1501_v14 = vsel %vm1496_vm2, %v1495_v9, 0  ;;  %1688 = vrot.lane.b32.xlu0 %v1495_v9, %s7225_s27  ;;  %5243 = vmatprep.subr.bf16.mxu0 %v5935_v18  ;;  %v5482_v9 = vld [vmem:[%s7201_s7 + $0x28] sm:$0xff]  }
 0x34e   : > { %5206 = vmatpush3.bf16.xpose.msra.mxu1 %v1501_v14 }
 0x34f   : > { %5211 = vmatprep.subr.bf16.mxu1 %v5935_v18 }
 0x350   : > { %5244 = vmatpush3.bf16.msra.mxu0 %v5481_v8  ;;  %v5528_v8 = vld [vmem:[%s7205_s11 + $0x4] ss:$16 sps:$4 sm:$0xff]  }
 0x351   : > { %5245 = vmatprep.subr.bf16.mxu0 %v5935_v18 }
 0x354   : > { %5246 = vmatpush3.bf16.msra.mxu0 %v5482_v9  ;;  %v5531_v9 = vld [vmem:[%s7205_s11 + $0xc] ss:$16 sps:$4 sm:$0xff]  }
 0x355   : > { %5208 = vmatmul.mubr.msk.bf16.vlgmr.msra.gmra.mxu1 %vm1496_vm2, %v1494_v21  ;;  %5247 = vmatprep.subr.bf16.mxu0 %v5935_v18 }
 0x356   : > { %5212 = vmatpush3.bf16.msra.mxu1 %v1567_v22  ;;  %5213 = vmatprep.mubr.msk.bf16.mxu1 %vm5937_vm1, %v5935_v18 }
 0x357   : > { %5217 = vmatprep.subr.bf16.mxu1 %v5935_v18 }
 0x358   : > { %5248 = vmatpush3.bf16.msra.mxu0 %v5483_v17  ;;  %v4609_v17 = vld [vmem:[%s7203_s9] ss:$0 sm:$0xff] }
 0x3bf   : > { %v1689_v43 = vpop.permute.xlu0 %1688 }
 0x3c0   : > { %v1694_v47 = vsel %vm1496_vm2, %v1689_v43, 0 }
 0x415   : > { %v1537_v23 = vpop.f32.mrf.mxu1 }
 0x416   : > { %v1543_v24 = vmul.f32 0.125, %v1537_v23 }
 0x417   : > { %v5209_v25 = vpop.f32.mrf.mxu1 }
 0x418   : > { %v1545_v26 = vsel %vm1544_vm5, %v1543_v24, -inf  ;;  %v4601_v25 = vld [vmem:[%s7202_s8] ss:$0 sm:$0xff] }
 0x419   : > { %1546 = vmax.xlane.f32.xlu1 %v1545_v26  ;;  %v1540_v27 = vpop.f32.mrf.mxu1 }
 0x41b   : > { %v5210_v28 = vpop.f32.mrf.mxu1 }
 0x4a2   : > { %v1547_v29 = vpop.xlane.xlu1 %1546 }
 0x4a3   : > { %v1548_v30 = vsub.f32 %v1543_v24, %v1547_v29 }
 0x4a5   : > { %v1549_v31 = vmul.f32 1.442695, %v1548_v30 }
 0x4a7   : > { %5734 = vpow2.f32 %v1549_v31 }
 0x4b4   : > { %v5735_v32 = vpop.eup %5734 }
 0x4b5   : > { %v1551_v33 = vsel %vm1544_vm5, %v5735_v32, 0.0 }
 0x4b6   : > { %1552 = vadd.xlane.f32.xlu1 %v1551_v33 }
 0x4c7   : > { %1685 = vrot.lane.b32.xlu1 %v1494_v21, %s7225_s27 }
 0x53f   : > { %v1553_v34 = vpop.xlane.xlu1 %1552 }
 0x540   : > { %5736 = vrcp.f32 %v1553_v34  ;;  %v5484_v34 = vld [vmem:[%s7205_s11 + $0xe0] ss:$16 sps:$4 sm:$0xff]  }
 0x543   : > { %v1686_v50 = vpop.permute.xlu1 %1685 }
 0x54d   : > { %v5737_v35 = vpop.eup %5736 }
 0x54e   : > { %v1555_v36 = vmul.f32 %v5737_v35, %v5735_v32  ;;  %v5486_v35 = vld [vmem:[%s7205_s11 + $0xe4] ss:$16 sps:$4 sm:$0xff]  }
 0x550   : > { %v1556_v39 = vpack.c.bf16 %v1555_v36, %v1555_v36  ;;  %v5487_v36 = vld [vmem:[%s7205_s11 + $0xe8] ss:$16 sps:$4 sm:$0xff]  }
 0x552   : > { %5214 = vmatmul.mubr.msk.bf16.vlgmr.msra.gmra.mxu1 %vm1558_vm6, %v1556_v39  ;;  %v5495_v39 = vld [vmem:[%s7205_s11 + $0xcc] ss:$16 sps:$4 sm:$0xff]  }
 0x553   : > { %5218 = vmatpush3.bf16.msra.mxu1 %v5476_v37  ;;  %5225 = vmatprep.mubr.msk.bf16.mxu1 %vm5937_vm1, %v5935_v18  ;;  %v5492_v37 = vld [vmem:[%s7205_s11 + $0xc4] ss:$16 sps:$4 sm:$0xff]  }
 0x554   : > { %5219 = vmatprep.subr.bf16.mxu1 %v5935_v18 }
 0x557   : > { %5220 = vmatpush3.bf16.msra.mxu1 %v5477_v40  ;;  %v5490_v40 = vld [vmem:[%s7205_s11 + $0xc0] ss:$16 sps:$4 sm:$0xff]  }
 0x558   : > { %5221 = vmatprep.subr.bf16.mxu1 %v5935_v18 }
 0x55b   : > { %5222 = vmatpush3.bf16.msra.mxu1 %v5478_v41  ;;  %v5493_v41 = vld [vmem:[%s7205_s11 + $0xc8] ss:$16 sps:$4 sm:$0xff]  }
 0x55c   : > { %5223 = vmatprep.subr.bf16.mxu1 %v5935_v18 }
 0x55f   : > { %5224 = vmatpush3.bf16.msra.mxu1 %v5479_v42 }
 0x560   : > { %5229 = vmatprep.subr.bf16.mxu1 %v5935_v18 }
 0x612   : > { %v1603_v44 = vpop.f32.mrf.mxu1 }
 0x613   : > { %v1609_v45 = vpack.c.bf16 %v1603_v44, %v1603_v44 }
 0x614   : > { %v5215_v46 = vpop.f32.mrf.mxu1 }
 0x615   : > { %5226 = vmatmul.mubr.msk.bf16.vlgmr.msra.gmra.mxu1 %vm1496_vm2, %v1609_v45 }
 0x616   : > { %5230 = vmatpush3.bf16.xpose.msra.mxu1 %v1694_v47  ;;  %v1606_v48 = vpop.f32.mrf.mxu1  ;;  %5231 = vmatprep.mubr.msk.bf16.mxu1 %vm5937_vm1, %v5935_v18  ;;  %v5498_v47 = vld [vmem:[%s7205_s11 + $0xa4] ss:$16 sps:$4 sm:$0xff]  }
 0x617   : > { %5235 = vmatprep.subr.bf16.mxu1 %v5935_v18  ;;  %v5501_v48 = vld [vmem:[%s7205_s11 + $0xac] ss:$16 sps:$4 sm:$0xff]  }
 0x618   : > { %v5216_v49 = vpop.f32.mrf.mxu1 }
 0x619   : > { %v5496_v49 = vld [vmem:[%s7205_s11 + $0xa0] ss:$16 sps:$4 sm:$0xff]  }
 0x61d   : > { %5232 = vmatmul.mubr.msk.bf16.vlgmr.msra.gmra.mxu1 %vm1496_vm2, %v1686_v50  ;;  %v5499_v50 = vld [vmem:[%s7205_s11 + $0xa8] ss:$16 sps:$4 sm:$0xff]  }
 0x61e   : > { %5237 = vmatprep.mubr.msk.bf16.mxu1 %vm5937_vm1, %v5935_v18 }
 0x6d5   : > { %v1671_v51 = vpop.f32.mrf.mxu1 }
 0x6d6   : > { %v1683_v26 = vadd.f32 %v4601_v25, %v1671_v51  ;;  %v5502_v51 = vld [vmem:[%s7205_s11 + $0x80] ss:$16 sps:$4 sm:$0xff]   ;;  %v5532_v25 = vld [vmem:[%s7207_s13 + $0x78] sm:$0xff]  }
 0x6d7   : > { %v5227_v52 = vpop.f32.mrf.mxu1 }
 0x6d8   : > { %v5504_v52 = vld [vmem:[%s7205_s11 + $0x84] ss:$16 sps:$4 sm:$0xff]  }
 0x6d9   : > { %v1674_v53 = vpop.f32.mrf.mxu1 }
 0x6da   : > { %v5505_v53 = vld [vmem:[%s7205_s11 + $0x88] ss:$16 sps:$4 sm:$0xff]  }
 0x6db   : > { %v5228_v54 = vpop.f32.mrf.mxu1 }
 0x6dc   : > { %v5507_v54 = vld [vmem:[%s7205_s11 + $0x8c] ss:$16 sps:$4 sm:$0xff]  }
 0x6dd   : > { %v1730_v55 = vpop.f32.mrf.mxu1 }
 0x6de   : > { %v1736_v56 = vmul.f32 0.125, %v1730_v55  ;;  %v5510_v55 = vld [vmem:[%s7205_s11 + $0x64] ss:$16 sps:$4 sm:$0xff]  }
 0x6df   : > { %v5233_v60 = vpop.f32.mrf.mxu1 }
 0x6e0   : > { %v1737_v62 = vsel %vm1544_vm5, %v1736_v56, -inf  ;;  %v5508_v60 = vld [vmem:[%s7205_s11 + $0x60] ss:$16 sps:$4 sm:$0xff]  }
 0x6e1   : > { %1738 = vmax.xlane.f32.xlu1 %v1737_v62  ;;  %v1733_v63 = vpop.f32.mrf.mxu1  ;;  %v5511_v62 = vld [vmem:[%s7205_s11 + $0x68] ss:$16 sps:$4 sm:$0xff]  }
 0x6e2   : > { %v5516_v63 = vld [vmem:[%s7205_s11 + $0x44] ss:$16 sps:$4 sm:$0xff]  }
 0x6e3   : > { %v5234_v0 = vpop.f32.mrf.mxu1 }
 0x6e4   : > { %v5519_v0 = vld [vmem:[%s7205_s11 + $0x4c] ss:$16 sps:$4 sm:$0xff]  }
 0x76a   : > { %v1739_v2 = vpop.xlane.xlu1 %1738 }
 0x76b   : > { %v1740_v3 = vsub.f32 %v1736_v56, %v1739_v2  ;;  %v5513_v56 = vld [vmem:[%s7205_s11 + $0x6c] ss:$16 sps:$4 sm:$0xff]   ;;  %v5514_v2 = vld [vmem:[%s7205_s11 + $0x40] ss:$16 sps:$4 sm:$0xff]  }
 0x76d   : > { %v1741_v4 = vmul.f32 1.442695, %v1740_v3  ;;  %v5517_v3 = vld [vmem:[%s7205_s11 + $0x48] ss:$16 sps:$4 sm:$0xff]  }
 0x76f   : > { %5738 = vpow2.f32 %v1741_v4  ;;  %v5522_v4 = vld [vmem:[%s7205_s11 + $0x24] ss:$16 sps:$4 sm:$0xff]  }
 0x77c   : > { %v5739_v5 = vpop.eup %5738 }
 0x77d   : > { %v1743_v6 = vsel %vm1544_vm5, %v5739_v5, 0.0 }
 0x77e   : > { %1744 = vadd.xlane.f32.xlu0 %v1743_v6  ;;  %v5520_v6 = vld [vmem:[%s7205_s11 + $0x20] ss:$16 sps:$4 sm:$0xff]  }
 0x794   : > { %1750 = vrot.lane.b32.xlu0 %v6419_v19, %s7225_s27  ;;  %s5830_s27 = scalar_lea.vmem %s7123_s10, 64 }
 0x795   : > { %p5831_p12 = scmp.ne.s32.totalorder %s7123_s10, %s5830_s27  ;;  %p5838_p0 = scmp.lt.s32.totalorder %s5836_s29, %s5830_s27 }
 0x797   : > { %p5832_p7 = pnand %p5831_p12, %p6086_p5  ;;  %p5839_p1 = por %p5838_p0, %p5837_p11 }
 0x799   : > { %p5833_p8 = pneg %p5832_p7 }
 0x79b   : > { %p5840_p3 = pnand %p5839_p1, %p5833_p8 }
 0x807   : > { %v1745_v10 = vpop.xlane.xlu0 %1744 }
 0x808   : > { %5740 = vrcp.f32 %v1745_v10  ;;  %v5526_v10 = vld [vmem:[%s7205_s11] ss:$16 sps:$4 sm:$0xff]  }
 0x80b   : > { %v1751_v11 = vpop.permute.xlu0 %1750 }
 0x80c   : > { %v1756_v12 = vand.u32 %v1751_v11, %v6421_v20  ;;  %v5529_v11 = vld [vmem:[%s7205_s11 + $0x8] ss:$16 sps:$4 sm:$0xff]  }
 0x80e   : > { %5236 = vmatpush3.bf16.msra.mxu1 %v1756_v12 }
 0x80f   : > { %2112 = vmatprep.subr.bf16.mxu1 %v5486_v35  ;;  %v5541_v35 = vld [vmem:[%s7207_s13 + $0xe8] sm:$0xff]  }
 0x815   : > { %v5741_v14 = vpop.eup %5740 }
 0x816   : > { %v1747_v15 = vmul.f32 %v5741_v14, %v5739_v5  ;;  %v5525_v5 = vld [vmem:[%s7205_s11 + $0x2c] ss:$16 sps:$4 sm:$0xff]  }
 0x818   : > { %v1748_v16 = vpack.c.bf16 %v1747_v15, %v1747_v15 }
 0x81a   : > { %5238 = vmatmul.mubr.msk.bf16.vlgmr.msra.gmra.mxu1 %vm1558_vm6, %v1748_v16 }
 0x81b   : > { %2144 = vmatprep.mubr.bf16.mxu1 %v5936_v38  ;;  %2113 = vmatpush1.bf16.msra.mxu1 %v5484_v34  ;;  %v5540_v34 = vld [vmem:[%s7207_s13 + $0x68] sm:$0xff]  }
 0x81c   : > { %2114 = vmatprep.subr.bf16.mxu1 %v5492_v37  ;;  %v5544_v37 = vld [vmem:[%s7207_s13 + $0x60] sm:$0xff]  }
 0x81f   : > { %2115 = vmatpush1.bf16.msra.mxu1 %v5490_v40  ;;  %v5546_v40 = vld [vmem:[%s7207_s13 + $0x20] sm:$0xff]  }
 0x820   : > { %2116 = vmatprep.subr.bf16.mxu1 %v5498_v47  ;;  %v5553_v47 = vld [vmem:[%s7207_s13 + $0xd0] sm:$0xff]  }
 0x823   : > { %2117 = vmatpush1.bf16.msra.mxu1 %v5496_v49  ;;  %v5555_v49 = vld [vmem:[%s7207_s13 + $0x90] sm:$0xff]  }
 0x824   : > { %2118 = vmatprep.subr.bf16.mxu1 %v5504_v52  ;;  %v5558_v52 = vld [vmem:[%s7207_s13 + $0x8] sm:$0xff]  }
 0x827   : > { %2119 = vmatpush1.bf16.msra.mxu1 %v5502_v51  ;;  %v5557_v51 = vld [vmem:[%s7207_s13 + $0xc8] sm:$0xff]  }
 0x828   : > { %2120 = vmatprep.subr.bf16.mxu1 %v5510_v55  ;;  %v5561_v55 = vld [vmem:[%s7207_s13 + $0xc0] sm:$0xff]  }
 0x82b   : > { %2121 = vmatpush1.bf16.msra.mxu1 %v5508_v60  ;;  %v5563_v60 = vld [vmem:[%s7207_s13 + $0x80] sm:$0xff]  }
 0x82c   : > { %2122 = vmatprep.subr.bf16.mxu1 %v5516_v63  ;;  %v6693_v63 = vsub.s32 3, %v6399_v58 }
 0x82f   : > { %2123 = vmatpush1.bf16.msra.mxu1 %v5514_v2 }
 0x830   : > { %2124 = vmatprep.subr.bf16.mxu1 %v5522_v4 }
 0x833   : > { %2125 = vmatpush1.bf16.msra.mxu1 %v5520_v6 }
 0x834   : > { %2126 = vmatprep.subr.bf16.mxu1 %v5528_v8 }
 0x837   : > { %2127 = vmatpush1.bf16.msra.mxu1 %v5526_v10 }
 0x838   : > { %5070 = vmatprep.subr.bf16.mxu1 %v5532_v25 }
 0x8da   : > { %v1792_v19 = vpop.f32.mrf.mxu1 }
 0x8db   : > { %v1798_v21 = vpack.c.bf16 %v1792_v19, %v1792_v19 }
 0x8dc   : > { %v5239_v22 = vpop.f32.mrf.mxu1 }
 0x8dd   : > { %5250 = vmatmul.mubr.msk.bf16.vlgmr.msra.gmra.mxu0 %vm1496_vm2, %v1798_v21  ;;  %v4610_v21 = vld [vmem:[#allocation2] ss:$0 sm:$0xff] }
 0x8de   : > { %v1795_v23 = vpop.f32.mrf.mxu1  ;;  %2185 = vmatprep.mubr.bf16.mxu0 %v5936_v38 }
 0x8e0   : > { %v5240_v24 = vpop.f32.mrf.mxu1 }
 0x99d   : > { %v1860_v27 = vpop.f32.mrf.mxu0 }
 0x99e   : > { %v1866_v28 = vadd.f32 %v1860_v27, %v1683_v26  ;;  %v5533_v26 = vld [vmem:[%s7207_s13 + $0xf8] sm:$0xff]  }
 0x99f   : > { %v5251_v29 = vpop.f32.mrf.mxu0  ;;  %v5534_v27 = vld [vmem:[%s7207_s13 + $0x38] sm:$0xff]  }
 0x9a0   : > { %v6487_v30 = vadd.f32 %v1866_v28, %v6297_v13  ;;  %v5489_v13 = vld [vmem:[%s7205_s11 + $0xec] ss:$16 sps:$4 sm:$0xff]   ;;  %v5536_v29 = vld [vmem:[%s7207_s13 + $0x70] sm:$0xff]  }
 0x9a1   : > { %v1863_v31 = vpop.f32.mrf.mxu0  ;;  %2153 = vmatprep.subr.bf16.mxu0 %v5489_v13  ;;  %v5535_v28 = vld [vmem:[%s7207_s13 + $0xb8] sm:$0xff]   ;;  %v5543_v13 = vld [vmem:[%s7207_s13 + $0xa8] sm:$0xff]  }
 0x9a2   : > { %v1870_v32 = vsel %vm1189_vm0, %v6487_v30, 0.0  ;;  %2154 = vmatpush1.bf16.msra.mxu0 %v5487_v36  ;;  %v5537_v31 = vld [vmem:[%s7207_s13 + $0xf0] sm:$0xff]   ;;  %v5542_v36 = vld [vmem:[%s7207_s13 + $0x28] sm:$0xff]  }
 0x9a3   : > { %1871 = vadd.xlane.f32.xlu1 %v1870_v32  ;;  %v5252_v33 = vpop.f32.mrf.mxu0  ;;  %2155 = vmatprep.subr.bf16.mxu0 %v5495_v39  ;;  %v5538_v32 = vld [vmem:[%s7207_s13 + $0x30] sm:$0xff]   ;;  %v5545_v39 = vld [vmem:[%s7207_s13 + $0xe0] sm:$0xff]  }
 0x9a4   : > { %v5539_v33 = vld [vmem:[%s7207_s13 + $0xb0] sm:$0xff]  }
 0x9a6   : > { %2156 = vmatpush1.bf16.msra.mxu0 %v5493_v41  ;;  %v5547_v41 = vld [vmem:[%s7207_s13 + $0xa0] sm:$0xff]  }
 0x9a7   : > { %2157 = vmatprep.subr.bf16.mxu0 %v5501_v48  ;;  %v5554_v48 = vld [vmem:[%s7207_s13 + $0x10] sm:$0xff]  }
 0x9aa   : > { %2158 = vmatpush1.bf16.msra.mxu0 %v5499_v50  ;;  %v5556_v50 = vld [vmem:[%s7207_s13 + $0x48] sm:$0xff]  }
 0x9ab   : > { %2159 = vmatprep.subr.bf16.mxu0 %v5507_v54  ;;  %v5560_v54 = vld [vmem:[%s7207_s13 + $0x40] sm:$0xff]  }
 0x9ae   : > { %2160 = vmatpush1.bf16.msra.mxu0 %v5505_v53  ;;  %v5559_v53 = vld [vmem:[%s7207_s13 + $0x88] sm:$0xff]  }
 0x9af   : > { %2161 = vmatprep.subr.bf16.mxu0 %v5513_v56  ;;  %v5562_v56 = vld [vmem:[%s7207_s13] sm:$0xff]  }
 0x9b2   : > { %2162 = vmatpush1.bf16.msra.mxu0 %v5511_v62  ;;  %v1930_v62 = vld [vmem:[%s7206_s12] sm:$0xf] }
 0x9b3   : > { %2163 = vmatprep.subr.bf16.mxu0 %v5519_v0  ;;  %v1935_v0 = vrot.slane %v1930_v62, %v6412_v1  ;;  %v1943_v2 = vrot.slane %v1930_v62, %v6408_v61  ;;  %v1947_v4 = vrot.slane %v1930_v62, %v6693_v63 }
 0x9b6   : > { %2164 = vmatpush1.bf16.msra.mxu0 %v5517_v3  ;;  %v1939_v3 = vrot.slane %v1930_v62, %v6402_v59 }
 0x9b7   : > { %2165 = vmatprep.subr.bf16.mxu0 %v5525_v5 }
 0x9ba   : > { %2166 = vmatpush1.bf16.msra.mxu0 %v5523_v7 }
 0x9bb   : > { %2167 = vmatprep.subr.bf16.mxu0 %v5531_v9 }
 0x9be   : > { %2168 = vmatpush1.bf16.msra.mxu0 %v5529_v11 }
 0x9bf   : > { %5092 = vmatprep.subr.bf16.mxu0 %v5533_v26 }
 0xa2c   : > { %v1872_v42 = vpop.xlane.xlu1 %1871 }
 0xa2d   : > { %v1873_v43 = vmul.f32 0.0078125, %v1872_v42  ;;  %v5548_v42 = vld [vmem:[%s7207_s13 + $0x58] sm:$0xff]  }
 0xa2f   : > { %v1874_v44 = vsub.f32 %v6487_v30, %v1873_v43  ;;  %v5549_v43 = vld [vmem:[%s7207_s13 + $0xd8] sm:$0xff]  }
 0xa31   : > { %v1875_v45 = vmul.f32 %v1874_v44, %v1874_v44 }
 0xa33   : > { %v1876_v46 = vsel %vm1189_vm0, %v1875_v45, 0.0  ;;  %v5551_v45 = vld [vmem:[%s7207_s13 + $0x98] sm:$0xff]  }
 0xa34   : > { %1877 = vadd.xlane.f32.xlu1 %v1876_v46  ;;  %v5552_v46 = vld [vmem:[%s7207_s13 + $0x50] sm:$0xff]  }
 0xabd   : > { %v1878_v12 = vpop.xlane.xlu1 %1877 }
 0xabe   : > { %v1879_v14 = vmul.f32 0.0078125, %v1878_v12 }
 0xac0   : > { %v1880_v15 = vadd.f32 1e-05, %v1879_v14 }
 0xac2   : > { %5742 = vrsqrt.f32 %v1880_v15 }
 0xacf   : > { %v5743_v16 = vpop.eup %5742 }
 0xad0   : > { %v1882_v19 = vmul.f32 %v5743_v16, %v1874_v44  ;;  %v5550_v44 = vld [vmem:[%s7207_s13 + $0x18] sm:$0xff]  }
 0xad2   : > { %v1889_v22 = vmul.f32 %v4609_v17, %v1882_v19 }
 0xad4   : > { %v1896_v23 = vadd.f32 %v4610_v21, %v1889_v22 }
 0xad6   : > { %v1897_v24 = vpack.c.bf16 %v1896_v23, %v1896_v23 }
 0xad8   : > { %2145 = vmatmul.mubr.bf16.vlgmr.msra.gmra.mxu1 %v1897_v24  ;;  %2186 = vmatmul.mubr.bf16.vlgmr.msra.gmra.mxu0 %v1897_v24 }
 0xad9   : > { %5071 = vmatpush3.bf16.msra.mxu1 %v5534_v27  ;;  %5093 = vmatpush3.bf16.msra.mxu0 %v5535_v28 }
 0xada   : > { %5072 = vmatprep.subr.bf16.mxu1 %v5536_v29  ;;  %5094 = vmatprep.subr.bf16.mxu0 %v5537_v31 }
 0xadd   : > { %5073 = vmatpush3.bf16.msra.mxu1 %v5538_v32  ;;  %5095 = vmatpush3.bf16.msra.mxu0 %v5539_v33 }
 0xade   : > { %5074 = vmatprep.subr.bf16.mxu1 %v5540_v34  ;;  %5096 = vmatprep.subr.bf16.mxu0 %v5541_v35 }
 0xae1   : > { %5075 = vmatpush3.bf16.msra.mxu1 %v5542_v36  ;;  %5097 = vmatpush3.bf16.msra.mxu0 %v5543_v13 }
 0xae2   : > { %5076 = vmatprep.subr.bf16.mxu1 %v5544_v37  ;;  %5098 = vmatprep.subr.bf16.mxu0 %v5545_v39 }
 0xae5   : > { %5077 = vmatpush3.bf16.msra.mxu1 %v5546_v40  ;;  %5099 = vmatpush3.bf16.msra.mxu0 %v5547_v41 }
 0xae6   : > { %5078 = vmatprep.subr.bf16.mxu1 %v5548_v42  ;;  %5100 = vmatprep.subr.bf16.mxu0 %v5549_v43 }
 0xae9   : > { %5079 = vmatpush3.bf16.msra.mxu1 %v5550_v44  ;;  %5101 = vmatpush3.bf16.msra.mxu0 %v5551_v45 }
 0xaea   : > { %5080 = vmatprep.subr.bf16.mxu1 %v5552_v46  ;;  %5102 = vmatprep.subr.bf16.mxu0 %v5553_v47 }
 0xaed   : > { %5081 = vmatpush3.bf16.msra.mxu1 %v5554_v48  ;;  %5103 = vmatpush3.bf16.msra.mxu0 %v5555_v49 }
 0xaee   : > { %5082 = vmatprep.subr.bf16.mxu1 %v5556_v50  ;;  %5104 = vmatprep.subr.bf16.mxu0 %v5557_v51 }
 0xaf1   : > { %5083 = vmatpush3.bf16.msra.mxu1 %v5558_v52  ;;  %5105 = vmatpush3.bf16.msra.mxu0 %v5559_v53 }
 0xaf2   : > { %5084 = vmatprep.subr.bf16.mxu1 %v5560_v54  ;;  %5106 = vmatprep.subr.bf16.mxu0 %v5561_v55 }
 0xaf5   : > { %5085 = vmatpush3.bf16.msra.mxu1 %v5562_v56  ;;  %5107 = vmatpush3.bf16.msra.mxu0 %v5563_v60 }
 0xaf6   : > { %5253 = vmatprep.subr.bf16.mxu0 %v5935_v18 }
 0xb98   : > { %v2146_v5 = vpop.f32.mrf.mxu1  ;;  %v2187_v6 = vpop.f32.mrf.mxu0 }
 0xb99   : > { %v2147_v7 = vadd.f32 %v2146_v5, %v1935_v0  ;;  %v2188_v8 = vadd.f32 %v2187_v6, %v1943_v2 }
 0xb9a   : > { %v2148_v9 = vpop.f32.mrf.mxu1  ;;  %v2189_v10 = vpop.f32.mrf.mxu0 }
 0xb9b   : > { %v2194_v11 = vmul.f32 %v2147_v7, %v2147_v7  ;;  %v2196_v12 = vmul.f32 %v2188_v8, %v2188_v8  ;;  %v2149_v14 = vadd.f32 %v2148_v9, %v1939_v3  ;;  %v2190_v15 = vadd.f32 %v2189_v10, %v1947_v4 }
 0xb9c   : > { %v2150_v16 = vpop.f32.mrf.mxu1  ;;  %v2191_v17 = vpop.f32.mrf.mxu0 }
 0xb9d   : > { %v2198_v19 = vmul.f32 %v2194_v11, %v2147_v7  ;;  %v2200_v21 = vmul.f32 %v2196_v12, %v2188_v8  ;;  %v2195_v22 = vmul.f32 %v2149_v14, %v2149_v14  ;;  %v2197_v23 = vmul.f32 %v2190_v15, %v2190_v15 }
 0xb9e   : > { %v2151_v24 = vpop.f32.mrf.mxu1  ;;  %v2192_v25 = vpop.f32.mrf.mxu0 }
 0xb9f   : > { %v2202_v26 = vmul.f32 0.044715, %v2198_v19  ;;  %v2204_v27 = vmul.f32 0.044715, %v2200_v21  ;;  %v2199_v28 = vmul.f32 %v2195_v22, %v2149_v14  ;;  %v2201_v29 = vmul.f32 %v2197_v23, %v2190_v15  ;;  %v5564_v21 = vld [vmem:[%s7257_s5 + $0x168] ss:$12 sps:$4 sm:$0xff]  }
 0xba0   : > { %v5566_v22 = vld [vmem:[%s7257_s5 + $0x16c] ss:$12 sps:$4 sm:$0xff]   ;;  %v5567_v23 = vld [vmem:[%s7257_s5 + $0x170] ss:$12 sps:$4 sm:$0xff]  }
 0xba1   : > { %v2206_v31 = vadd.f32 %v2202_v26, %v2147_v7  ;;  %v2208_v32 = vadd.f32 %v2204_v27, %v2188_v8  ;;  %v2203_v33 = vmul.f32 0.044715, %v2199_v28  ;;  %v2205_v34 = vmul.f32 0.044715, %v2201_v29  ;;  %2790 = vmatprep.subr.bf16.mxu1 %v5566_v22  ;;  %v5571_v24 = vld [vmem:[%s7257_s5 + $0x158] ss:$12 sps:$4 sm:$0xff]  }
 0xba2   : > { %v5568_v25 = vld [vmem:[%s7257_s5 + $0x150] ss:$12 sps:$4 sm:$0xff]  }
 0xba3   : > { %v2210_v35 = vmul.f32 0.7978846, %v2206_v31  ;;  %v2212_v36 = vmul.f32 0.7978846, %v2208_v32  ;;  %v2207_v13 = vadd.f32 %v2203_v33, %v2149_v14  ;;  %v2209_v37 = vadd.f32 %v2205_v34, %v2190_v15  ;;  %v5574_v32 = vld [vmem:[%s7257_s5 + $0x13c] ss:$12 sps:$4 sm:$0xff]  }
 0xba4   : > { %v5572_v33 = vld [vmem:[%s7257_s5 + $0x138] ss:$12 sps:$4 sm:$0xff]   ;;  %v5575_v34 = vld [vmem:[%s7257_s5 + $0x140] ss:$12 sps:$4 sm:$0xff]  }
 0xba5   : > { %5744 = vtanh.f32 %v2210_v35  ;;  %v2211_v39 = vmul.f32 0.7978846, %v2207_v13  ;;  %v2213_v40 = vmul.f32 0.7978846, %v2209_v37  ;;  %v5576_v35 = vld [vmem:[%s7257_s5 + $0x120] ss:$12 sps:$4 sm:$0xff]  }
 0xba6   : > { %5746 = vtanh.f32 %v2212_v36  ;;  %v5578_v36 = vld [vmem:[%s7257_s5 + $0x124] ss:$12 sps:$4 sm:$0xff]   ;;  %v5579_v13 = vld [vmem:[%s7257_s5 + $0x128] ss:$12 sps:$4 sm:$0xff]   ;;  %v5582_v37 = vld [vmem:[%s7257_s5 + $0x10c] ss:$12 sps:$4 sm:$0xff]  }
 0xba7   : > { %5748 = vtanh.f32 %v2211_v39  ;;  %v5580_v39 = vld [vmem:[%s7257_s5 + $0x108] ss:$12 sps:$4 sm:$0xff]  }
 0xba8   : > { %5750 = vtanh.f32 %v2213_v40  ;;  %v5583_v40 = vld [vmem:[%s7257_s5 + $0x110] ss:$12 sps:$4 sm:$0xff]  }
 0xbb2   : > { %v5745_v41 = vpop.eup %5744 }
 0xbb3   : > { %v5747_v42 = vpop.eup %5746  ;;  %v2218_v43 = vadd.f32 1.0, %v5745_v41  ;;  %v5586_v41 = vld [vmem:[%s7257_s5 + $0xf4] ss:$12 sps:$4 sm:$0xff]  }
 0xbb4   : > { %v5749_v44 = vpop.eup %5748  ;;  %v2220_v45 = vadd.f32 1.0, %v5747_v42  ;;  %v5584_v42 = vld [vmem:[%s7257_s5 + $0xf0] ss:$12 sps:$4 sm:$0xff]  }
 0xbb5   : > { %v5751_v46 = vpop.eup %5750  ;;  %v2219_v47 = vadd.f32 1.0, %v5749_v44  ;;  %v2222_v48 = vmul.f32 0.5, %v2218_v43  ;;  %v5587_v43 = vld [vmem:[%s7257_s5 + $0xf8] ss:$12 sps:$4 sm:$0xff]   ;;  %v5590_v44 = vld [vmem:[%s7257_s5 + $0xdc] ss:$12 sps:$4 sm:$0xff]  }
 0xbb6   : > { %v2221_v49 = vadd.f32 1.0, %v5751_v46  ;;  %v2224_v50 = vmul.f32 0.5, %v2220_v45  ;;  %v5588_v45 = vld [vmem:[%s7257_s5 + $0xd8] ss:$12 sps:$4 sm:$0xff]   ;;  %v5591_v46 = vld [vmem:[%s7257_s5 + $0xe0] ss:$12 sps:$4 sm:$0xff]  }
 0xbb7   : > { %v2223_v51 = vmul.f32 0.5, %v2219_v47  ;;  %v2226_v53 = vmul.f32 %v2222_v48, %v2147_v7  ;;  %v5594_v47 = vld [vmem:[%s7257_s5 + $0xc4] ss:$12 sps:$4 sm:$0xff]   ;;  %v5592_v48 = vld [vmem:[%s7257_s5 + $0xc0] ss:$12 sps:$4 sm:$0xff]  }
 0xbb8   : > { %v2225_v52 = vmul.f32 0.5, %v2221_v49  ;;  %v2228_v55 = vmul.f32 %v2224_v50, %v2188_v8  ;;  %v5595_v49 = vld [vmem:[%s7257_s5 + $0xc8] ss:$12 sps:$4 sm:$0xff]  }
 0xbb9   : > { %v2227_v54 = vmul.f32 %v2223_v51, %v2149_v14  ;;  %v2230_v0 = vpack.c.bf16 %v2226_v53, %v2226_v53 }
 0xbba   : > { %v2229_v56 = vmul.f32 %v2225_v52, %v2190_v15  ;;  %v2232_v2 = vpack.c.bf16 %v2228_v55, %v2228_v55  ;;  %v4675_v15 = vld [vmem:[%s7208_s14] ss:$0 sm:$0xff] }
 0xbbb   : > { %v2231_v60 = vpack.c.bf16 %v2227_v54, %v2227_v54  ;;  %v4678_v54 = vld [vmem:[%s7258_s26 + $0x1] ss:$0 sm:$0xff] }
 0xbbc   : > { %v2233_v62 = vpack.c.bf16 %v2229_v56, %v2229_v56  ;;  %v4679_v56 = vld [vmem:[%s7260_s3 + $0x1] ss:$0 sm:$0xff] }
 0xbbd   : > { %2522 = vmatprep.mubr.bf16.mxu1 %v2231_v60 }
 0xbbe   : > { %2562 = vmatprep.mubr.bf16.mxu0 %v2233_v62  ;;  %2523 = vmatmul.mubr.bf16.vlgmr.msra.gmra.mxu1 %v2230_v0 }
 0xbbf   : > { %2563 = vmatmul.mubr.bf16.vlgmr.msra.gmra.mxu0 %v2232_v2  ;;  %2822 = vmatprep.mubr.bf16.mxu1 %v5936_v38  ;;  %v4712_v2 = vld [vmem:[%s7200_s6 + $0x3] sm:$0x7] }
 0xbc0   : > { %5269 = vmatprep.mubr.msk.bf16.mxu0 %vm5937_vm1, %v5935_v18  ;;  %5254 = vmatpush3.bf16.msra.mxu0 %v5567_v23 }
 0xbc1   : > { %2791 = vmatpush1.bf16.msra.mxu1 %v5564_v21  ;;  %5255 = vmatprep.subr.bf16.mxu0 %v5935_v18 }
 0xbc4   : > { %5256 = vmatpush3.bf16.msra.mxu0 %v5571_v24 }
 0xbc5   : > { %5257 = vmatprep.subr.bf16.mxu0 %v5935_v18 }
 0xbc8   : > { %5258 = vmatpush3.bf16.msra.mxu0 %v5575_v34 }
 0xbc9   : > { %5259 = vmatprep.subr.bf16.mxu0 %v5935_v18 }
 0xbcc   : > { %5260 = vmatpush3.bf16.msra.mxu0 %v5579_v13  ;;  %v5596_v13 = vld [vmem:[%s7201_s7 + $0x58] sm:$0xff]  }
 0xbcd   : > { %5261 = vmatprep.subr.bf16.mxu0 %v5935_v18 }
 0xbd0   : > { %5262 = vmatpush3.bf16.msra.mxu0 %v5583_v40 }
 0xbd1   : > { %5263 = vmatprep.subr.bf16.mxu0 %v5935_v18 }
 0xbd4   : > { %5264 = vmatpush3.bf16.msra.mxu0 %v5587_v43 }
 0xbd5   : > { %5265 = vmatprep.subr.bf16.mxu0 %v5935_v18 }
 0xbd8   : > { %5266 = vmatpush3.bf16.msra.mxu0 %v5591_v46 }
 0xbd9   : > { %5267 = vmatprep.subr.bf16.mxu0 %v5935_v18 }
 0xbdc   : > { %5268 = vmatpush3.bf16.msra.mxu0 %v5595_v49 }
 0xbdd   : > { %5285 = vmatprep.subr.bf16.mxu0 %v5935_v18 }
 0xc7e   : > { %v5086_v3 = vpop.f32.mrf.mxu1 }
 0xc7f   : > { %v5108_v4 = vpop.f32.mrf.mxu0 }
 0xc80   : > { %v5087_v5 = vpop.f32.mrf.mxu1 }
 0xc81   : > { %v5088_v6 = vadd.f32 %v5087_v5, %v5086_v3  ;;  %v5109_v7 = vpop.f32.mrf.mxu0  ;;  %v2654_v3 = vrot.slane %v4712_v2, %v6402_v59 }
 0xc82   : > { %v5110_v8 = vadd.f32 %v5109_v7, %v5108_v4  ;;  %v5089_v9 = vpop.f32.mrf.mxu1 }
 0xc83   : > { %v5111_v10 = vpop.f32.mrf.mxu0 }
 0xc84   : > { %v2565_v11 = vadd.f32 %v5110_v8, %v5088_v6  ;;  %v5090_v12 = vpop.f32.mrf.mxu1  ;;  %v2658_v6 = vrot.slane %v4712_v2, %v6408_v61 }
 0xc85   : > { %v5112_v14 = vpop.f32.mrf.mxu0  ;;  %v2650_v12 = vrot.slane %v4712_v2, %v6412_v1 }
 0xc86   : > { %v2570_v16 = vadd.f32 %v2565_v11, %v6487_v30  ;;  %v5570_v30 = vld [vmem:[%s7257_s5 + $0x154] ss:$12 sps:$4 sm:$0xff]  }
 0xc87   : > { %2792 = vmatprep.subr.bf16.mxu1 %v5570_v30 }
 0xc88   : > { %v6706_v17 = vadd.f32 %v4675_v15, %v2570_v16  ;;  %2793 = vmatpush1.bf16.msra.mxu1 %v5568_v25 }
 0xc89   : > { %2794 = vmatprep.subr.bf16.mxu1 %v5574_v32 }
 0xc8a   : > { %v2583_v19 = vsel %vm1189_vm0, %v6706_v17, 0.0 }
 0xc8b   : > { %2584 = vadd.xlane.f32.xlu1 %v2583_v19 }
 0xc8c   : > { %2795 = vmatpush1.bf16.msra.mxu1 %v5572_v33 }
 0xc8d   : > { %2796 = vmatprep.subr.bf16.mxu1 %v5578_v36 }
 0xc90   : > { %2797 = vmatpush1.bf16.msra.mxu1 %v5576_v35 }
 0xc91   : > { %2798 = vmatprep.subr.bf16.mxu1 %v5582_v37  ;;  %v5597_v37 = vld [vmem:[%s7201_s7 + $0x50] sm:$0xff]  }
 0xc94   : > { %2799 = vmatpush1.bf16.msra.mxu1 %v5580_v39  ;;  %v5598_v39 = vld [vmem:[%s7201_s7 + $0x48] sm:$0xff]  }
 0xc95   : > { %2800 = vmatprep.subr.bf16.mxu1 %v5586_v41 }
 0xc98   : > { %2801 = vmatpush1.bf16.msra.mxu1 %v5584_v42 }
 0xc99   : > { %2802 = vmatprep.subr.bf16.mxu1 %v5590_v44 }
 0xc9c   : > { %2803 = vmatpush1.bf16.msra.mxu1 %v5588_v45 }
 0xc9d   : > { %2804 = vmatprep.subr.bf16.mxu1 %v5594_v47  ;;  %v5599_v47 = vld [vmem:[%s7201_s7 + $0x40] sm:$0xff]  }
 0xca0   : > { %2805 = vmatpush1.bf16.msra.mxu1 %v5592_v48 }
 0xca1   : > { %5273 = vmatprep.subr.bf16.mxu1 %v5935_v18 }
 0xd14   : > { %v2585_v26 = vpop.xlane.xlu1 %2584 }
 0xd15   : > { %v2586_v27 = vmul.f32 0.0078125, %v2585_v26 }
 0xd17   : > { %v2587_v28 = vsub.f32 %v6706_v17, %v2586_v27 }
 0xd19   : > { %v2588_v29 = vmul.f32 %v2587_v28, %v2587_v28 }
 0xd1b   : > { %v2589_v31 = vsel %vm1189_vm0, %v2588_v29, 0.0 }
 0xd1c   : > { %2590 = vadd.xlane.f32.xlu1 %v2589_v31 }
 0xda5   : > { %v2591_v50 = vpop.xlane.xlu1 %2590 }
 0xda6   : > { %v2592_v51 = vmul.f32 0.0078125, %v2591_v50 }
 0xda8   : > { %v2593_v52 = vadd.f32 1e-05, %v2592_v51 }
 0xdaa   : > { %5752 = vrsqrt.f32 %v2593_v52 }
 0xdb7   : > { %v5753_v53 = vpop.eup %5752 }
 0xdb8   : > { %v2595_v55 = vmul.f32 %v5753_v53, %v2587_v28 }
 0xdba   : > { %v2602_v60 = vmul.f32 %v4678_v54, %v2595_v55 }
 0xdbc   : > { %v2609_v62 = vadd.f32 %v4679_v56, %v2602_v60 }
 0xdbe   : > { %v2610_v0 = vpack.c.bf16 %v2609_v62, %v2609_v62 }
 0xdc0   : > { %2823 = vmatmul.mubr.bf16.vlgmr.msra.gmra.mxu1 %v2610_v0  ;;  %5270 = vmatmul.mubr.bf16.vlgmr.msra.gmra.mxu0 %v2610_v0 }
 0xdc1   : > { %5275 = vmatprep.mubr.msk.bf16.mxu1 %vm5937_vm1, %v5935_v18  ;;  %5293 = vmatprep.mubr.msk.bf16.mxu0 %vm5937_vm1, %v5935_v18 }
 0xdc2   : > { %5286 = vmatpush3.bf16.msra.mxu0 %v5596_v13  ;;  %v5606_v13 = vld [vmem:[%s7205_s11 + $0x1e4] ss:$16 sps:$4 sm:$0xff]  }
 0xdc3   : > { %5287 = vmatprep.subr.bf16.mxu0 %v5935_v18 }
 0xdc6   : > { %5288 = vmatpush3.bf16.msra.mxu0 %v5597_v37  ;;  %v5607_v37 = vld [vmem:[%s7205_s11 + $0x1e8] ss:$16 sps:$4 sm:$0xff]  }
 0xdc7   : > { %5289 = vmatprep.subr.bf16.mxu0 %v5935_v18 }
 0xdca   : > { %5290 = vmatpush3.bf16.msra.mxu0 %v5598_v39  ;;  %v5612_v39 = vld [vmem:[%s7205_s11 + $0x1c4] ss:$16 sps:$4 sm:$0xff]  }
 0xdcb   : > { %5291 = vmatprep.subr.bf16.mxu0 %v5935_v18 }
 0xdce   : > { %5292 = vmatpush3.bf16.msra.mxu0 %v5599_v47 }
 0xdcf   : > { %5309 = vmatprep.subr.bf16.mxu0 %v5935_v18 }
 0xe80   : > { %v2824_v4 = vpop.f32.mrf.mxu1  ;;  %v2865_v5 = vpop.f32.mrf.mxu0 }
 0xe81   : > { %v2866_v15 = vadd.f32 %v2865_v5, %v2658_v6  ;;  %v2825_v22 = vadd.f32 %v2824_v4, %v2650_v12  ;;  %v5601_v12 = vld [vmem:[%s7201_s7 + $0x70] sm:$0xff]  }
 0xe82   : > { %v2826_v7 = vpop.f32.mrf.mxu1  ;;  %v5271_v8 = vpop.f32.mrf.mxu0 }
 0xe83   : > { %v2827_v9 = vadd.f32 %v2826_v7, %v2654_v3  ;;  %v2951_v23 = vpack.c.bf16 %v2866_v15, %v2866_v15  ;;  %v2890_v30 = vpack.c.bf16 %v2825_v22, %v2825_v22  ;;  %v5603_v22 = vld [vmem:[%s7201_s7 + $0x60] sm:$0xff]  }
 0xe84   : > { %v2828_v10 = vpop.f32.mrf.mxu1  ;;  %v2868_v11 = vpop.f32.mrf.mxu0 }
 0xe85   : > { %v2891_v14 = vpack.c.bf16 %v2827_v9, %v2827_v9  ;;  %v2956_v24 = vand.u32 %v2951_v23, %v6421_v20  ;;  %v5600_v10 = vld [vmem:[%s7201_s7 + $0x78] sm:$0xff]  }
 0xe86   : > { %v2829_v16 = vpop.f32.mrf.mxu1  ;;  %v5272_v19 = vpop.f32.mrf.mxu0 }
 0xe87   : > { %v2896_v21 = vsel %vm1496_vm2, %v2891_v14, 0  ;;  %3077 = vrot.lane.b32.xlu0 %v2891_v14, %s7261_s25  ;;  %v5602_v14 = vld [vmem:[%s7201_s7 + $0x68] sm:$0xff]  }
 0xe88   : > { %5274 = vmatpush3.bf16.xpose.msra.mxu1 %v2896_v21 }
 0xe89   : > { %5279 = vmatprep.subr.bf16.mxu1 %v5935_v18 }
 0xe8f   : > { %5276 = vmatmul.mubr.msk.bf16.vlgmr.msra.gmra.mxu1 %vm1496_vm2, %v2890_v30 }
 0xe90   : > { %5280 = vmatpush3.bf16.msra.mxu1 %v2956_v24  ;;  %5281 = vmatprep.mubr.msk.bf16.mxu1 %vm5937_vm1, %v5935_v18 }
 0xe91   : > { %5297 = vmatprep.subr.bf16.mxu1 %v5935_v18 }
 0xef9   : > { %v3078_v43 = vpop.permute.xlu0 %3077 }
 0xefa   : > { %v3083_v45 = vsel %vm1496_vm2, %v3078_v43, 0 }
 0xf4f   : > { %v2932_v25 = vpop.f32.mrf.mxu1 }
 0xf50   : > { %v2938_v26 = vmul.f32 0.125, %v2932_v25 }
 0xf51   : > { %v5277_v27 = vpop.f32.mrf.mxu1 }
 0xf52   : > { %v2939_v28 = vsel %vm1544_vm5, %v2938_v26, -inf }
 0xf53   : > { %2940 = vmax.xlane.f32.xlu1 %v2939_v28  ;;  %v2935_v29 = vpop.f32.mrf.mxu1 }
 0xf55   : > { %v5278_v31 = vpop.f32.mrf.mxu1 }
 0xfdc   : > { %v2941_v32 = vpop.xlane.xlu1 %2940 }
 0xfdd   : > { %v2942_v33 = vsub.f32 %v2938_v26, %v2941_v32  ;;  %v4761_v26 = vld [vmem:[%s7202_s8 + $0x1] ss:$0 sm:$0xff] }
 0xfdf   : > { %v2943_v34 = vmul.f32 1.442695, %v2942_v33 }
 0xfe1   : > { %5754 = vpow2.f32 %v2943_v34 }
 0xfee   : > { %v5755_v35 = vpop.eup %5754 }
 0xfef   : > { %v2945_v36 = vsel %vm1544_vm5, %v5755_v35, 0.0 }
 0xff0   : > { %2946 = vadd.xlane.f32.xlu1 %v2945_v36  ;;  %v5604_v36 = vld [vmem:[%s7205_s11 + $0x1e0] ss:$16 sps:$4 sm:$0xff]  }
0x1001   : > { %3074 = vrot.lane.b32.xlu1 %v2890_v30, %s7261_s25 }
0x1079   : > { %v2947_v40 = vpop.xlane.xlu1 %2946 }
0x107a   : > { %5756 = vrcp.f32 %v2947_v40  ;;  %v5615_v40 = vld [vmem:[%s7205_s11 + $0x1cc] ss:$16 sps:$4 sm:$0xff]  }
0x107d   : > { %v3075_v46 = vpop.permute.xlu1 %3074 }
0x1087   : > { %v5757_v41 = vpop.eup %5756 }
0x1088   : > { %v2949_v42 = vmul.f32 %v5757_v41, %v5755_v35  ;;  %v5610_v41 = vld [vmem:[%s7205_s11 + $0x1c0] ss:$16 sps:$4 sm:$0xff]  }
0x108a   : > { %v2950_v44 = vpack.c.bf16 %v2949_v42, %v2949_v42  ;;  %v5613_v42 = vld [vmem:[%s7205_s11 + $0x1c8] ss:$16 sps:$4 sm:$0xff]  }
0x108c   : > { %5282 = vmatmul.mubr.msk.bf16.vlgmr.msra.gmra.mxu1 %vm1558_vm6, %v2950_v44 }
0x108d   : > { %5298 = vmatpush3.bf16.xpose.msra.mxu1 %v3083_v45  ;;  %5299 = vmatprep.mubr.msk.bf16.mxu1 %vm5937_vm1, %v5935_v18 }
0x108e   : > { %5303 = vmatprep.subr.bf16.mxu1 %v5935_v18 }
0x1094   : > { %5300 = vmatmul.mubr.msk.bf16.vlgmr.msra.gmra.mxu1 %vm1496_vm2, %v3075_v46 }
0x1095   : > { %5305 = vmatprep.mubr.msk.bf16.mxu1 %vm5937_vm1, %v5935_v18 }
0x114c   : > { %v2992_v48 = vpop.f32.mrf.mxu1 }
0x114d   : > { %v2998_v49 = vpack.c.bf16 %v2992_v48, %v2992_v48  ;;  %v5618_v48 = vld [vmem:[%s7205_s11 + $0x1a4] ss:$16 sps:$4 sm:$0xff]  }
0x114e   : > { %v5283_v50 = vpop.f32.mrf.mxu1 }
0x114f   : > { %5294 = vmatmul.mubr.msk.bf16.vlgmr.msra.gmra.mxu0 %vm1496_vm2, %v2998_v49  ;;  %v5621_v49 = vld [vmem:[%s7205_s11 + $0x1ac] ss:$16 sps:$4 sm:$0xff]   ;;  %v5616_v50 = vld [vmem:[%s7205_s11 + $0x1a0] ss:$16 sps:$4 sm:$0xff]  }
0x1150   : > { %v2995_v51 = vpop.f32.mrf.mxu1  ;;  %5317 = vmatprep.mubr.msk.bf16.mxu0 %vm5937_vm1, %v5935_v18  ;;  %5310 = vmatpush3.bf16.msra.mxu0 %v5600_v10  ;;  %v5648_v10 = vld [vmem:[%s7205_s11 + $0x104] ss:$16 sps:$4 sm:$0xff]  }
0x1151   : > { %5311 = vmatprep.subr.bf16.mxu0 %v5935_v18  ;;  %v5619_v51 = vld [vmem:[%s7205_s11 + $0x1a8] ss:$16 sps:$4 sm:$0xff]  }
0x1152   : > { %v5284_v52 = vpop.f32.mrf.mxu1 }
0x1153   : > { %v5622_v52 = vld [vmem:[%s7205_s11 + $0x180] ss:$16 sps:$4 sm:$0xff]  }
0x1154   : > { %v3119_v53 = vpop.f32.mrf.mxu1  ;;  %5312 = vmatpush3.bf16.msra.mxu0 %v5601_v12  ;;  %v5646_v12 = vld [vmem:[%s7205_s11 + $0x100] ss:$16 sps:$4 sm:$0xff]  }
0x1155   : > { %v3125_v54 = vmul.f32 0.125, %v3119_v53  ;;  %5313 = vmatprep.subr.bf16.mxu0 %v5935_v18  ;;  %v5624_v53 = vld [vmem:[%s7205_s11 + $0x184] ss:$16 sps:$4 sm:$0xff]  }
0x1156   : > { %v5301_v55 = vpop.f32.mrf.mxu1 }
0x1157   : > { %v3126_v56 = vsel %vm1544_vm5, %v3125_v54, -inf  ;;  %v5627_v55 = vld [vmem:[%s7205_s11 + $0x18c] ss:$16 sps:$4 sm:$0xff]  }
0x1158   : > { %3127 = vmax.xlane.f32.xlu0 %v3126_v56  ;;  %v3122_v60 = vpop.f32.mrf.mxu1  ;;  %5314 = vmatpush3.bf16.msra.mxu0 %v5602_v14  ;;  %v5630_v56 = vld [vmem:[%s7205_s11 + $0x164] ss:$16 sps:$4 sm:$0xff]  }
0x1159   : > { %5315 = vmatprep.subr.bf16.mxu0 %v5935_v18  ;;  %v5633_v60 = vld [vmem:[%s7205_s11 + $0x16c] ss:$16 sps:$4 sm:$0xff]  }
0x115a   : > { %v5302_v62 = vpop.f32.mrf.mxu1 }
0x115b   : > { %v5628_v62 = vld [vmem:[%s7205_s11 + $0x160] ss:$16 sps:$4 sm:$0xff]  }
0x115c   : > { %5316 = vmatpush3.bf16.msra.mxu0 %v5603_v22 }
0x116e   : > { %3139 = vrot.lane.b32.xlu0 %v2951_v23, %s7261_s25 }
0x11e1   : > { %v3128_v0 = vpop.xlane.xlu0 %3127 }
0x11e2   : > { %v3129_v2 = vsub.f32 %v3125_v54, %v3128_v0  ;;  %v5625_v54 = vld [vmem:[%s7205_s11 + $0x188] ss:$16 sps:$4 sm:$0xff]  }
0x11e3   : > { %v5631_v0 = vld [vmem:[%s7205_s11 + $0x168] ss:$16 sps:$4 sm:$0xff]  }
0x11e4   : > { %v3130_v3 = vmul.f32 1.442695, %v3129_v2  ;;  %v5636_v2 = vld [vmem:[%s7205_s11 + $0x144] ss:$16 sps:$4 sm:$0xff]  }
0x11e5   : > { %v3140_v4 = vpop.permute.xlu0 %3139 }
0x11e6   : > { %5758 = vpow2.f32 %v3130_v3  ;;  %v3145_v5 = vand.u32 %v3140_v4, %v6421_v20  ;;  %v5639_v3 = vld [vmem:[%s7205_s11 + $0x14c] ss:$16 sps:$4 sm:$0xff]   ;;  %v5634_v4 = vld [vmem:[%s7205_s11 + $0x140] ss:$16 sps:$4 sm:$0xff]  }
0x11e8   : > { %5304 = vmatpush3.bf16.msra.mxu1 %v3145_v5  ;;  %v5637_v5 = vld [vmem:[%s7205_s11 + $0x148] ss:$16 sps:$4 sm:$0xff]  }
0x11e9   : > { %3505 = vmatprep.subr.bf16.mxu1 %v5606_v13  ;;  %v5662_v13 = vld [vmem:[%s7207_s13 + $0x128] sm:$0xff]  }
0x11f3   : > { %v5759_v6 = vpop.eup %5758 }
0x11f4   : > { %v3132_v7 = vsel %vm1544_vm5, %v5759_v6, 0.0 }
0x11f5   : > { %3133 = vadd.xlane.f32.xlu1 %v3132_v7  ;;  %v5645_v7 = vld [vmem:[%s7205_s11 + $0x12c] ss:$16 sps:$4 sm:$0xff]  }
0x120f   : > { %v3060_v8 = vpop.f32.mrf.mxu0 }
0x1210   : > { %v3072_v27 = vadd.f32 %v4761_v26, %v3060_v8  ;;  %v5640_v8 = vld [vmem:[%s7205_s11 + $0x120] ss:$16 sps:$4 sm:$0xff]   ;;  %v5653_v26 = vld [vmem:[%s7207_s13 + $0x1f8] sm:$0xff]  }
0x1211   : > { %v5295_v9 = vpop.f32.mrf.mxu0 }
0x1212   : > { %v5643_v9 = vld [vmem:[%s7205_s11 + $0x128] ss:$16 sps:$4 sm:$0xff]  }
0x1213   : > { %v3063_v11 = vpop.f32.mrf.mxu0 }
0x1214   : > { %v5651_v11 = vld [vmem:[%s7205_s11 + $0x10c] ss:$16 sps:$4 sm:$0xff]  }
0x1215   : > { %v5296_v20 = vpop.f32.mrf.mxu0 }
0x1216   : > { %v5649_v20 = vld [vmem:[%s7205_s11 + $0x108] ss:$16 sps:$4 sm:$0xff]  }
0x127e   : > { %v3134_v15 = vpop.xlane.xlu1 %3133 }
0x127f   : > { %5760 = vrcp.f32 %v3134_v15 }
0x128c   : > { %v5761_v16 = vpop.eup %5760 }
0x128d   : > { %v3136_v19 = vmul.f32 %v5761_v16, %v5759_v6  ;;  %v5642_v6 = vld [vmem:[%s7205_s11 + $0x124] ss:$16 sps:$4 sm:$0xff]  }
0x128f   : > { %v3137_v21 = vpack.c.bf16 %v3136_v19, %v3136_v19 }
0x1291   : > { %5306 = vmatmul.mubr.msk.bf16.vlgmr.msra.gmra.mxu1 %vm1558_vm6, %v3137_v21  ;;  %v4770_v21 = vld [vmem:[%s7203_s9 + $0x1] ss:$0 sm:$0xff] }
0x1292   : > { %3537 = vmatprep.mubr.bf16.mxu1 %v5936_v38  ;;  %3506 = vmatpush1.bf16.msra.mxu1 %v5604_v36  ;;  %v5661_v36 = vld [vmem:[%s7207_s13 + $0x1e8] sm:$0xff]  }
0x1293   : > { %3507 = vmatprep.subr.bf16.mxu1 %v5612_v39  ;;  %v5665_v39 = vld [vmem:[%s7207_s13 + $0x1e0] sm:$0xff]  }
0x1296   : > { %3508 = vmatpush1.bf16.msra.mxu1 %v5610_v41  ;;  %v5667_v41 = vld [vmem:[%s7207_s13 + $0x1a0] sm:$0xff]  }
0x1297   : > { %3509 = vmatprep.subr.bf16.mxu1 %v5618_v48  ;;  %v5674_v48 = vld [vmem:[%s7207_s13 + $0x110] sm:$0xff]  }
0x129a   : > { %3510 = vmatpush1.bf16.msra.mxu1 %v5616_v50  ;;  %v5676_v50 = vld [vmem:[%s7207_s13 + $0x148] sm:$0xff]  }
0x129b   : > { %3511 = vmatprep.subr.bf16.mxu1 %v5624_v53  ;;  %v5679_v53 = vld [vmem:[%s7207_s13 + $0x188] sm:$0xff]  }
0x129e   : > { %3512 = vmatpush1.bf16.msra.mxu1 %v5622_v52  ;;  %v5678_v52 = vld [vmem:[%s7207_s13 + $0x108] sm:$0xff]  }
0x129f   : > { %3513 = vmatprep.subr.bf16.mxu1 %v5630_v56  ;;  %v5682_v56 = vld [vmem:[%s7207_s13 + $0x100] sm:$0xff]  }
0x12a2   : > { %3514 = vmatpush1.bf16.msra.mxu1 %v5628_v62  ;;  %v4804_v62 = vld [vmem:[%s7206_s12 + $0x4] sm:$0xf] }
0x12a3   : > { %3515 = vmatprep.subr.bf16.mxu1 %v5636_v2  ;;  %v3336_v2 = vrot.slane %v4804_v62, %v6408_v61 }
0x12a6   : > { %3516 = vmatpush1.bf16.msra.mxu1 %v5634_v4  ;;  %v3340_v4 = vrot.slane %v4804_v62, %v6693_v63 }
0x12a7   : > { %3517 = vmatprep.subr.bf16.mxu1 %v5642_v6 }
0x12aa   : > { %3518 = vmatpush1.bf16.msra.mxu1 %v5640_v8 }
0x12ab   : > { %3519 = vmatprep.subr.bf16.mxu1 %v5648_v10 }
0x12ae   : > { %3520 = vmatpush1.bf16.msra.mxu1 %v5646_v12 }
0x1351   : > { %v3181_v23 = vpop.f32.mrf.mxu1 }
0x1352   : > { %v3187_v30 = vpack.c.bf16 %v3181_v23, %v3181_v23  ;;  %v4771_v23 = vld [vmem:[#allocation2 + $0x1] ss:$0 sm:$0xff] }
0x1353   : > { %v5307_v24 = vpop.f32.mrf.mxu1 }
0x1354   : > { %5318 = vmatmul.mubr.msk.bf16.vlgmr.msra.gmra.mxu0 %vm1496_vm2, %v3187_v30 }
0x1355   : > { %v3184_v18 = vpop.f32.mrf.mxu1  ;;  %3578 = vmatprep.mubr.bf16.mxu0 %v5936_v38 }
0x1357   : > { %v5308_v25 = vpop.f32.mrf.mxu1 }
0x1358   : > { %v5652_v25 = vld [vmem:[%s7207_s13 + $0x178] sm:$0xff]  }
0x1359   : > { %5141 = vmatprep.subr.bf16.mxu1 %v5652_v25 }
0x1414   : > { %v3249_v28 = vpop.f32.mrf.mxu0 }
0x1415   : > { %v3255_v29 = vadd.f32 %v3249_v28, %v3072_v27  ;;  %v5654_v27 = vld [vmem:[%s7207_s13 + $0x138] sm:$0xff]  }
0x1416   : > { %v5319_v31 = vpop.f32.mrf.mxu0  ;;  %v5655_v28 = vld [vmem:[%s7207_s13 + $0x1b8] sm:$0xff]  }
0x1417   : > { %v6874_v32 = vadd.f32 %v3255_v29, %v6706_v17  ;;  %v5609_v17 = vld [vmem:[%s7205_s11 + $0x1ec] ss:$16 sps:$4 sm:$0xff]   ;;  %v5656_v29 = vld [vmem:[%s7207_s13 + $0x170] sm:$0xff]  }
0x1418   : > { %v3252_v33 = vpop.f32.mrf.mxu0  ;;  %3546 = vmatprep.subr.bf16.mxu0 %v5609_v17  ;;  %v5657_v31 = vld [vmem:[%s7207_s13 + $0x1f0] sm:$0xff]   ;;  %v5664_v17 = vld [vmem:[%s7207_s13 + $0x160] sm:$0xff]  }
0x1419   : > { %v3261_v34 = vsel %vm1189_vm0, %v6874_v32, 0.0  ;;  %3547 = vmatpush1.bf16.msra.mxu0 %v5607_v37  ;;  %v5658_v33 = vld [vmem:[%s7207_s13 + $0x130] sm:$0xff]   ;;  %v5663_v37 = vld [vmem:[%s7207_s13 + $0x1a8] sm:$0xff]  }
0x141a   : > { %3262 = vadd.xlane.f32.xlu1 %v3261_v34  ;;  %v5320_v35 = vpop.f32.mrf.mxu0  ;;  %3548 = vmatprep.subr.bf16.mxu0 %v5615_v40  ;;  %v5659_v34 = vld [vmem:[%s7207_s13 + $0x1b0] sm:$0xff]   ;;  %v5666_v40 = vld [vmem:[%s7207_s13 + $0x120] sm:$0xff]  }
0x141b   : > { %v5660_v35 = vld [vmem:[%s7207_s13 + $0x168] sm:$0xff]  }
0x141d   : > { %3549 = vmatpush1.bf16.msra.mxu0 %v5613_v42  ;;  %v5668_v42 = vld [vmem:[%s7207_s13 + $0x158] sm:$0xff]  }
0x141e   : > { %3550 = vmatprep.subr.bf16.mxu0 %v5621_v49  ;;  %v5675_v49 = vld [vmem:[%s7207_s13 + $0x190] sm:$0xff]  }
0x1421   : > { %3551 = vmatpush1.bf16.msra.mxu0 %v5619_v51  ;;  %v5677_v51 = vld [vmem:[%s7207_s13 + $0x1c8] sm:$0xff]  }
0x1422   : > { %3552 = vmatprep.subr.bf16.mxu0 %v5627_v55  ;;  %v5681_v55 = vld [vmem:[%s7207_s13 + $0x1c0] sm:$0xff]  }
0x1425   : > { %3553 = vmatpush1.bf16.msra.mxu0 %v5625_v54  ;;  %v5680_v54 = vld [vmem:[%s7207_s13 + $0x140] sm:$0xff]  }
0x1426   : > { %3554 = vmatprep.subr.bf16.mxu0 %v5633_v60  ;;  %v5683_v60 = vld [vmem:[%s7207_s13 + $0x180] sm:$0xff]  }
0x1429   : > { %3555 = vmatpush1.bf16.msra.mxu0 %v5631_v0  ;;  %v3328_v0 = vrot.slane %v4804_v62, %v6412_v1 }
0x142a   : > { %3556 = vmatprep.subr.bf16.mxu0 %v5639_v3  ;;  %v3332_v3 = vrot.slane %v4804_v62, %v6402_v59 }
0x142d   : > { %3557 = vmatpush1.bf16.msra.mxu0 %v5637_v5 }
0x142e   : > { %3558 = vmatprep.subr.bf16.mxu0 %v5645_v7 }
0x1431   : > { %3559 = vmatpush1.bf16.msra.mxu0 %v5643_v9 }
0x1432   : > { %3560 = vmatprep.subr.bf16.mxu0 %v5651_v11 }
0x1435   : > { %3561 = vmatpush1.bf16.msra.mxu0 %v5649_v20 }
0x1436   : > { %5163 = vmatprep.subr.bf16.mxu0 %v5653_v26 }
0x14a3   : > { %v3263_v43 = vpop.xlane.xlu1 %3262 }
0x14a4   : > { %v3264_v44 = vmul.f32 0.0078125, %v3263_v43  ;;  %v5669_v43 = vld [vmem:[%s7207_s13 + $0x1d8] sm:$0xff]  }
0x14a6   : > { %v3265_v45 = vsub.f32 %v6874_v32, %v3264_v44  ;;  %v5670_v44 = vld [vmem:[%s7207_s13 + $0x118] sm:$0xff]  }
0x14a8   : > { %v3266_v46 = vmul.f32 %v3265_v45, %v3265_v45 }
0x14aa   : > { %v3267_v47 = vsel %vm1189_vm0, %v3266_v46, 0.0  ;;  %v5672_v46 = vld [vmem:[%s7207_s13 + $0x150] sm:$0xff]  }
0x14ab   : > { %3268 = vadd.xlane.f32.xlu0 %v3267_v47  ;;  %v5673_v47 = vld [vmem:[%s7207_s13 + $0x1d0] sm:$0xff]  }
0x1534   : > { %v3269_v14 = vpop.xlane.xlu0 %3268 }
0x1535   : > { %v3270_v15 = vmul.f32 0.0078125, %v3269_v14 }
0x1537   : > { %v3271_v16 = vadd.f32 1e-05, %v3270_v15 }
0x1539   : > { %5762 = vrsqrt.f32 %v3271_v16 }
0x1546   : > { %v5763_v19 = vpop.eup %5762 }
0x1547   : > { %v3273_v22 = vmul.f32 %v5763_v19, %v3265_v45  ;;  %v5671_v45 = vld [vmem:[%s7207_s13 + $0x198] sm:$0xff]  }
0x1549   : > { %v3280_v30 = vmul.f32 %v4770_v21, %v3273_v22 }
0x154b   : > { %v3287_v24 = vadd.f32 %v4771_v23, %v3280_v30 }
0x154d   : > { %v3288_v18 = vpack.c.bf16 %v3287_v24, %v3287_v24 }
0x154f   : > { %3538 = vmatmul.mubr.bf16.vlgmr.msra.gmra.mxu1 %v3288_v18  ;;  %3579 = vmatmul.mubr.bf16.vlgmr.msra.gmra.mxu0 %v3288_v18 }
0x1550   : > { %5142 = vmatpush3.bf16.msra.mxu1 %v5654_v27  ;;  %5164 = vmatpush3.bf16.msra.mxu0 %v5655_v28 }
0x1551   : > { %5143 = vmatprep.subr.bf16.mxu1 %v5656_v29  ;;  %5165 = vmatprep.subr.bf16.mxu0 %v5657_v31 }
0x1554   : > { %5144 = vmatpush3.bf16.msra.mxu1 %v5658_v33  ;;  %5166 = vmatpush3.bf16.msra.mxu0 %v5659_v34 }
0x1555   : > { %5145 = vmatprep.subr.bf16.mxu1 %v5660_v35  ;;  %5167 = vmatprep.subr.bf16.mxu0 %v5661_v36 }
0x1558   : > { %5146 = vmatpush3.bf16.msra.mxu1 %v5662_v13  ;;  %5168 = vmatpush3.bf16.msra.mxu0 %v5663_v37 }
0x1559   : > { %5147 = vmatprep.subr.bf16.mxu1 %v5664_v17  ;;  %5169 = vmatprep.subr.bf16.mxu0 %v5665_v39 }
0x155c   : > { %5148 = vmatpush3.bf16.msra.mxu1 %v5666_v40  ;;  %5170 = vmatpush3.bf16.msra.mxu0 %v5667_v41 }
0x155d   : > { %5149 = vmatprep.subr.bf16.mxu1 %v5668_v42  ;;  %5171 = vmatprep.subr.bf16.mxu0 %v5669_v43 }
0x1560   : > { %5150 = vmatpush3.bf16.msra.mxu1 %v5670_v44  ;;  %5172 = vmatpush3.bf16.msra.mxu0 %v5671_v45 }
0x1561   : > { %5151 = vmatprep.subr.bf16.mxu1 %v5672_v46  ;;  %5173 = vmatprep.subr.bf16.mxu0 %v5673_v47 }
0x1564   : > { %5152 = vmatpush3.bf16.msra.mxu1 %v5674_v48  ;;  %5174 = vmatpush3.bf16.msra.mxu0 %v5675_v49 }
0x1565   : > { %5153 = vmatprep.subr.bf16.mxu1 %v5676_v50  ;;  %5175 = vmatprep.subr.bf16.mxu0 %v5677_v51 }
0x1568   : > { %5154 = vmatpush3.bf16.msra.mxu1 %v5678_v52  ;;  %5176 = vmatpush3.bf16.msra.mxu0 %v5679_v53 }
0x1569   : > { %5155 = vmatprep.subr.bf16.mxu1 %v5680_v54  ;;  %5177 = vmatprep.subr.bf16.mxu0 %v5681_v55 }
0x156c   : > { %5156 = vmatpush3.bf16.msra.mxu1 %v5682_v56  ;;  %5178 = vmatpush3.bf16.msra.mxu0 %v5683_v60 }
0x160f   : > { %v3539_v5 = vpop.f32.mrf.mxu1  ;;  %v3580_v6 = vpop.f32.mrf.mxu0 }
0x1610   : > { %v3540_v7 = vadd.f32 %v3539_v5, %v3328_v0  ;;  %v3581_v8 = vadd.f32 %v3580_v6, %v3336_v2 }
0x1611   : > { %v3541_v9 = vpop.f32.mrf.mxu1  ;;  %v3582_v10 = vpop.f32.mrf.mxu0 }
0x1612   : > { %v3587_v11 = vmul.f32 %v3540_v7, %v3540_v7  ;;  %v3589_v12 = vmul.f32 %v3581_v8, %v3581_v8  ;;  %v3542_v20 = vadd.f32 %v3541_v9, %v3332_v3  ;;  %v3583_v14 = vadd.f32 %v3582_v10, %v3340_v4 }
0x1613   : > { %v3543_v15 = vpop.f32.mrf.mxu1  ;;  %v3584_v16 = vpop.f32.mrf.mxu0 }
0x1614   : > { %v3591_v19 = vmul.f32 %v3587_v11, %v3540_v7  ;;  %v3593_v21 = vmul.f32 %v3589_v12, %v3581_v8  ;;  %v3588_v22 = vmul.f32 %v3542_v20, %v3542_v20  ;;  %v3590_v23 = vmul.f32 %v3583_v14, %v3583_v14  ;;  %v4934_v12 = vld [vmem:[%s7208_s14 + $0x1] ss:$0 sm:$0xff]  ;;  %v5684_v15 = vld [vmem:[#allocation5 + $0xe0] ss:$16 sps:$4 sm:$0xff]   ;;  %v5686_v16 = vld [vmem:[#allocation5 + $0xe4] ss:$16 sps:$4 sm:$0xff]  }
0x1615   : > { %v3544_v30 = vpop.f32.mrf.mxu1  ;;  %v3585_v24 = vpop.f32.mrf.mxu0  ;;  %4218 = vmatprep.subr.bf16.mxu1 %v5686_v16 }
0x1616   : > { %v3595_v18 = vmul.f32 0.044715, %v3591_v19  ;;  %v3597_v25 = vmul.f32 0.044715, %v3593_v21  ;;  %v3592_v26 = vmul.f32 %v3588_v22, %v3542_v20  ;;  %v3594_v27 = vmul.f32 %v3590_v23, %v3583_v14  ;;  %v5687_v19 = vld [vmem:[#allocation5 + $0xe8] ss:$16 sps:$4 sm:$0xff]  }
0x1617   : > { %v5689_v21 = vld [vmem:[#allocation5 + $0xec] ss:$16 sps:$4 sm:$0xff]   ;;  %v5692_v22 = vld [vmem:[#allocation5 + $0xc4] ss:$16 sps:$4 sm:$0xff]   ;;  %v5690_v30 = vld [vmem:[#allocation5 + $0xc0] ss:$16 sps:$4 sm:$0xff]  }
0x1618   : > { %v3599_v28 = vadd.f32 %v3595_v18, %v3540_v7  ;;  %v3601_v29 = vadd.f32 %v3597_v25, %v3581_v8  ;;  %v3596_v31 = vmul.f32 0.044715, %v3592_v26  ;;  %v3598_v33 = vmul.f32 0.044715, %v3594_v27  ;;  %v5695_v23 = vld [vmem:[#allocation5 + $0xcc] ss:$16 sps:$4 sm:$0xff]   ;;  %4259 = vmatprep.subr.bf16.mxu0 %v5689_v21 }
0x1619   : > { %v5693_v24 = vld [vmem:[#allocation5 + $0xc8] ss:$16 sps:$4 sm:$0xff]  }
0x161a   : > { %v3603_v34 = vmul.f32 0.7978846, %v3599_v28  ;;  %v3605_v35 = vmul.f32 0.7978846, %v3601_v29  ;;  %v3600_v36 = vadd.f32 %v3596_v31, %v3542_v20  ;;  %v3602_v13 = vadd.f32 %v3598_v33, %v3583_v14  ;;  %v5698_v28 = vld [vmem:[#allocation5 + $0xa4] ss:$16 sps:$4 sm:$0xff]  }
0x161b   : > { %v5701_v29 = vld [vmem:[#allocation5 + $0xac] ss:$16 sps:$4 sm:$0xff]   ;;  %v5696_v31 = vld [vmem:[#allocation5 + $0xa0] ss:$16 sps:$4 sm:$0xff]   ;;  %v5699_v33 = vld [vmem:[#allocation5 + $0xa8] ss:$16 sps:$4 sm:$0xff]  }
0x161c   : > { %5764 = vtanh.f32 %v3603_v34  ;;  %v3604_v37 = vmul.f32 0.7978846, %v3600_v36  ;;  %v3606_v17 = vmul.f32 0.7978846, %v3602_v13  ;;  %v5704_v34 = vld [vmem:[#allocation5 + $0x84] ss:$16 sps:$4 sm:$0xff]  }
0x161d   : > { %5766 = vtanh.f32 %v3605_v35  ;;  %v5707_v35 = vld [vmem:[#allocation5 + $0x8c] ss:$16 sps:$4 sm:$0xff]   ;;  %v5702_v36 = vld [vmem:[#allocation5 + $0x80] ss:$16 sps:$4 sm:$0xff]   ;;  %v5705_v13 = vld [vmem:[#allocation5 + $0x88] ss:$16 sps:$4 sm:$0xff]  }
0x161e   : > { %5768 = vtanh.f32 %v3604_v37  ;;  %v5710_v37 = vld [vmem:[#allocation5 + $0x64] ss:$16 sps:$4 sm:$0xff]  }
0x161f   : > { %5770 = vtanh.f32 %v3606_v17  ;;  %v5713_v17 = vld [vmem:[#allocation5 + $0x6c] ss:$16 sps:$4 sm:$0xff]  }
0x1629   : > { %v5765_v39 = vpop.eup %5764 }
0x162a   : > { %v5767_v40 = vpop.eup %5766  ;;  %v3611_v41 = vadd.f32 1.0, %v5765_v39  ;;  %v5708_v39 = vld [vmem:[#allocation5 + $0x60] ss:$16 sps:$4 sm:$0xff]  }
0x162b   : > { %v5769_v42 = vpop.eup %5768  ;;  %v3613_v43 = vadd.f32 1.0, %v5767_v40  ;;  %v5711_v40 = vld [vmem:[#allocation5 + $0x68] ss:$16 sps:$4 sm:$0xff]  }
0x162c   : > { %v5771_v44 = vpop.eup %5770  ;;  %v3612_v45 = vadd.f32 1.0, %v5769_v42  ;;  %v3615_v46 = vmul.f32 0.5, %v3611_v41  ;;  %v5716_v41 = vld [vmem:[#allocation5 + $0x44] ss:$16 sps:$4 sm:$0xff]   ;;  %v5719_v42 = vld [vmem:[#allocation5 + $0x4c] ss:$16 sps:$4 sm:$0xff]  }
0x162d   : > { %v3614_v47 = vadd.f32 1.0, %v5771_v44  ;;  %v3617_v48 = vmul.f32 0.5, %v3613_v43  ;;  %v5714_v43 = vld [vmem:[#allocation5 + $0x40] ss:$16 sps:$4 sm:$0xff]   ;;  %v5717_v44 = vld [vmem:[#allocation5 + $0x48] ss:$16 sps:$4 sm:$0xff]  }
0x162e   : > { %v3616_v49 = vmul.f32 0.5, %v3612_v45  ;;  %v3619_v51 = vmul.f32 %v3615_v46, %v3540_v7  ;;  %v5722_v45 = vld [vmem:[#allocation5 + $0x24] ss:$16 sps:$4 sm:$0xff]   ;;  %v5725_v46 = vld [vmem:[#allocation5 + $0x2c] ss:$16 sps:$4 sm:$0xff]  }
0x162f   : > { %v3618_v50 = vmul.f32 0.5, %v3614_v47  ;;  %v3621_v53 = vmul.f32 %v3617_v48, %v3581_v8  ;;  %v5720_v47 = vld [vmem:[#allocation5 + $0x20] ss:$16 sps:$4 sm:$0xff]   ;;  %v5723_v48 = vld [vmem:[#allocation5 + $0x28] ss:$16 sps:$4 sm:$0xff]  }
0x1630   : > { %v3620_v52 = vmul.f32 %v3616_v49, %v3542_v20  ;;  %v3623_v60 = vpack.c.bf16 %v3619_v51, %v3619_v51  ;;  %v5728_v49 = vld [vmem:[#allocation5 + $0x4] ss:$16 sps:$4 sm:$0xff]   ;;  %v5729_v51 = vld [vmem:[#allocation5 + $0x8] ss:$16 sps:$4 sm:$0xff]  }
0x1631   : > { %v3622_v54 = vmul.f32 %v3618_v50, %v3583_v14  ;;  %v3625_v62 = vpack.c.bf16 %v3621_v53, %v3621_v53  ;;  %v5726_v50 = vld [vmem:[#allocation5] ss:$16 sps:$4 sm:$0xff]  }
0x1632   : > { %v3624_v55 = vpack.c.bf16 %v3620_v52, %v3620_v52  ;;  %v5731_v52 = vld [vmem:[#allocation5 + $0xc] ss:$16 sps:$4 sm:$0xff]  }
0x1633   : > { %v3626_v56 = vpack.c.bf16 %v3622_v54, %v3622_v54 }
0x1634   : > { %3916 = vmatprep.mubr.bf16.mxu1 %v3624_v55 }
0x1635   : > { %3956 = vmatprep.mubr.bf16.mxu0 %v3626_v56  ;;  %3917 = vmatmul.mubr.bf16.vlgmr.msra.gmra.mxu1 %v3623_v60  ;;  %v4935_v60 = vld [vmem:[%s7209_s15] ss:$0 sm:$0xff] }
0x1636   : > { %3957 = vmatmul.mubr.bf16.vlgmr.msra.gmra.mxu0 %v3625_v62  ;;  %4250 = vmatprep.mubr.bf16.mxu1 %v5936_v38 }
0x1637   : > { %4291 = vmatprep.mubr.bf16.mxu0 %v5936_v38  ;;  %4219 = vmatpush1.bf16.msra.mxu1 %v5684_v15 }
0x1638   : > { %4260 = vmatpush1.bf16.msra.mxu0 %v5687_v19  ;;  %4220 = vmatprep.subr.bf16.mxu1 %v5692_v22 }
0x1639   : > { %4261 = vmatprep.subr.bf16.mxu0 %v5695_v23 }
0x163b   : > { %4221 = vmatpush1.bf16.msra.mxu1 %v5690_v30 }
0x163c   : > { %4262 = vmatpush1.bf16.msra.mxu0 %v5693_v24  ;;  %4222 = vmatprep.subr.bf16.mxu1 %v5698_v28 }
0x163d   : > { %4263 = vmatprep.subr.bf16.mxu0 %v5701_v29 }
0x163f   : > { %4223 = vmatpush1.bf16.msra.mxu1 %v5696_v31 }
0x1640   : > { %4264 = vmatpush1.bf16.msra.mxu0 %v5699_v33  ;;  %4224 = vmatprep.subr.bf16.mxu1 %v5704_v34 }
0x1641   : > { %4265 = vmatprep.subr.bf16.mxu0 %v5707_v35 }
0x1643   : > { %4225 = vmatpush1.bf16.msra.mxu1 %v5702_v36  ;;  %v5940_v36 = vmov 1966171168  }
0x1644   : > { %4266 = vmatpush1.bf16.msra.mxu0 %v5705_v13  ;;  %4226 = vmatprep.subr.bf16.mxu1 %v5710_v37  ;;  %v4327_v13 = vunpack.c.l.s4 %v5940_v36 }
0x1645   : > { %4267 = vmatprep.subr.bf16.mxu0 %v5713_v17 }
0x1646   : > { %v4328_v37 = vunpack.c.0.s8 %v4327_v13 }
0x1647   : > { %4227 = vmatpush1.bf16.msra.mxu1 %v5708_v39 }
0x1648   : > { %4268 = vmatpush1.bf16.msra.mxu0 %v5711_v40  ;;  %4228 = vmatprep.subr.bf16.mxu1 %v5716_v41  ;;  %v4331_v39 = vsub.s32 %v4328_v37, %v6399_v58 }
0x1649   : > { %4269 = vmatprep.subr.bf16.mxu0 %v5719_v42 }
0x164b   : > { %4229 = vmatpush1.bf16.msra.mxu1 %v5714_v43 }
0x164c   : > { %4270 = vmatpush1.bf16.msra.mxu0 %v5717_v44  ;;  %4230 = vmatprep.subr.bf16.mxu1 %v5722_v45 }
0x164d   : > { %4271 = vmatprep.subr.bf16.mxu0 %v5725_v46 }
0x164f   : > { %4231 = vmatpush1.bf16.msra.mxu1 %v5720_v47 }
0x1650   : > { %4272 = vmatpush1.bf16.msra.mxu0 %v5723_v48  ;;  %4232 = vmatprep.subr.bf16.mxu1 %v5728_v49 }
0x1651   : > { %4273 = vmatprep.subr.bf16.mxu0 %v5731_v52 }
0x1653   : > { %4233 = vmatpush1.bf16.msra.mxu1 %v5726_v50 }
0x1654   : > { %4274 = vmatpush1.bf16.msra.mxu0 %v5729_v51 }
0x16f5   : > { %v5157_v0 = vpop.f32.mrf.mxu1 }
0x16f6   : > { %v5179_v2 = vpop.f32.mrf.mxu0 }
0x16f7   : > { %v5158_v3 = vpop.f32.mrf.mxu1 }
0x16f8   : > { %v5159_v4 = vadd.f32 %v5158_v3, %v5157_v0  ;;  %v5180_v5 = vpop.f32.mrf.mxu0  ;;  %v4936_v0 = vld [vmem:[%s7210_s16] ss:$0 sm:$0xff] }
0x16f9   : > { %v5181_v6 = vadd.f32 %v5180_v5, %v5179_v2  ;;  %v5160_v7 = vpop.f32.mrf.mxu1  ;;  %v4036_v5 = vld [vmem:[%s7212_s18] sm:$0xf] }
0x16fa   : > { %v5182_v8 = vpop.f32.mrf.mxu0  ;;  %v4209_v7 = vrot.slane %v4036_v5, %v6408_v61 }
0x16fb   : > { %v3959_v9 = vadd.f32 %v5181_v6, %v5159_v4  ;;  %v5161_v10 = vpop.f32.mrf.mxu1  ;;  %v4201_v6 = vrot.slane %v4036_v5, %v6412_v1  ;;  %v4205_v8 = vrot.slane %v4036_v5, %v6402_v59 }
0x16fc   : > { %v5183_v11 = vpop.f32.mrf.mxu0 }
0x16fd   : > { %v3964_v20 = vadd.f32 %v3959_v9, %v6874_v32  ;;  %v4213_v9 = vrot.slane %v4036_v5, %v6693_v63 }
0x16ff   : > { %v3973_v14 = vadd.f32 %v4934_v12, %v3964_v20 }
0x1701   : > { %v3976_v38 = vsel %vm1189_vm0, %v3973_v14, 0.0 }
0x1702   : > { %3977 = vadd.xlane.f32.xlu1 %v3976_v38 }
0x178b   : > { %v3978_v32 = vpop.xlane.xlu1 %3977 }
0x178c   : > { %v3979_v18 = vmul.f32 0.0078125, %v3978_v32 }
0x178e   : > { %v3980_v25 = vsub.f32 %v3973_v14, %v3979_v18 }
0x1790   : > { %v3981_v26 = vmul.f32 %v3980_v25, %v3980_v25 }
0x1792   : > { %v3982_v27 = vsel %vm1189_vm0, %v3981_v26, 0.0 }
0x1793   : > { %3983 = vadd.xlane.f32.xlu1 %v3982_v27 }
0x181c   : > { %v3984_v53 = vpop.xlane.xlu1 %3983 }
0x181d   : > { %v3985_v54 = vmul.f32 0.0078125, %v3984_v53 }
0x181f   : > { %v3986_v55 = vadd.f32 1e-05, %v3985_v54 }
0x1821   : > { %5772 = vrsqrt.f32 %v3986_v55 }
0x182e   : > { %v5773_v56 = vpop.eup %5772 }
0x182f   : > { %v3988_v62 = vmul.f32 %v5773_v56, %v3980_v25 }
0x1831   : > { %v3995_v2 = vmul.f32 %v4935_v60, %v3988_v62 }
0x1833   : > { %v7096_v3 = vadd.f32 %v4936_v0, %v3995_v2 }
0x1835   : > { %v4003_v4 = vpack.c.bf16 %v7096_v3, %v7096_v3  ;;  %v4354_v28 = vmul.f32 %v7096_v3, %v7096_v3 }
0x1837   : > { %4251 = vmatmul.mubr.bf16.vlgmr.msra.gmra.mxu1 %v4003_v4  ;;  %4292 = vmatmul.mubr.bf16.vlgmr.msra.gmra.mxu0 %v4003_v4  ;;  %v4356_v29 = vsel %vm4355_vm8, %v4354_v28, 0.0 }
0x18f7   : > { %v4252_v10 = vpop.f32.mrf.mxu1  ;;  %v4293_v11 = vpop.f32.mrf.mxu0 }
0x18f8   : > { %v4253_v12 = vadd.f32 %v4252_v10, %v4201_v6  ;;  %v4294_v20 = vadd.f32 %v4293_v11, %v4209_v7 }
0x18f9   : > { %v4254_v14 = vpop.f32.mrf.mxu1  ;;  %v4295_v38 = vpop.f32.mrf.mxu0 }
0x18fa   : > { %v4300_v15 = vmul.f32 %v4253_v12, %v4253_v12  ;;  %v4255_v16 = vadd.f32 %v4254_v14, %v4205_v8  ;;  %v4296_v19 = vadd.f32 %v4295_v38, %v4213_v9  ;;  %v4302_v23 = vmul.f32 %v4294_v20, %v4294_v20 }
0x18fb   : > { %v4256_v21 = vpop.f32.mrf.mxu1  ;;  %v4297_v22 = vpop.f32.mrf.mxu0 }
0x18fc   : > { %v4301_v1 = vmul.f32 %v4255_v16, %v4255_v16  ;;  %v4305_v24 = vsel %vm4304_vm7, %v4300_v15, 0.0  ;;  %v4303_v32 = vmul.f32 %v4296_v19, %v4296_v19  ;;  %v4308_v18 = vsel %vm4304_vm7, %v4302_v23, 0.0 }
0x18fd   : > { %v4257_v30 = vpop.f32.mrf.mxu1  ;;  %v4298_v61 = vpop.f32.mrf.mxu0 }
0x18fe   : > { %v4306_v59 = vsel %vm4304_vm7, %v4301_v1, 0.0  ;;  %v4310_v26 = vsel %vm4304_vm7, %v4303_v32, 0.0 }
0x18ff   : > { %v4307_v63 = vadd.f32 %v4306_v59, %v4305_v24 }
0x1901   : > { %v4309_v25 = vadd.f32 %v4308_v18, %v4307_v63 }
0x1903   : > { %v4311_v27 = vadd.f32 %v4310_v26, %v4309_v25 }
0x1905   : > { %4312 = vadd.xlane.f32.xlu1 %v4311_v27 }
0x1909   : > { %4357 = vadd.xlane.f32.xlu1 %v4356_v29 }
0x198e   : > { %v4313_v31 = vpop.xlane.xlu1 %4312 }
0x198f   : > { %v4314_v33 = vmax.f32 %v4313_v31, 1e-24 }
0x1991   : > { %5774 = vrsqrt.f32 %v4314_v33 }
0x1992   : > { %v4358_v34 = vpop.xlane.xlu1 %4357 }
0x1993   : > { %v4359_v35 = vmax.f32 %v4358_v34, 1e-24 }
0x1995   : > { %5776 = vrsqrt.f32 %v4359_v35 }
0x199e   : > { %v5775_v17 = vpop.eup %5774 }
0x199f   : > { %v4316_v40 = vmul.f32 %v5775_v17, %v4253_v12  ;;  %v4317_v41 = vmul.f32 %v5775_v17, %v4255_v16  ;;  %v4318_v42 = vmul.f32 %v5775_v17, %v4294_v20  ;;  %v4319_v43 = vmul.f32 %v5775_v17, %v4296_v19 }
0x19a1   : > { %v4324_v44 = vcombine.low %v4316_v40, %v4317_v41  ;;  %v4325_v45 = vcombine.low %v4318_v42, %v4319_v43 }
0x19a2   : > { %v5777_v46 = vpop.eup %5776 }
0x19a3   : > { %v4332_v47 = vrot.slane %v4324_v44, %v4331_v39  ;;  %v4339_v48 = vrot.slane %v4325_v45, %v4331_v39  ;;  %v4361_v49 = vmul.f32 %v5777_v46, %v7096_v3 }
0x19a5   : > { %v4340_v58 = vcombine.low %v4332_v47, %v4339_v48  ;;  %4362 = vst [vmem:[%s663_s1 - $0x1] sm:$0x1e] %v4361_v49 }
0x19a6   : > { %5843 = shalt.err (!%p5840_p3)
}
0x19a7   : > { %s5844_s1 = scalar_lea.hbm %s7121_s0, 64  ;;  %s5848_s24 = scalar_lea.hbm %s7214_s20, 128 }
0x19a8   : > { %p5845_p2 = scmp.ne.s32.totalorder %s7121_s0, %s5844_s1  ;;  %p5849_p6 = scmp.lt.s32.totalorder %s7121_s0, %s7214_s20 }
0x19a9   : > { %p5850_p9 = scmp.lt.s32.totalorder %s5848_s24, %s5844_s1 }
0x19aa   : > { %p5846_p4 = pnand %p5845_p2, %p6086_p5 }
0x19ab   : > { %p5851_p10 = por %p5850_p9, %p5849_p6 }
0x19ac   : > { %p5847_p13 = pneg %p5846_p4 }
0x19ae   : > { %p5852_p12 = pnand %p5851_p10, %p5847_p13 }
0x19b0   : > { %5855 = shalt.err (!%p5852_p12)
}
0x19b1   : > { %5331 = dma.vmem_to_hbm [thread:$0]  (%p6086_p5), %s7123_s10, 64, %s7121_s0, %s4369_s17   ;;  %v4347_v57 = vrot.slane %v4340_v58, %v4331_v39 }
0x19b2   : > { %s7264_s23 = sshll.u32 %s6069_s2, 6  ;;  %s7265_s3 = sshll.u32 %s7125_s21, 4  ;;  %s4384_s3 = int_to_ptr.vmem [resolvable:$true] %s7265_s3 }
0x19b3   : > { %s4381_s5 = scalar_lea.hbm %s7213_s19, %s7264_s23  ;;  %4353 = vst.msk [vmem:[%s7125_s21] sm:$0xf] %vm7129_vm9, %v4347_v57  ;;  %s4364_s30 = scalar_lea.sflag [#allocation4], %s7110_s28 }
0x19b4   : > { %s5856_s29 = scalar_lea.vmem %s4384_s3, 64  ;;  %s5942_s1 = smov [#allocation7]  }
0x19b5   : > { %p5857_p7 = scmp.ne.s32.totalorder %s4384_s3, %s5856_s29  ;;  %s5860_s24 = sshll.u32 %s5942_s1, 4  ;;  %s5861_s24 = int_to_ptr.vmem [resolvable:$false] %s5860_s24 }
0x19b6   : > { %s5862_s10 = scalar_lea.vmem %s5861_s24, 128  ;;  %p5863_p0 = scmp.lt.s32.totalorder %s4384_s3, %s5861_s24 }
0x19b7   : > { %p5858_p8 = pnand %p5857_p7, %p6086_p5  ;;  %p5864_p1 = scmp.lt.s32.totalorder %s5862_s10, %s5856_s29 }
0x19b9   : > { %p5859_p11 = pneg %p5858_p8  ;;  %p5865_p3 = por %p5864_p1, %p5863_p0 }
0x19bb   : > { %p5866_p2 = pnand %p5865_p3, %p5859_p11 }
0x19bd   : > { %5869 = shalt.err (!%p5866_p2)
}
0x19be   : > { %s5870_s2 = scalar_lea.hbm %s4381_s5, 64  ;;  %s5874_s21 = scalar_lea.hbm %s7213_s19, 128 }
0x19bf   : > { %p5871_p4 = scmp.ne.s32.totalorder %s4381_s5, %s5870_s2  ;;  %p5875_p9 = scmp.lt.s32.totalorder %s4381_s5, %s7213_s19 }
0x19c0   : > { %p5876_p10 = scmp.lt.s32.totalorder %s5874_s21, %s5870_s2 }
0x19c1   : > { %p5872_p13 = pnand %p5871_p4, %p6086_p5 }
0x19c2   : > { %p5877_p12 = por %p5876_p10, %p5875_p9 }
0x19c3   : > { %p5873_p6 = pneg %p5872_p13 }
0x19c5   : > { %p5878_p7 = pnand %p5877_p12, %p5873_p6 }
0x19c7   : > { %5881 = shalt.err (!%p5878_p7)
}
0x19c8   : > { %5330 = dma.vmem_to_hbm [thread:$0]  (%p6086_p5), %s4384_s3, 64, %s4381_s5, %s4364_s30  }
0x19c9 PF: > { %s7266_s25 = sld [smem:[#allocation16_spill]] }
0x19ca   : > { %s7267_s27 = sld [smem:[#allocation14_spill]] }
0x19cb   : > { %s7268_s29 = sld [smem:[#allocation19_spill]] }
0x19cf   : > { %p5352_p8 = scmp.ge.s32.totalorder %s7266_s25, 2 }
0x19d0   : > { %s4408_s1 = sand.u32 1, %s7267_s27  }
0x19d1   : > { %p7269_p11 = scmp.ne.s32.totalorder %s7268_s29, 0  ;;  %s4409_s24 = scalar_lea.sflag [#allocation4], %s4408_s1 }
0x19d3   : > { %p5342_p0 = pnand %p5352_p8, %p7269_p11 }
0x19d5   : > { %p5343_p1 = pneg %p5342_p0 }
0x19d7   : > { %5907 = dma.done.wait (%p5343_p1), %s4409_s24, 64  }
0x19d8   : > { %5909 = vsyncadd (%p5343_p1), %s4409_s24, 4294967232  ;;  %s4418_s10 = scalar_lea.sflag [#allocation9], %s4408_s1 }
0x19d9   : > { %5911 = dma.done.wait (%p5343_p1), %s4418_s10, 64  }
0x19da   : > { %5913 = vsyncadd (%p5343_p1), %s4418_s10, 4294967232  ;;  %s7270_s24 = sld [smem:[#allocation17_spill]]  ;;  %s7273_s1 = smov %s5920_s22 }
0x19db   : > { %s7271_s2 = sld [smem:[#allocation15_spill]] }
0x19dc   : > { %s7272_s23 = sld [smem:[#allocation18_spill]] }
0x19e0   : > { %p36_p5 = scmp.ge.s32.totalorder %s7270_s24, 4  }
0x19e1   : > { %s7274_s22 = smov %s7271_s2 }
0x19e2   :  { %38 = sbr.rel (!%p36_p5) target bundleno = 16 (0x10), region = 169 }
0x19e7   :  { %4423 = vsyncpa [#allocation3], 1 }
0x19e8   :  { %4425 = vsyncpa [#allocation3 + $0x1], 1 }
0x19e9   :  { %4426 = vsyncpa [#allocation6], 1 }
0x19ea   :  { %4427 = vsyncpa [#allocation4], 1 }
0x19eb   :  { %4429 = vsyncpa [#allocation4 + $0x1], 1 }
0x19ec   :  { %4430 = vsyncpa [#allocation9], 1 }
0x19ed   :  { %4432 = vsyncpa [#allocation9 + $0x1], 1 }

</bundles_post_ra>
